<compile_context>
chip_gen: v7x
topology: tpu7x:2x2x1
jax: 0.10.0
libtpu: 0.0.40
codegen_flags: <defaults>
</compile_context>

<pallas_src>
import jax
import jax.numpy as jnp
from jax import lax
from jax.experimental import pallas as pl
from jax.experimental.pallas import tpu as pltpu

H = W = 100            # spatial size implied by Linear(5000, 6)
PH = H // 2            # pooled spatial size: 50
PROWS = (H + 2) // 2   # rows per row-phase of the zero-padded (102x104) image: 51
PADW = 104             # padded row width (>= 100 + 2 (max dx) + 1 extra pool column)
CW = 2 * PH + 1        # conv columns computed per row: 101 (extra col feeds the lane-shift pool)
C_OUT = 2
LIN_OUT = 6
FLAT = C_OUT * PH * PH  # 5000


def fused_conv_pool_linear_kernel(w_ref, ph_ref, wl_ref, lb_ref, out_ref):
    """Fused Conv2d(1->2,3x3,pad=1) + MaxPool2d(2) + Linear(5000->6), B images/step.

    w_ref  : SMEM (18,)             conv weights, index c*9 + dy*3 + dx
    ph_ref : VMEM (B, 2, 51, 104)   row-parity phases of the zero-padded inputs:
                                    phase[py][r, m] = xpad[2r + py, m] (lanes >=102 are 0)
    wl_ref : VMEM (2, 6, 50, 100)   linear weight with the stride-2 column selection
                                    folded in: wl[c,k,i,2j] = lin_w[k, c*2500+i*50+j],
                                    odd lanes zero.
    lb_ref : VMEM (1, 1, 6)         linear bias (conv-bias contribution folded in)
    out_ref: VMEM (B, 1, 6)
    """
    # Hoist the 18 SMEM scalar reads out of every loop (no repeated loads /
    # broadcasts inside the unrolled shift-and-add).
    w = [w_ref[i] for i in range(C_OUT * 9)]

    # --- conv on full-width rows + row-parity max ---------------------------
    # Conv output row i = 2*oy + a (a = row parity inside the 2x2 pool window).
    # Padded-image row i+dy lives in row-phase (a+dy) % 2 at phase row
    # oy + (a+dy)//2, so every (a,dy,dx) term is one ~101-lane-wide slice that
    # both output channels reuse.
    pooled = [None] * C_OUT          # running max over the two row parities
    for a in range(2):
        acc = [None] * C_OUT
        for dy in range(3):
            vr = a + dy
            py, ry = vr % 2, vr // 2
            for dx in range(3):
                v = ph_ref[:, py, ry:ry + PH, dx:dx + CW]          # (B, 50, 101)
                for c in range(C_OUT):
                    term = w[c * 9 + dy * 3 + dx] * v
                    acc[c] = term if acc[c] is None else acc[c] + term
        for c in range(C_OUT):
            pooled[c] = acc[c] if pooled[c] is None else jnp.maximum(pooled[c], acc[c])

    # --- 2-wide column pool, in-lane ----------------------------------------
    # colmax[..., 2*ox] = pooled output p[c, oy, ox]; odd lanes are junk and
    # receive zero weight from wl_ref.
    colmax = [jnp.maximum(p[:, :, 0:2 * PH], p[:, :, 1:2 * PH + 1]) for p in pooled]

    # --- fused Linear(5000 -> 6) ---------------------------------------------
    # out[b, k] = sum_{c,i,l} colmax[c][b,i,l] * wl[c,k,i,l] + lb[k]
    cols = []
    for k in range(LIN_OUT):
        t = colmax[0] * wl_ref[0, k] + colmax[1] * wl_ref[1, k]            # (B,50,100)
        s = jnp.sum(jnp.sum(t, axis=2, keepdims=True), axis=1, keepdims=True)  # (B,1,1)
        cols.append(s)
    out_ref[...] = jnp.concatenate(cols, axis=2) + lb_ref[...]


def _block_plan(n, block_n):
    """Pick (batch block B, vmem limit) per TPU generation."""
    try:
        vmem_cap = int(pltpu.get_tpu_info().vmem_capacity_bytes)
    except Exception:
        vmem_cap = None

    if vmem_cap is not None and vmem_cap >= 100 * 1024 * 1024:
        # v5e / v6e: 128 MiB VMEM, single TensorCore -> big blocks, no forced split.
        two_core = False
        vmem_limit = 96 * 1024 * 1024
        b_max = 32 if block_n is None else block_n
    else:
        # v7x (64 MiB VMEM, 2 TensorCores) or unknown -> conservative VMEM cap
        # and make sure the ("parallel",) batch axis has >= 2 steps.
        two_core = True
        vmem_limit = 48 * 1024 * 1024
        b_max = 16 if block_n is None else block_n

    B = max(1, min(b_max, n))
    if two_core and n > 1 and pl.cdiv(n, B) < 2:
        B = pl.cdiv(n, 2)
    return B, vmem_limit


def billy_forward(x, conv_w, conv_b, lin_w, lin_b, *, block_n=None):
    """x: (N, 1, 100, 100) float32 NCHW -> (N, 6) float32."""
    assert x.shape[1:] == (1, H, W), "Billy's Linear(5000, 6) implies (N, 1, 100, 100) inputs"
    N = x.shape[0]
    x = x.astype(jnp.float32)

    B, vmem_limit = _block_plan(N, block_n)
    n_blocks = pl.cdiv(N, B)
    N_pad = n_blocks * B
    if N_pad != N:
        x = jnp.pad(x, ((0, N_pad - N), (0, 0), (0, 0), (0, 0)))

    # --- host glue: zero-pad and split into the two ROW parities only -------
    # (column parities are handled in-lane inside the kernel; the extra right
    #  pad to PADW keeps every dx:dx+101 lane window in-bounds).
    xpad = jnp.pad(x[:, 0], ((0, 0), (1, 1), (1, PADW - W - 1)))         # (N_pad, 102, 104)
    phases = jnp.stack([xpad[:, 0::2, :], xpad[:, 1::2, :]], axis=1)     # (N_pad, 2, 51, 104)

    w_flat = conv_w.reshape(C_OUT * 9).astype(jnp.float32)               # (18,)

    # Linear weight laid out per conv channel with the stride-2 column
    # selection folded in: wl[c, k, i, 2*j] = lin_w[k, c*2500 + i*50 + j]
    # (matches torch.nn.Flatten's channel-major flatten of (N,2,50,50)).
    lw = lin_w.astype(jnp.float32).reshape(LIN_OUT, C_OUT, PH, PH).transpose(1, 0, 2, 3)
    wl = jnp.zeros((C_OUT, LIN_OUT, PH, 2 * PH), jnp.float32).at[..., 0::2].set(lw)

    # conv bias is a per-channel constant -> commutes with the max-pool; fold
    # its linear contribution into the linear bias on the host.
    w_sum = lin_w.astype(jnp.float32).reshape(LIN_OUT, C_OUT, PH * PH).sum(-1)   # (6, 2)
    lb_eff = lin_b.astype(jnp.float32) + w_sum @ conv_b.astype(jnp.float32)
    lb_eff = lb_eff.reshape(1, 1, LIN_OUT)                                       # (1, 1, 6)

    out = pl.pallas_call(
        fused_conv_pool_linear_kernel,
        out_shape=jax.ShapeDtypeStruct((N_pad, 1, LIN_OUT), jnp.float32),
        grid=(n_blocks,),
        in_specs=[
            pl.BlockSpec(memory_space=pltpu.MemorySpace.SMEM),                   # conv w
            pl.BlockSpec((B, 2, PROWS, PADW), lambda n: (n, 0, 0, 0)),           # phases
            pl.BlockSpec((C_OUT, LIN_OUT, PH, 2 * PH), lambda n: (0, 0, 0, 0)),  # lin w
            pl.BlockSpec((1, 1, LIN_OUT), lambda n: (0, 0, 0)),                  # lin b
        ],
        out_specs=pl.BlockSpec((B, 1, LIN_OUT), lambda n: (n, 0, 0)),
        compiler_params=pltpu.CompilerParams(
            dimension_semantics=("parallel",),
            vmem_limit_bytes=vmem_limit),
    )(w_flat, phases, wl, lb_eff)

    return out.reshape(N_pad, LIN_OUT)[:N]


if __name__ == "__main__":
    key = jax.random.PRNGKey(0)
    k1, k2, k3, k4, k5 = jax.random.split(key, 5)

    N = 2
    x = jax.random.normal(k1, (N, 1, H, W), dtype=jnp.float32)

    # Deterministic parameter init (shapes follow the PyTorch module).
    conv_w = jax.random.uniform(k2, (C_OUT, 1, 3, 3), dtype=jnp.float32,
                                minval=-1.0 / 3.0, maxval=1.0 / 3.0)
    conv_b = jax.random.uniform(k3, (C_OUT,), dtype=jnp.float32,
                                minval=-1.0 / 3.0, maxval=1.0 / 3.0)
    bound = 1.0 / float(FLAT) ** 0.5
    lin_w = jax.random.uniform(k4, (LIN_OUT, FLAT), dtype=jnp.float32,
                               minval=-bound, maxval=bound)
    lin_b = jax.random.uniform(k5, (LIN_OUT,), dtype=jnp.float32,
                               minval=-bound, maxval=bound)

    out = jax.jit(billy_forward)(x, conv_w, conv_b, lin_w, lin_b)
    out = jax.block_until_ready(out)

    # Pure-JAX reference for a correctness sanity check.
    ref_conv = lax.conv_general_dilated(
        x, conv_w, window_strides=(1, 1), padding=((1, 1), (1, 1)),
        dimension_numbers=("NCHW", "OIHW", "NCHW"))
    ref_conv = ref_conv + conv_b[None, :, None, None]
    ref_pool = lax.reduce_window(ref_conv, -jnp.inf, lax.max,
                                 (1, 1, 2, 2), (1, 1, 2, 2), "VALID")
    ref_out = ref_pool.reshape(N, -1) @ lin_w.T + lin_b

    assert out.shape == (N, LIN_OUT)
    assert jnp.allclose(out, ref_out, atol=1e-2, rtol=1e-2)
    print("KERNEL_OK")
</pallas_src>

<mosaic_0001>
module attributes {stable_mosaic.version = 11 : i64} {
  func.func @fused_conv_pool_linear_kernel(%arg0: i32, %arg1: memref<18xf32, #tpu.memory_space<smem>>, %arg2: memref<1x2x51x104xf32, #tpu.memory_space<vmem>>, %arg3: memref<2x6x50x100xf32, #tpu.memory_space<vmem>>, %arg4: memref<1x1x6xf32, #tpu.memory_space<vmem>>, %arg5: memref<1x1x6xf32, #tpu.memory_space<vmem>>) attributes {dimension_semantics = [#tpu.dimension_semantics<parallel>], iteration_bounds = array<i64: 2>, scalar_prefetch = 0 : i64, scratch_operands = 0 : i64, tpu.core_type = #tpu.core_type<tc>, window_params = [{transform_indices = @transform_0, window_bounds = array<i64: 18>}, {transform_indices = @transform_1, window_bounds = array<i64: 1, 2, 51, 104>}, {pipeline_mode = #tpu.pipeline_mode<synchronous>, transform_indices = @transform_2, window_bounds = array<i64: 2, 6, 50, 100>}, {pipeline_mode = #tpu.pipeline_mode<synchronous>, transform_indices = @transform_3, window_bounds = array<i64: 1, 1, 6>}, {transform_indices = @transform_4, window_bounds = array<i64: 1, 1, 6>}]} {
    %c0 = arith.constant 0 : index
    %0 = memref.load %arg1[%c0] : memref<18xf32, #tpu.memory_space<smem>>
    %c1 = arith.constant 1 : index
    %1 = memref.load %arg1[%c1] : memref<18xf32, #tpu.memory_space<smem>>
    %c2 = arith.constant 2 : index
    %2 = memref.load %arg1[%c2] : memref<18xf32, #tpu.memory_space<smem>>
    %c3 = arith.constant 3 : index
    %3 = memref.load %arg1[%c3] : memref<18xf32, #tpu.memory_space<smem>>
    %c4 = arith.constant 4 : index
    %4 = memref.load %arg1[%c4] : memref<18xf32, #tpu.memory_space<smem>>
    %c5 = arith.constant 5 : index
    %5 = memref.load %arg1[%c5] : memref<18xf32, #tpu.memory_space<smem>>
    %c6 = arith.constant 6 : index
    %6 = memref.load %arg1[%c6] : memref<18xf32, #tpu.memory_space<smem>>
    %c7 = arith.constant 7 : index
    %7 = memref.load %arg1[%c7] : memref<18xf32, #tpu.memory_space<smem>>
    %c8 = arith.constant 8 : index
    %8 = memref.load %arg1[%c8] : memref<18xf32, #tpu.memory_space<smem>>
    %c9 = arith.constant 9 : index
    %9 = memref.load %arg1[%c9] : memref<18xf32, #tpu.memory_space<smem>>
    %c10 = arith.constant 10 : index
    %10 = memref.load %arg1[%c10] : memref<18xf32, #tpu.memory_space<smem>>
    %c11 = arith.constant 11 : index
    %11 = memref.load %arg1[%c11] : memref<18xf32, #tpu.memory_space<smem>>
    %c12 = arith.constant 12 : index
    %12 = memref.load %arg1[%c12] : memref<18xf32, #tpu.memory_space<smem>>
    %c13 = arith.constant 13 : index
    %13 = memref.load %arg1[%c13] : memref<18xf32, #tpu.memory_space<smem>>
    %c14 = arith.constant 14 : index
    %14 = memref.load %arg1[%c14] : memref<18xf32, #tpu.memory_space<smem>>
    %c15 = arith.constant 15 : index
    %15 = memref.load %arg1[%c15] : memref<18xf32, #tpu.memory_space<smem>>
    %c16 = arith.constant 16 : index
    %16 = memref.load %arg1[%c16] : memref<18xf32, #tpu.memory_space<smem>>
    %c17 = arith.constant 17 : index
    %17 = memref.load %arg1[%c17] : memref<18xf32, #tpu.memory_space<smem>>
    %c0_0 = arith.constant 0 : index
    %c0_1 = arith.constant 0 : index
    %c0_2 = arith.constant 0 : index
    %c0_3 = arith.constant 0 : index
    %18 = vector.load %arg2[%c0_0, %c0_1, %c0_2, %c0_3] : memref<1x2x51x104xf32, #tpu.memory_space<vmem>>, vector<1x1x50x101xf32>
    %19 = vector.shape_cast %18 : vector<1x1x50x101xf32> to vector<1x50x101xf32>
    %20 = vector.broadcast %0 : f32 to vector<1x50x101xf32>
    %21 = arith.mulf %20, %19 : vector<1x50x101xf32>
    %22 = vector.broadcast %9 : f32 to vector<1x50x101xf32>
    %23 = arith.mulf %22, %19 : vector<1x50x101xf32>
    %c0_4 = arith.constant 0 : index
    %c0_5 = arith.constant 0 : index
    %c0_6 = arith.constant 0 : index
    %c1_7 = arith.constant 1 : index
    %24 = vector.load %arg2[%c0_4, %c0_5, %c0_6, %c1_7] : memref<1x2x51x104xf32, #tpu.memory_space<vmem>>, vector<1x1x50x101xf32>
    %25 = vector.shape_cast %24 : vector<1x1x50x101xf32> to vector<1x50x101xf32>
    %26 = vector.broadcast %1 : f32 to vector<1x50x101xf32>
    %27 = arith.mulf %26, %25 : vector<1x50x101xf32>
    %28 = arith.addf %21, %27 : vector<1x50x101xf32>
    %29 = vector.broadcast %10 : f32 to vector<1x50x101xf32>
    %30 = arith.mulf %29, %25 : vector<1x50x101xf32>
    %31 = arith.addf %23, %30 : vector<1x50x101xf32>
    %c0_8 = arith.constant 0 : index
    %c0_9 = arith.constant 0 : index
    %c0_10 = arith.constant 0 : index
    %c2_11 = arith.constant 2 : index
    %32 = vector.load %arg2[%c0_8, %c0_9, %c0_10, %c2_11] : memref<1x2x51x104xf32, #tpu.memory_space<vmem>>, vector<1x1x50x101xf32>
    %33 = vector.shape_cast %32 : vector<1x1x50x101xf32> to vector<1x50x101xf32>
    %34 = vector.broadcast %2 : f32 to vector<1x50x101xf32>
    %35 = arith.mulf %34, %33 : vector<1x50x101xf32>
    %36 = arith.addf %28, %35 : vector<1x50x101xf32>
    %37 = vector.broadcast %11 : f32 to vector<1x50x101xf32>
    %38 = arith.mulf %37, %33 : vector<1x50x101xf32>
    %39 = arith.addf %31, %38 : vector<1x50x101xf32>
    %c0_12 = arith.constant 0 : index
    %c1_13 = arith.constant 1 : index
    %c0_14 = arith.constant 0 : index
    %c0_15 = arith.constant 0 : index
    %40 = vector.load %arg2[%c0_12, %c1_13, %c0_14, %c0_15] : memref<1x2x51x104xf32, #tpu.memory_space<vmem>>, vector<1x1x50x101xf32>
    %41 = vector.shape_cast %40 : vector<1x1x50x101xf32> to vector<1x50x101xf32>
    %42 = vector.broadcast %3 : f32 to vector<1x50x101xf32>
    %43 = arith.mulf %42, %41 : vector<1x50x101xf32>
    %44 = arith.addf %36, %43 : vector<1x50x101xf32>
    %45 = vector.broadcast %12 : f32 to vector<1x50x101xf32>
    %46 = arith.mulf %45, %41 : vector<1x50x101xf32>
    %47 = arith.addf %39, %46 : vector<1x50x101xf32>
    %c0_16 = arith.constant 0 : index
    %c1_17 = arith.constant 1 : index
    %c0_18 = arith.constant 0 : index
    %c1_19 = arith.constant 1 : index
    %48 = vector.load %arg2[%c0_16, %c1_17, %c0_18, %c1_19] : memref<1x2x51x104xf32, #tpu.memory_space<vmem>>, vector<1x1x50x101xf32>
    %49 = vector.shape_cast %48 : vector<1x1x50x101xf32> to vector<1x50x101xf32>
    %50 = vector.broadcast %4 : f32 to vector<1x50x101xf32>
    %51 = arith.mulf %50, %49 : vector<1x50x101xf32>
    %52 = arith.addf %44, %51 : vector<1x50x101xf32>
    %53 = vector.broadcast %13 : f32 to vector<1x50x101xf32>
    %54 = arith.mulf %53, %49 : vector<1x50x101xf32>
    %55 = arith.addf %47, %54 : vector<1x50x101xf32>
    %c0_20 = arith.constant 0 : index
    %c1_21 = arith.constant 1 : index
    %c0_22 = arith.constant 0 : index
    %c2_23 = arith.constant 2 : index
    %56 = vector.load %arg2[%c0_20, %c1_21, %c0_22, %c2_23] : memref<1x2x51x104xf32, #tpu.memory_space<vmem>>, vector<1x1x50x101xf32>
    %57 = vector.shape_cast %56 : vector<1x1x50x101xf32> to vector<1x50x101xf32>
    %58 = vector.broadcast %5 : f32 to vector<1x50x101xf32>
    %59 = arith.mulf %58, %57 : vector<1x50x101xf32>
    %60 = arith.addf %52, %59 : vector<1x50x101xf32>
    %61 = vector.broadcast %14 : f32 to vector<1x50x101xf32>
    %62 = arith.mulf %61, %57 : vector<1x50x101xf32>
    %63 = arith.addf %55, %62 : vector<1x50x101xf32>
    %c0_24 = arith.constant 0 : index
    %c0_25 = arith.constant 0 : index
    %c1_26 = arith.constant 1 : index
    %c0_27 = arith.constant 0 : index
    %64 = vector.load %arg2[%c0_24, %c0_25, %c1_26, %c0_27] : memref<1x2x51x104xf32, #tpu.memory_space<vmem>>, vector<1x1x50x101xf32>
    %65 = vector.shape_cast %64 : vector<1x1x50x101xf32> to vector<1x50x101xf32>
    %66 = vector.broadcast %6 : f32 to vector<1x50x101xf32>
    %67 = arith.mulf %66, %65 : vector<1x50x101xf32>
    %68 = arith.addf %60, %67 : vector<1x50x101xf32>
    %69 = vector.broadcast %15 : f32 to vector<1x50x101xf32>
    %70 = arith.mulf %69, %65 : vector<1x50x101xf32>
    %71 = arith.addf %63, %70 : vector<1x50x101xf32>
    %c0_28 = arith.constant 0 : index
    %c0_29 = arith.constant 0 : index
    %c1_30 = arith.constant 1 : index
    %c1_31 = arith.constant 1 : index
    %72 = vector.load %arg2[%c0_28, %c0_29, %c1_30, %c1_31] : memref<1x2x51x104xf32, #tpu.memory_space<vmem>>, vector<1x1x50x101xf32>
    %73 = vector.shape_cast %72 : vector<1x1x50x101xf32> to vector<1x50x101xf32>
    %74 = vector.broadcast %7 : f32 to vector<1x50x101xf32>
    %75 = arith.mulf %74, %73 : vector<1x50x101xf32>
    %76 = arith.addf %68, %75 : vector<1x50x101xf32>
    %77 = vector.broadcast %16 : f32 to vector<1x50x101xf32>
    %78 = arith.mulf %77, %73 : vector<1x50x101xf32>
    %79 = arith.addf %71, %78 : vector<1x50x101xf32>
    %c0_32 = arith.constant 0 : index
    %c0_33 = arith.constant 0 : index
    %c1_34 = arith.constant 1 : index
    %c2_35 = arith.constant 2 : index
    %80 = vector.load %arg2[%c0_32, %c0_33, %c1_34, %c2_35] : memref<1x2x51x104xf32, #tpu.memory_space<vmem>>, vector<1x1x50x101xf32>
    %81 = vector.shape_cast %80 : vector<1x1x50x101xf32> to vector<1x50x101xf32>
    %82 = vector.broadcast %8 : f32 to vector<1x50x101xf32>
    %83 = arith.mulf %82, %81 : vector<1x50x101xf32>
    %84 = arith.addf %76, %83 : vector<1x50x101xf32>
    %85 = vector.broadcast %17 : f32 to vector<1x50x101xf32>
    %86 = arith.mulf %85, %81 : vector<1x50x101xf32>
    %87 = arith.addf %79, %86 : vector<1x50x101xf32>
    %c0_36 = arith.constant 0 : index
    %c1_37 = arith.constant 1 : index
    %c0_38 = arith.constant 0 : index
    %c0_39 = arith.constant 0 : index
    %88 = vector.load %arg2[%c0_36, %c1_37, %c0_38, %c0_39] : memref<1x2x51x104xf32, #tpu.memory_space<vmem>>, vector<1x1x50x101xf32>
    %89 = vector.shape_cast %88 : vector<1x1x50x101xf32> to vector<1x50x101xf32>
    %90 = vector.broadcast %0 : f32 to vector<1x50x101xf32>
    %91 = arith.mulf %90, %89 : vector<1x50x101xf32>
    %92 = vector.broadcast %9 : f32 to vector<1x50x101xf32>
    %93 = arith.mulf %92, %89 : vector<1x50x101xf32>
    %c0_40 = arith.constant 0 : index
    %c1_41 = arith.constant 1 : index
    %c0_42 = arith.constant 0 : index
    %c1_43 = arith.constant 1 : index
    %94 = vector.load %arg2[%c0_40, %c1_41, %c0_42, %c1_43] : memref<1x2x51x104xf32, #tpu.memory_space<vmem>>, vector<1x1x50x101xf32>
    %95 = vector.shape_cast %94 : vector<1x1x50x101xf32> to vector<1x50x101xf32>
    %96 = vector.broadcast %1 : f32 to vector<1x50x101xf32>
    %97 = arith.mulf %96, %95 : vector<1x50x101xf32>
    %98 = arith.addf %91, %97 : vector<1x50x101xf32>
    %99 = vector.broadcast %10 : f32 to vector<1x50x101xf32>
    %100 = arith.mulf %99, %95 : vector<1x50x101xf32>
    %101 = arith.addf %93, %100 : vector<1x50x101xf32>
    %c0_44 = arith.constant 0 : index
    %c1_45 = arith.constant 1 : index
    %c0_46 = arith.constant 0 : index
    %c2_47 = arith.constant 2 : index
    %102 = vector.load %arg2[%c0_44, %c1_45, %c0_46, %c2_47] : memref<1x2x51x104xf32, #tpu.memory_space<vmem>>, vector<1x1x50x101xf32>
    %103 = vector.shape_cast %102 : vector<1x1x50x101xf32> to vector<1x50x101xf32>
    %104 = vector.broadcast %2 : f32 to vector<1x50x101xf32>
    %105 = arith.mulf %104, %103 : vector<1x50x101xf32>
    %106 = arith.addf %98, %105 : vector<1x50x101xf32>
    %107 = vector.broadcast %11 : f32 to vector<1x50x101xf32>
    %108 = arith.mulf %107, %103 : vector<1x50x101xf32>
    %109 = arith.addf %101, %108 : vector<1x50x101xf32>
    %c0_48 = arith.constant 0 : index
    %c0_49 = arith.constant 0 : index
    %c1_50 = arith.constant 1 : index
    %c0_51 = arith.constant 0 : index
    %110 = vector.load %arg2[%c0_48, %c0_49, %c1_50, %c0_51] : memref<1x2x51x104xf32, #tpu.memory_space<vmem>>, vector<1x1x50x101xf32>
    %111 = vector.shape_cast %110 : vector<1x1x50x101xf32> to vector<1x50x101xf32>
    %112 = vector.broadcast %3 : f32 to vector<1x50x101xf32>
    %113 = arith.mulf %112, %111 : vector<1x50x101xf32>
    %114 = arith.addf %106, %113 : vector<1x50x101xf32>
    %115 = vector.broadcast %12 : f32 to vector<1x50x101xf32>
    %116 = arith.mulf %115, %111 : vector<1x50x101xf32>
    %117 = arith.addf %109, %116 : vector<1x50x101xf32>
    %c0_52 = arith.constant 0 : index
    %c0_53 = arith.constant 0 : index
    %c1_54 = arith.constant 1 : index
    %c1_55 = arith.constant 1 : index
    %118 = vector.load %arg2[%c0_52, %c0_53, %c1_54, %c1_55] : memref<1x2x51x104xf32, #tpu.memory_space<vmem>>, vector<1x1x50x101xf32>
    %119 = vector.shape_cast %118 : vector<1x1x50x101xf32> to vector<1x50x101xf32>
    %120 = vector.broadcast %4 : f32 to vector<1x50x101xf32>
    %121 = arith.mulf %120, %119 : vector<1x50x101xf32>
    %122 = arith.addf %114, %121 : vector<1x50x101xf32>
    %123 = vector.broadcast %13 : f32 to vector<1x50x101xf32>
    %124 = arith.mulf %123, %119 : vector<1x50x101xf32>
    %125 = arith.addf %117, %124 : vector<1x50x101xf32>
    %c0_56 = arith.constant 0 : index
    %c0_57 = arith.constant 0 : index
    %c1_58 = arith.constant 1 : index
    %c2_59 = arith.constant 2 : index
    %126 = vector.load %arg2[%c0_56, %c0_57, %c1_58, %c2_59] : memref<1x2x51x104xf32, #tpu.memory_space<vmem>>, vector<1x1x50x101xf32>
    %127 = vector.shape_cast %126 : vector<1x1x50x101xf32> to vector<1x50x101xf32>
    %128 = vector.broadcast %5 : f32 to vector<1x50x101xf32>
    %129 = arith.mulf %128, %127 : vector<1x50x101xf32>
    %130 = arith.addf %122, %129 : vector<1x50x101xf32>
    %131 = vector.broadcast %14 : f32 to vector<1x50x101xf32>
    %132 = arith.mulf %131, %127 : vector<1x50x101xf32>
    %133 = arith.addf %125, %132 : vector<1x50x101xf32>
    %c0_60 = arith.constant 0 : index
    %c1_61 = arith.constant 1 : index
    %c1_62 = arith.constant 1 : index
    %c0_63 = arith.constant 0 : index
    %134 = vector.load %arg2[%c0_60, %c1_61, %c1_62, %c0_63] : memref<1x2x51x104xf32, #tpu.memory_space<vmem>>, vector<1x1x50x101xf32>
    %135 = vector.shape_cast %134 : vector<1x1x50x101xf32> to vector<1x50x101xf32>
    %136 = vector.broadcast %6 : f32 to vector<1x50x101xf32>
    %137 = arith.mulf %136, %135 : vector<1x50x101xf32>
    %138 = arith.addf %130, %137 : vector<1x50x101xf32>
    %139 = vector.broadcast %15 : f32 to vector<1x50x101xf32>
    %140 = arith.mulf %139, %135 : vector<1x50x101xf32>
    %141 = arith.addf %133, %140 : vector<1x50x101xf32>
    %c0_64 = arith.constant 0 : index
    %c1_65 = arith.constant 1 : index
    %c1_66 = arith.constant 1 : index
    %c1_67 = arith.constant 1 : index
    %142 = vector.load %arg2[%c0_64, %c1_65, %c1_66, %c1_67] : memref<1x2x51x104xf32, #tpu.memory_space<vmem>>, vector<1x1x50x101xf32>
    %143 = vector.shape_cast %142 : vector<1x1x50x101xf32> to vector<1x50x101xf32>
    %144 = vector.broadcast %7 : f32 to vector<1x50x101xf32>
    %145 = arith.mulf %144, %143 : vector<1x50x101xf32>
    %146 = arith.addf %138, %145 : vector<1x50x101xf32>
    %147 = vector.broadcast %16 : f32 to vector<1x50x101xf32>
    %148 = arith.mulf %147, %143 : vector<1x50x101xf32>
    %149 = arith.addf %141, %148 : vector<1x50x101xf32>
    %c0_68 = arith.constant 0 : index
    %c1_69 = arith.constant 1 : index
    %c1_70 = arith.constant 1 : index
    %c2_71 = arith.constant 2 : index
    %150 = vector.load %arg2[%c0_68, %c1_69, %c1_70, %c2_71] : memref<1x2x51x104xf32, #tpu.memory_space<vmem>>, vector<1x1x50x101xf32>
    %151 = vector.shape_cast %150 : vector<1x1x50x101xf32> to vector<1x50x101xf32>
    %152 = vector.broadcast %8 : f32 to vector<1x50x101xf32>
    %153 = arith.mulf %152, %151 : vector<1x50x101xf32>
    %154 = arith.addf %146, %153 : vector<1x50x101xf32>
    %155 = vector.broadcast %17 : f32 to vector<1x50x101xf32>
    %156 = arith.mulf %155, %151 : vector<1x50x101xf32>
    %157 = arith.addf %149, %156 : vector<1x50x101xf32>
    %158 = arith.maximumf %84, %154 : vector<1x50x101xf32>
    %159 = arith.maximumf %87, %157 : vector<1x50x101xf32>
    %160 = vector.extract_strided_slice %158 {offsets = [0, 0, 0], sizes = [1, 50, 100], strides = [1, 1, 1]} : vector<1x50x101xf32> to vector<1x50x100xf32>
    %161 = vector.extract_strided_slice %158 {offsets = [0, 0, 1], sizes = [1, 50, 100], strides = [1, 1, 1]} : vector<1x50x101xf32> to vector<1x50x100xf32>
    %162 = arith.maximumf %160, %161 : vector<1x50x100xf32>
    %163 = vector.extract_strided_slice %159 {offsets = [0, 0, 0], sizes = [1, 50, 100], strides = [1, 1, 1]} : vector<1x50x101xf32> to vector<1x50x100xf32>
    %164 = vector.extract_strided_slice %159 {offsets = [0, 0, 1], sizes = [1, 50, 100], strides = [1, 1, 1]} : vector<1x50x101xf32> to vector<1x50x100xf32>
    %165 = arith.maximumf %163, %164 : vector<1x50x100xf32>
    %c0_72 = arith.constant 0 : index
    %c0_73 = arith.constant 0 : index
    %c0_74 = arith.constant 0 : index
    %c0_75 = arith.constant 0 : index
    %166 = vector.load %arg3[%c0_72, %c0_73, %c0_74, %c0_75] : memref<2x6x50x100xf32, #tpu.memory_space<vmem>>, vector<1x1x50x100xf32>
    %167 = vector.shape_cast %166 : vector<1x1x50x100xf32> to vector<50x100xf32>
    %168 = vector.shape_cast %167 : vector<50x100xf32> to vector<1x50x100xf32>
    %169 = arith.mulf %162, %168 : vector<1x50x100xf32>
    %c1_76 = arith.constant 1 : index
    %c0_77 = arith.constant 0 : index
    %c0_78 = arith.constant 0 : index
    %c0_79 = arith.constant 0 : index
    %170 = vector.load %arg3[%c1_76, %c0_77, %c0_78, %c0_79] : memref<2x6x50x100xf32, #tpu.memory_space<vmem>>, vector<1x1x50x100xf32>
    %171 = vector.shape_cast %170 : vector<1x1x50x100xf32> to vector<50x100xf32>
    %172 = vector.shape_cast %171 : vector<50x100xf32> to vector<1x50x100xf32>
    %173 = arith.mulf %165, %172 : vector<1x50x100xf32>
    %174 = arith.addf %169, %173 : vector<1x50x100xf32>
    %cst = arith.constant dense<0.000000e+00> : vector<1x50xf32>
    %175 = vector.multi_reduction <add>, %174, %cst [2] : vector<1x50x100xf32> to vector<1x50xf32>
    %176 = vector.shape_cast %175 : vector<1x50xf32> to vector<1x50x1xf32>
    %cst_80 = arith.constant dense<0.000000e+00> : vector<1x1xf32>
    %177 = vector.multi_reduction <add>, %176, %cst_80 [1] : vector<1x50x1xf32> to vector<1x1xf32>
    %178 = vector.shape_cast %177 : vector<1x1xf32> to vector<1x1x1xf32>
    %c0_81 = arith.constant 0 : index
    %c1_82 = arith.constant 1 : index
    %c0_83 = arith.constant 0 : index
    %c0_84 = arith.constant 0 : index
    %179 = vector.load %arg3[%c0_81, %c1_82, %c0_83, %c0_84] : memref<2x6x50x100xf32, #tpu.memory_space<vmem>>, vector<1x1x50x100xf32>
    %180 = vector.shape_cast %179 : vector<1x1x50x100xf32> to vector<50x100xf32>
    %181 = vector.shape_cast %180 : vector<50x100xf32> to vector<1x50x100xf32>
    %182 = arith.mulf %162, %181 : vector<1x50x100xf32>
    %c1_85 = arith.constant 1 : index
    %c1_86 = arith.constant 1 : index
    %c0_87 = arith.constant 0 : index
    %c0_88 = arith.constant 0 : index
    %183 = vector.load %arg3[%c1_85, %c1_86, %c0_87, %c0_88] : memref<2x6x50x100xf32, #tpu.memory_space<vmem>>, vector<1x1x50x100xf32>
    %184 = vector.shape_cast %183 : vector<1x1x50x100xf32> to vector<50x100xf32>
    %185 = vector.shape_cast %184 : vector<50x100xf32> to vector<1x50x100xf32>
    %186 = arith.mulf %165, %185 : vector<1x50x100xf32>
    %187 = arith.addf %182, %186 : vector<1x50x100xf32>
    %cst_89 = arith.constant dense<0.000000e+00> : vector<1x50xf32>
    %188 = vector.multi_reduction <add>, %187, %cst_89 [2] : vector<1x50x100xf32> to vector<1x50xf32>
    %189 = vector.shape_cast %188 : vector<1x50xf32> to vector<1x50x1xf32>
    %cst_90 = arith.constant dense<0.000000e+00> : vector<1x1xf32>
    %190 = vector.multi_reduction <add>, %189, %cst_90 [1] : vector<1x50x1xf32> to vector<1x1xf32>
    %191 = vector.shape_cast %190 : vector<1x1xf32> to vector<1x1x1xf32>
    %c0_91 = arith.constant 0 : index
    %c2_92 = arith.constant 2 : index
    %c0_93 = arith.constant 0 : index
    %c0_94 = arith.constant 0 : index
    %192 = vector.load %arg3[%c0_91, %c2_92, %c0_93, %c0_94] : memref<2x6x50x100xf32, #tpu.memory_space<vmem>>, vector<1x1x50x100xf32>
    %193 = vector.shape_cast %192 : vector<1x1x50x100xf32> to vector<50x100xf32>
    %194 = vector.shape_cast %193 : vector<50x100xf32> to vector<1x50x100xf32>
    %195 = arith.mulf %162, %194 : vector<1x50x100xf32>
    %c1_95 = arith.constant 1 : index
    %c2_96 = arith.constant 2 : index
    %c0_97 = arith.constant 0 : index
    %c0_98 = arith.constant 0 : index
    %196 = vector.load %arg3[%c1_95, %c2_96, %c0_97, %c0_98] : memref<2x6x50x100xf32, #tpu.memory_space<vmem>>, vector<1x1x50x100xf32>
    %197 = vector.shape_cast %196 : vector<1x1x50x100xf32> to vector<50x100xf32>
    %198 = vector.shape_cast %197 : vector<50x100xf32> to vector<1x50x100xf32>
    %199 = arith.mulf %165, %198 : vector<1x50x100xf32>
    %200 = arith.addf %195, %199 : vector<1x50x100xf32>
    %cst_99 = arith.constant dense<0.000000e+00> : vector<1x50xf32>
    %201 = vector.multi_reduction <add>, %200, %cst_99 [2] : vector<1x50x100xf32> to vector<1x50xf32>
    %202 = vector.shape_cast %201 : vector<1x50xf32> to vector<1x50x1xf32>
    %cst_100 = arith.constant dense<0.000000e+00> : vector<1x1xf32>
    %203 = vector.multi_reduction <add>, %202, %cst_100 [1] : vector<1x50x1xf32> to vector<1x1xf32>
    %204 = vector.shape_cast %203 : vector<1x1xf32> to vector<1x1x1xf32>
    %c0_101 = arith.constant 0 : index
    %c3_102 = arith.constant 3 : index
    %c0_103 = arith.constant 0 : index
    %c0_104 = arith.constant 0 : index
    %205 = vector.load %arg3[%c0_101, %c3_102, %c0_103, %c0_104] : memref<2x6x50x100xf32, #tpu.memory_space<vmem>>, vector<1x1x50x100xf32>
    %206 = vector.shape_cast %205 : vector<1x1x50x100xf32> to vector<50x100xf32>
    %207 = vector.shape_cast %206 : vector<50x100xf32> to vector<1x50x100xf32>
    %208 = arith.mulf %162, %207 : vector<1x50x100xf32>
    %c1_105 = arith.constant 1 : index
    %c3_106 = arith.constant 3 : index
    %c0_107 = arith.constant 0 : index
    %c0_108 = arith.constant 0 : index
    %209 = vector.load %arg3[%c1_105, %c3_106, %c0_107, %c0_108] : memref<2x6x50x100xf32, #tpu.memory_space<vmem>>, vector<1x1x50x100xf32>
    %210 = vector.shape_cast %209 : vector<1x1x50x100xf32> to vector<50x100xf32>
    %211 = vector.shape_cast %210 : vector<50x100xf32> to vector<1x50x100xf32>
    %212 = arith.mulf %165, %211 : vector<1x50x100xf32>
    %213 = arith.addf %208, %212 : vector<1x50x100xf32>
    %cst_109 = arith.constant dense<0.000000e+00> : vector<1x50xf32>
    %214 = vector.multi_reduction <add>, %213, %cst_109 [2] : vector<1x50x100xf32> to vector<1x50xf32>
    %215 = vector.shape_cast %214 : vector<1x50xf32> to vector<1x50x1xf32>
    %cst_110 = arith.constant dense<0.000000e+00> : vector<1x1xf32>
    %216 = vector.multi_reduction <add>, %215, %cst_110 [1] : vector<1x50x1xf32> to vector<1x1xf32>
    %217 = vector.shape_cast %216 : vector<1x1xf32> to vector<1x1x1xf32>
    %c0_111 = arith.constant 0 : index
    %c4_112 = arith.constant 4 : index
    %c0_113 = arith.constant 0 : index
    %c0_114 = arith.constant 0 : index
    %218 = vector.load %arg3[%c0_111, %c4_112, %c0_113, %c0_114] : memref<2x6x50x100xf32, #tpu.memory_space<vmem>>, vector<1x1x50x100xf32>
    %219 = vector.shape_cast %218 : vector<1x1x50x100xf32> to vector<50x100xf32>
    %220 = vector.shape_cast %219 : vector<50x100xf32> to vector<1x50x100xf32>
    %221 = arith.mulf %162, %220 : vector<1x50x100xf32>
    %c1_115 = arith.constant 1 : index
    %c4_116 = arith.constant 4 : index
    %c0_117 = arith.constant 0 : index
    %c0_118 = arith.constant 0 : index
    %222 = vector.load %arg3[%c1_115, %c4_116, %c0_117, %c0_118] : memref<2x6x50x100xf32, #tpu.memory_space<vmem>>, vector<1x1x50x100xf32>
    %223 = vector.shape_cast %222 : vector<1x1x50x100xf32> to vector<50x100xf32>
    %224 = vector.shape_cast %223 : vector<50x100xf32> to vector<1x50x100xf32>
    %225 = arith.mulf %165, %224 : vector<1x50x100xf32>
    %226 = arith.addf %221, %225 : vector<1x50x100xf32>
    %cst_119 = arith.constant dense<0.000000e+00> : vector<1x50xf32>
    %227 = vector.multi_reduction <add>, %226, %cst_119 [2] : vector<1x50x100xf32> to vector<1x50xf32>
    %228 = vector.shape_cast %227 : vector<1x50xf32> to vector<1x50x1xf32>
    %cst_120 = arith.constant dense<0.000000e+00> : vector<1x1xf32>
    %229 = vector.multi_reduction <add>, %228, %cst_120 [1] : vector<1x50x1xf32> to vector<1x1xf32>
    %230 = vector.shape_cast %229 : vector<1x1xf32> to vector<1x1x1xf32>
    %c0_121 = arith.constant 0 : index
    %c5_122 = arith.constant 5 : index
    %c0_123 = arith.constant 0 : index
    %c0_124 = arith.constant 0 : index
    %231 = vector.load %arg3[%c0_121, %c5_122, %c0_123, %c0_124] : memref<2x6x50x100xf32, #tpu.memory_space<vmem>>, vector<1x1x50x100xf32>
    %232 = vector.shape_cast %231 : vector<1x1x50x100xf32> to vector<50x100xf32>
    %233 = vector.shape_cast %232 : vector<50x100xf32> to vector<1x50x100xf32>
    %234 = arith.mulf %162, %233 : vector<1x50x100xf32>
    %c1_125 = arith.constant 1 : index
    %c5_126 = arith.constant 5 : index
    %c0_127 = arith.constant 0 : index
    %c0_128 = arith.constant 0 : index
    %235 = vector.load %arg3[%c1_125, %c5_126, %c0_127, %c0_128] : memref<2x6x50x100xf32, #tpu.memory_space<vmem>>, vector<1x1x50x100xf32>
    %236 = vector.shape_cast %235 : vector<1x1x50x100xf32> to vector<50x100xf32>
    %237 = vector.shape_cast %236 : vector<50x100xf32> to vector<1x50x100xf32>
    %238 = arith.mulf %165, %237 : vector<1x50x100xf32>
    %239 = arith.addf %234, %238 : vector<1x50x100xf32>
    %cst_129 = arith.constant dense<0.000000e+00> : vector<1x50xf32>
    %240 = vector.multi_reduction <add>, %239, %cst_129 [2] : vector<1x50x100xf32> to vector<1x50xf32>
    %241 = vector.shape_cast %240 : vector<1x50xf32> to vector<1x50x1xf32>
    %cst_130 = arith.constant dense<0.000000e+00> : vector<1x1xf32>
    %242 = vector.multi_reduction <add>, %241, %cst_130 [1] : vector<1x50x1xf32> to vector<1x1xf32>
    %243 = vector.shape_cast %242 : vector<1x1xf32> to vector<1x1x1xf32>
    %244 = tpu.concatenate %178, %191, %204, %217, %230, %243 in 2 : vector<1x1x1xf32>, vector<1x1x1xf32>, vector<1x1x1xf32>, vector<1x1x1xf32>, vector<1x1x1xf32>, vector<1x1x1xf32> -> vector<1x1x6xf32>
    %c0_131 = arith.constant 0 : index
    %c0_132 = arith.constant 0 : index
    %c0_133 = arith.constant 0 : index
    %245 = vector.load %arg4[%c0_131, %c0_132, %c0_133] : memref<1x1x6xf32, #tpu.memory_space<vmem>>, vector<1x1x6xf32>
    %246 = arith.addf %244, %245 : vector<1x1x6xf32>
    %c0_134 = arith.constant 0 : index
    %c0_135 = arith.constant 0 : index
    %c0_136 = arith.constant 0 : index
    %247 = vector.load %arg5[%c0_134, %c0_135, %c0_136] : memref<1x1x6xf32, #tpu.memory_space<vmem>>, vector<1x1x6xf32>
    tpu.vector_store %arg5[%c0_134, %c0_135, %c0_136], %246 {strides = array<i32>} : memref<1x1x6xf32, #tpu.memory_space<vmem>>, vector<1x1x6xf32>,
    return
  }
  func.func @transform_0(%arg0: i32) -> i32 {
    %c0_i32 = arith.constant 0 : i32
    %c0_i32_0 = arith.constant 0 : i32
    return %c0_i32 : i32
  }
  func.func @transform_1(%arg0: i32) -> (i32, i32, i32, i32) {
    %c0_i32 = arith.constant 0 : i32
    %c0_i32_0 = arith.constant 0 : i32
    %c0_i32_1 = arith.constant 0 : i32
    %c0_i32_2 = arith.constant 0 : i32
    return %arg0, %c0_i32, %c0_i32_0, %c0_i32_1 : i32, i32, i32, i32
  }
  func.func @transform_2(%arg0: i32) -> (i32, i32, i32, i32) {
    %c0_i32 = arith.constant 0 : i32
    %c0_i32_0 = arith.constant 0 : i32
    %c0_i32_1 = arith.constant 0 : i32
    %c0_i32_2 = arith.constant 0 : i32
    %c0_i32_3 = arith.constant 0 : i32
    return %c0_i32, %c0_i32_0, %c0_i32_1, %c0_i32_2 : i32, i32, i32, i32
  }
  func.func @transform_3(%arg0: i32) -> (i32, i32, i32) {
    %c0_i32 = arith.constant 0 : i32
    %c0_i32_0 = arith.constant 0 : i32
    %c0_i32_1 = arith.constant 0 : i32
    %c0_i32_2 = arith.constant 0 : i32
    return %c0_i32, %c0_i32_0, %c0_i32_1 : i32, i32, i32
  }
  func.func @transform_4(%arg0: i32) -> (i32, i32, i32) {
    %c0_i32 = arith.constant 0 : i32
    %c0_i32_0 = arith.constant 0 : i32
    %c0_i32_1 = arith.constant 0 : i32
    return %arg0, %c0_i32, %c0_i32_0 : i32, i32, i32
  }
}

</mosaic_0001>

<bundles_post_ra>
// kernel: billy_forward.1
= control target key start
LH: loop header
LB: loop body
LE: loop exit
PB: predicated region body
PF: predicated region fallthrough
CT: control target
= control target key end

     0   :  { %9 = vsyncpa [#allocation4], 0  ;;  %s4266_s0 = inlined_call_operand.vmem [shape: f32[18], index: 0, kind: input, shape index: {}]   ;;  %s4267_s1 = inlined_call_operand.vmem [shape: f32[2,2,51,104], index: 1, kind: input, shape index: {}]   ;;  %s4268_s2 = inlined_call_operand.vmem [shape: f32[2,6,50,100], index: 2, kind: input, shape index: {}]   ;;  %s4269_s3 = inlined_call_operand.vmem [shape: f32[1,1,6], index: 3, kind: input, shape index: {}]   ;;  %s4270_s4 = inlined_call_operand.hbm [shape: f32[2,1,6], index: 4, kind: output, shape index: {}]  }
   0x1   :  { %10 = vsyncpa [#allocation3], 0 }
   0x2   :  { %12 = vsyncpa [#allocation3 + $0x1], 0  ;;  %s2330_s15 = smov 0   ;;  %s2332_s16 = smov 0  }
   0x3   :  { %s2334_s17 = smov 0   ;;  %s2336_s18 = smov 0  }
   0x4 LB: > { %s2351_s19 = sadd.s32 4294967295, %s2299_s18   ;;  %s2028_s20 = sadd.s32 4294967294, %s2299_s18   ;;  %s2299_s18 = sphi %s2336_s18, %s4562_s18   ;;  %s2295_s17 = sphi %s2334_s17, %s4561_s17   ;;  %s2291_s16 = sphi %s2332_s16, %s4560_s16   ;;  %s2287_s15 = sphi %s2330_s15, %s4559_s15  }
   0x5   : > { %s2355_s21 = sadd.s32 1, %s2299_s18   ;;  %s114_s22 = sadd.s32 1, %s2295_s17 }
   0x6   : > { %s111_s23 = ssub.s32 %s2299_s18, %s2355_s21  ;;  %p124_p0 = scmp.ne.s32.totalorder %s2295_s17, %s2291_s16 }
   0x7   : > { %p112_p1 = scmp.eq.s32.totalorder %s111_s23, 0  ;;  %p125_p2 = scmp.eq.s32.totalorder %s2351_s19, 1 }
   0x8   : > { %p130_p3 = scmp.ne.s32.totalorder %s2291_s16, %s2287_s15  ;;  %p131_p4 = scmp.eq.s32.totalorder %s2028_s20, 1 }
   0x9   : > { %s2366_s24 = scalar_select %p112_p1, %s2295_s17, %s114_s22  }
   0xa   : > { %p2368_p5 = por %p125_p2, %p124_p0  ;;  %p2372_p6 = por %p131_p4, %p130_p3 }
   0xb   : > { %p2029_p7 = scmp.ge.s32.totalorder %s2299_s18, 1  ;;  %p138_p8 = scmp.lt.s32.totalorder %s2299_s18, 3 }
   0xc   : > { %p2161_p9 = scmp.eq.s32.totalorder %s2351_s19, 0  ;;  %s151_s30 = sshll.u32 %s4266_s0, 4  ;;  %s152_s30 = int_to_ptr.vmem [resolvable:$true] %s151_s30 }
   0xd   : > { %p2379_p10 = pnand %p2029_p7, %p138_p8  ;;  %s2218_s5 = scalar_lea.vmem %s152_s30, 16 }
   0xe   : > { %p2219_p13 = scmp.ne.s32.totalorder %s152_s30, %s2218_s5  ;;  %p2226_p3 = scmp.lt.s32.totalorder %s152_s30, %s152_s30 }
   0xf   : > { %p2153_p11 = pneg %p2379_p10  ;;  %p2227_p4 = scmp.lt.s32.totalorder %s2218_s5, %s2218_s5 }
  0x11   : > { %p2154_p12 = pnand %p2161_p9, %p2153_p11  ;;  %p2228_p7 = por %p2227_p4, %p2226_p3 }
  0x13   : > { %p2220_p0 = pneg %p2154_p12 }
  0x15   : > { %p2221_p1 = pnand %p2220_p0, %p2219_p13 }
  0x17   : > { %p2222_p2 = pneg %p2221_p1 }
  0x19   : > { %p2229_p8 = pnand %p2228_p7, %p2222_p2 }
  0x1b   : > { %2232 = shalt.err (!%p2229_p8)
}
  0x1c   : > { %s2301_s6 = smov [#allocation2]   ;;  %178 = sbr.rel (%p2379_p10) target bundleno = 832 (0x340), region = 36 }
  0x1d   : > { %2156 = dma.vmem_to_smem (!%p2154_p12), %s152_s30, 16, %s2301_s6, [#allocation4]  }
  0x23   : > { %2278 = dma.done.wait (%p2161_p9), [#allocation4], 16  }
  0x24   : > { %2280 = vsyncadd (%p2161_p9), [#allocation4], 4294967280 }
  0x25   : > { %184 = sfence }
  0x26   : > { %p204_p11 = scmp.lt.s32.totalorder %s2351_s19, 1  ;;  %s2035_s7 = sld [smem:[#allocation2 + $0x1]]  ;;  %vm1542_vm0 = vcmask 818176   ;;  %vm1561_vm1 = vcmask 812032   ;;  %vm1570_vm2 = vcmask 1041408   ;;  %vm1934_vm3 = vcmask 7168  }
  0x27   : > { %s2044_s13 = sld [smem:[#allocation2 + $0xa]]  ;;  %s2302_s14 = smov 127   ;;  %vm1936_vm4 = vcmask 15360   ;;  %vm1938_vm5 = vcmask 23552   ;;  %vm1940_vm6 = vcmask 31744   ;;  %vm1942_vm7 = vcmask 39936  }
  0x28   : > { %s205_s8 = scalar_select %p204_p11, %s2351_s19, 1  ;;  %vm1946_vm8 = vcmask 40960  }
  0x29   : > { %s2036_s20 = sld [smem:[#allocation2 + $0x2]]  ;;  %s2045_s22 = sld [smem:[#allocation2 + $0xb]] }
  0x2a   : > { %s2146_s9 = smul.u32 112, %s205_s8  ;;  %s2303_s23 = smov 126  }
  0x2b   : > { %s2038_s27 = sld [smem:[#allocation2 + $0x4]]  ;;  %s2047_s28 = sld [smem:[#allocation2 + $0xd]] }
  0x2c   : > { %s2401_s12 = scalar_lea.vmem %s4267_s1, %s2146_s9  ;;  %v2403_v0 = vstv %s2035_s7  ;;  %s2039_s29 = sld [smem:[#allocation2 + $0x5]] }
  0x2d   : > { %v229_v1 = vld [vmem:[%s2401_s12 + $0x10] sm:$0xff]  ;;  %v227_v2 = vld [vmem:[%s2401_s12] sm:$0xff]  ;;  %v2408_v3 = vld [vmem:[%s2401_s12 + $0x18] sm:$0xff]  ;;  %v2424_v13 = vstv %s2044_s13  ;;  %s2048_s30 = sld [smem:[#allocation2 + $0xe]]  ;;  %s2041_s5 = sld [smem:[#allocation2 + $0x7]] }
  0x2e   : > { %v253_v4 = vmul.f32 %v2403_v0, %v229_v1  ;;  %v251_v5 = vmul.f32 %v2403_v0, %v227_v2  ;;  %v228_v6 = vld [vmem:[%s2401_s12 + $0x8] sm:$0xff]  ;;  %v254_v7 = vmul.f32 %v2403_v0, %v2408_v3  ;;  %v231_v10 = vld [vmem:[%s2401_s12 + $0x20] sm:$0xff]  ;;  %v2427_v14 = vld [vmem:[%s2401_s12 + $0x30] sm:$0x3]  ;;  %v294_v15 = vmul.f32 %v2424_v13, %v227_v2  ;;  %s2050_s6 = sld [smem:[#allocation2 + $0x10]]  ;;  %s2051_s8 = sld [smem:[#allocation2 + $0x11]] }
  0x2f   : > { %v252_v8 = vmul.f32 %v2403_v0, %v228_v6  ;;  %v232_v9 = vld [vmem:[%s2401_s12 + $0x28] sm:$0xff]  ;;  %v255_v12 = vmul.f32 %v2403_v0, %v231_v10  ;;  %v257_v16 = vmul.f32 %v2403_v0, %v2427_v14  ;;  %v296_v17 = vmul.f32 %v2424_v13, %v229_v1  ;;  %v2485_v39 = vld [vmem:[%s2401_s12 + $0x40] sm:$0xff]  ;;  %v2490_v41 = vld [vmem:[%s2401_s12 + $0x38] sm:$0xff]  ;;  %s2042_s7 = sld [smem:[#allocation2 + $0x8]]  ;;  %s2043_s10 = sld [smem:[#allocation2 + $0x9]] }
  0x30   : > { %269 = vrot.lane.b32.xlu1 %v253_v4, %s2302_s14  ;;  %265 = vrot.lane.b32.xlu0 %v251_v5, %s2302_s14  ;;  %v256_v11 = vmul.f32 %v2403_v0, %v232_v9  ;;  %v295_v18 = vmul.f32 %v2424_v13, %v228_v6  ;;  %v298_v19 = vmul.f32 %v2424_v13, %v231_v10  ;;  %v2448_v23 = vstv %s2036_s20  ;;  %v2499_v44 = vld [vmem:[%s2401_s12 + $0x50] sm:$0xff]  ;;  %s209_s9 = sld [smem:[#allocation2]]  ;;  %s2037_s11 = sld [smem:[#allocation2 + $0x3]] }
  0x31   : > { %v297_v20 = vmul.f32 %v2424_v13, %v2408_v3  ;;  %v300_v21 = vmul.f32 %v2424_v13, %v2427_v14  ;;  %v299_v22 = vmul.f32 %v2424_v13, %v232_v9  ;;  %v338_v24 = vmul.f32 %v2448_v23, %v228_v6  ;;  %v2502_v45 = vld [vmem:[%s2401_s12 + $0x48] sm:$0xff]  ;;  %v2511_v48 = vld [vmem:[%s2401_s12 + $0x60] sm:$0xff]  ;;  %v2514_v49 = vld [vmem:[%s2401_s12 + $0x58] sm:$0xff]  ;;  %s2046_s13 = sld [smem:[#allocation2 + $0xc]]  ;;  %s3235_s20 = sld [smem:[#allocation2 + $0x6]] }
  0x32   : > { %v337_v25 = vmul.f32 %v2448_v23, %v227_v2  ;;  %v340_v26 = vmul.f32 %v2448_v23, %v2408_v3  ;;  %v339_v27 = vmul.f32 %v2448_v23, %v229_v1  ;;  %v342_v28 = vmul.f32 %v2448_v23, %v232_v9  ;;  %v2525_v53 = vld [vmem:[%s2401_s12 + $0x68] sm:$0x3] }
  0x33   : > { %v341_v29 = vmul.f32 %v2448_v23, %v231_v10  ;;  %v2463_v30 = vstv %s2045_s22  ;;  %v343_v32 = vmul.f32 %v2448_v23, %v2427_v14  ;;  %v2487_v40 = vstv %s2038_s27  ;;  %s3237_s22 = sld [smem:[#allocation2 + $0xf]] }
  0x34   : > { %271 = vrot.lane.b32.xlu1 %v254_v7, %s2302_s14  ;;  %267 = vrot.lane.b32.xlu0 %v252_v8, %s2302_s14  ;;  %v380_v31 = vmul.f32 %v2463_v30, %v227_v2  ;;  %v382_v33 = vmul.f32 %v2463_v30, %v229_v1  ;;  %v381_v34 = vmul.f32 %v2463_v30, %v228_v6  ;;  %v2522_v52 = vstv %s2047_s28 }
  0x35   : > { %v384_v35 = vmul.f32 %v2463_v30, %v231_v10  ;;  %v383_v36 = vmul.f32 %v2463_v30, %v2408_v3  ;;  %v386_v37 = vmul.f32 %v2463_v30, %v2427_v14  ;;  %v385_v38 = vmul.f32 %v2463_v30, %v232_v9 }
  0x36   : > { %v462_v42 = vmul.f32 %v2485_v39, %v2487_v40  ;;  %v461_v43 = vmul.f32 %v2490_v41, %v2487_v40  ;;  %v464_v46 = vmul.f32 %v2499_v44, %v2487_v40  ;;  %v463_v47 = vmul.f32 %v2502_v45, %v2487_v40 }
  0x37   : > { %v466_v50 = vmul.f32 %v2511_v48, %v2487_v40  ;;  %v465_v51 = vmul.f32 %v2514_v49, %v2487_v40  ;;  %v504_v54 = vmul.f32 %v2490_v41, %v2522_v52  ;;  %v467_v55 = vmul.f32 %v2525_v53, %v2487_v40 }
  0x38   : > { %275 = vrot.lane.b32.xlu1 %v256_v11, %s2302_s14  ;;  %273 = vrot.lane.b32.xlu0 %v255_v12, %s2302_s14  ;;  %v506_v56 = vmul.f32 %v2502_v45, %v2522_v52  ;;  %v505_v57 = vmul.f32 %v2485_v39, %v2522_v52  ;;  %v508_v58 = vmul.f32 %v2514_v49, %v2522_v52  ;;  %v2551_v62 = vstv %s2039_s29 }
  0x39   : > { %v507_v59 = vmul.f32 %v2499_v44, %v2522_v52  ;;  %v510_v60 = vmul.f32 %v2525_v53, %v2522_v52  ;;  %v509_v61 = vmul.f32 %v2511_v48, %v2522_v52  ;;  %v548_v63 = vmul.f32 %v2485_v39, %v2551_v62 }
  0x3a   : > { %v547_v1 = vmul.f32 %v2490_v41, %v2551_v62  ;;  %v550_v2 = vmul.f32 %v2499_v44, %v2551_v62  ;;  %v549_v3 = vmul.f32 %v2502_v45, %v2551_v62  ;;  %v552_v4 = vmul.f32 %v2511_v48, %v2551_v62 }
  0x3b   : > { %v551_v5 = vmul.f32 %v2514_v49, %v2551_v62  ;;  %v2571_v6 = vstv %s2048_s30  ;;  %v553_v8 = vmul.f32 %v2525_v53, %v2551_v62 }
  0x3c   : > { %308 = vrot.lane.b32.xlu1 %v294_v15, %s2302_s14  ;;  %277 = vrot.lane.b32.xlu0 %v257_v16, %s2302_s14  ;;  %v590_v7 = vmul.f32 %v2490_v41, %v2571_v6  ;;  %v592_v9 = vmul.f32 %v2502_v45, %v2571_v6  ;;  %v591_v10 = vmul.f32 %v2485_v39, %v2571_v6 }
  0x3d   : > { %v594_v11 = vmul.f32 %v2514_v49, %v2571_v6  ;;  %v593_v12 = vmul.f32 %v2499_v44, %v2571_v6  ;;  %v596_v15 = vmul.f32 %v2525_v53, %v2571_v6  ;;  %v595_v16 = vmul.f32 %v2511_v48, %v2571_v6 }
  0x40   : > { %312 = vrot.lane.b32.xlu1 %v296_v17, %s2302_s14  ;;  %310 = vrot.lane.b32.xlu0 %v295_v18, %s2302_s14  ;;  %v2598_v17 = vld [vmem:[%s2401_s12 + $0x9] sm:$0xff]  ;;  %v2600_v18 = vstv %s2041_s5 }
  0x44   : > { %316 = vrot.lane.b32.xlu1 %v298_v19, %s2302_s14  ;;  %314 = vrot.lane.b32.xlu0 %v297_v20, %s2302_s14  ;;  %v2603_v19 = vld [vmem:[%s2401_s12 + $0x1] sm:$0xff]  ;;  %v671_v20 = vmul.f32 %v2600_v18, %v2598_v17 }
  0x48   : > { %320 = vrot.lane.b32.xlu1 %v300_v21, %s2302_s14  ;;  %318 = vrot.lane.b32.xlu0 %v299_v22, %s2302_s14  ;;  %v670_v21 = vmul.f32 %v2600_v18, %v2603_v19  ;;  %v2612_v22 = vld [vmem:[%s2401_s12 + $0x19] sm:$0xff] }
  0x4c   : > { %353 = vrot.lane.b32.xlu1 %v338_v24, %s2303_s23  ;;  %351 = vrot.lane.b32.xlu0 %v337_v25, %s2303_s23  ;;  %v2615_v24 = vld [vmem:[%s2401_s12 + $0x11] sm:$0xff]  ;;  %v673_v25 = vmul.f32 %v2600_v18, %v2612_v22 }
  0x50   : > { %357 = vrot.lane.b32.xlu1 %v340_v26, %s2303_s23  ;;  %355 = vrot.lane.b32.xlu0 %v339_v27, %s2303_s23  ;;  %v672_v26 = vmul.f32 %v2600_v18, %v2615_v24  ;;  %v2624_v27 = vld [vmem:[%s2401_s12 + $0x29] sm:$0xff] }
  0x54   : > { %361 = vrot.lane.b32.xlu1 %v342_v28, %s2303_s23  ;;  %359 = vrot.lane.b32.xlu0 %v341_v29, %s2303_s23  ;;  %v2627_v28 = vld [vmem:[%s2401_s12 + $0x21] sm:$0xff] }
  0x58   : > { %394 = vrot.lane.b32.xlu1 %v380_v31, %s2303_s23  ;;  %363 = vrot.lane.b32.xlu0 %v343_v32, %s2303_s23  ;;  %v675_v32 = vmul.f32 %v2600_v18, %v2624_v27 }
  0x5c   : > { %398 = vrot.lane.b32.xlu1 %v382_v33, %s2303_s23  ;;  %396 = vrot.lane.b32.xlu0 %v381_v34, %s2303_s23  ;;  %v674_v33 = vmul.f32 %v2600_v18, %v2627_v28  ;;  %v2639_v34 = vstv %s2050_s6 }
  0x60   : > { %402 = vrot.lane.b32.xlu1 %v384_v35, %s2303_s23  ;;  %400 = vrot.lane.b32.xlu0 %v383_v36, %s2303_s23  ;;  %v2642_v35 = vld [vmem:[%s2401_s12 + $0x31] sm:$0x3] }
  0x64   : > { %406 = vrot.lane.b32.xlu1 %v386_v37, %s2303_s23  ;;  %404 = vrot.lane.b32.xlu0 %v385_v38, %s2303_s23  ;;  %v713_v38 = vmul.f32 %v2639_v34, %v2603_v19 }
  0x68   : > { %477 = vrot.lane.b32.xlu1 %v462_v42, %s2302_s14  ;;  %475 = vrot.lane.b32.xlu0 %v461_v43, %s2302_s14  ;;  %v676_v42 = vmul.f32 %v2600_v18, %v2642_v35 }
  0x6c   : > { %481 = vrot.lane.b32.xlu1 %v464_v46, %s2302_s14  ;;  %479 = vrot.lane.b32.xlu0 %v463_v47, %s2302_s14  ;;  %v715_v47 = vmul.f32 %v2639_v34, %v2615_v24 }
  0x70   : > { %485 = vrot.lane.b32.xlu1 %v466_v50, %s2302_s14  ;;  %483 = vrot.lane.b32.xlu0 %v465_v51, %s2302_s14  ;;  %v714_v50 = vmul.f32 %v2639_v34, %v2598_v17 }
  0x74   : > { %518 = vrot.lane.b32.xlu1 %v504_v54, %s2302_s14  ;;  %487 = vrot.lane.b32.xlu0 %v467_v55, %s2302_s14  ;;  %v717_v55 = vmul.f32 %v2639_v34, %v2627_v28 }
  0x78   : > { %522 = vrot.lane.b32.xlu1 %v506_v56, %s2302_s14  ;;  %520 = vrot.lane.b32.xlu0 %v505_v57, %s2302_s14  ;;  %v716_v56 = vmul.f32 %v2639_v34, %v2612_v22 }
  0x7c   : > { %526 = vrot.lane.b32.xlu1 %v508_v58, %s2302_s14  ;;  %524 = vrot.lane.b32.xlu0 %v507_v59, %s2302_s14  ;;  %v719_v59 = vmul.f32 %v2639_v34, %v2642_v35 }
  0x80   : > { %530 = vrot.lane.b32.xlu1 %v510_v60, %s2302_s14  ;;  %528 = vrot.lane.b32.xlu0 %v509_v61, %s2302_s14  ;;  %v718_v60 = vmul.f32 %v2639_v34, %v2624_v27  ;;  %v2684_v61 = vstv %s2042_s7 }
  0x84   : > { %563 = vrot.lane.b32.xlu1 %v548_v63, %s2303_s23  ;;  %561 = vrot.lane.b32.xlu0 %v547_v1, %s2303_s23 }
  0x88   : > { %567 = vrot.lane.b32.xlu1 %v550_v2, %s2303_s23  ;;  %565 = vrot.lane.b32.xlu0 %v549_v3, %s2303_s23  ;;  %v757_v2 = vmul.f32 %v2684_v61, %v2598_v17  ;;  %v756_v3 = vmul.f32 %v2684_v61, %v2603_v19 }
  0x8c   : > { %571 = vrot.lane.b32.xlu1 %v552_v4, %s2303_s23  ;;  %569 = vrot.lane.b32.xlu0 %v551_v5, %s2303_s23 }
  0x90   : > { %604 = vrot.lane.b32.xlu1 %v590_v7, %s2303_s23  ;;  %573 = vrot.lane.b32.xlu0 %v553_v8, %s2303_s23  ;;  %v759_v7 = vmul.f32 %v2684_v61, %v2612_v22  ;;  %v758_v8 = vmul.f32 %v2684_v61, %v2615_v24 }
  0x94   : > { %608 = vrot.lane.b32.xlu1 %v592_v9, %s2303_s23  ;;  %606 = vrot.lane.b32.xlu0 %v591_v10, %s2303_s23 }
  0x98   : > { %612 = vrot.lane.b32.xlu1 %v594_v11, %s2303_s23  ;;  %610 = vrot.lane.b32.xlu0 %v593_v12, %s2303_s23  ;;  %v761_v11 = vmul.f32 %v2684_v61, %v2624_v27  ;;  %v760_v12 = vmul.f32 %v2684_v61, %v2627_v28 }
  0x9c   : > { %616 = vrot.lane.b32.xlu1 %v596_v15, %s2303_s23  ;;  %614 = vrot.lane.b32.xlu0 %v595_v16, %s2303_s23  ;;  %v2716_v15 = vstv %s2051_s8 }
  0xa0   : > { %686 = vrot.lane.b32.xlu1 %v671_v20, %s2302_s14  ;;  %684 = vrot.lane.b32.xlu0 %v670_v21, %s2302_s14  ;;  %v799_v21 = vmul.f32 %v2716_v15, %v2603_v19 }
  0xa2   : > { %v2629_v29 = vpop.permute.xlu1 %269  ;;  %v2631_v31 = vpop.permute.xlu0 %265 }
  0xa4   : > { %690 = vrot.lane.b32.xlu1 %v673_v25, %s2302_s14  ;;  %688 = vrot.lane.b32.xlu0 %v672_v26, %s2302_s14  ;;  %v762_v25 = vmul.f32 %v2684_v61, %v2642_v35 }
  0xa6   : > { %v2644_v36 = vpop.permute.xlu1 %271  ;;  %v2646_v37 = vpop.permute.xlu0 %267 }
  0xa8   : > { %694 = vrot.lane.b32.xlu1 %v675_v32, %s2302_s14  ;;  %692 = vrot.lane.b32.xlu0 %v674_v33, %s2302_s14  ;;  %v801_v33 = vmul.f32 %v2716_v15, %v2615_v24 }
  0xaa   : > { %v2654_v43 = vpop.permute.xlu1 %275  ;;  %v2656_v46 = vpop.permute.xlu0 %273 }
  0xac   : > { %727 = vrot.lane.b32.xlu1 %v713_v38, %s2302_s14  ;;  %696 = vrot.lane.b32.xlu0 %v676_v42, %s2302_s14  ;;  %v800_v38 = vmul.f32 %v2716_v15, %v2598_v17 }
  0xae   : > { %v2664_v51 = vpop.permute.xlu1 %308  ;;  %v2666_v54 = vpop.permute.xlu0 %277 }
  0xb0   : > { %731 = vrot.lane.b32.xlu1 %v715_v47, %s2302_s14  ;;  %729 = vrot.lane.b32.xlu0 %v714_v50, %s2302_s14  ;;  %v803_v50 = vmul.f32 %v2716_v15, %v2627_v28 }
  0xb2   : > { %v2674_v57 = vpop.permute.xlu1 %312  ;;  %v2676_v58 = vpop.permute.xlu0 %310 }
  0xb4   : > { %735 = vrot.lane.b32.xlu1 %v717_v55, %s2302_s14  ;;  %733 = vrot.lane.b32.xlu0 %v716_v56, %s2302_s14  ;;  %v802_v55 = vmul.f32 %v2716_v15, %v2612_v22 }
  0xb6   : > { %v2686_v63 = vpop.permute.xlu1 %316  ;;  %v2688_v1 = vpop.permute.xlu0 %314 }
  0xb8   : > { %739 = vrot.lane.b32.xlu1 %v719_v59, %s2302_s14  ;;  %737 = vrot.lane.b32.xlu0 %v718_v60, %s2302_s14  ;;  %v805_v60 = vmul.f32 %v2716_v15, %v2642_v35 }
  0xba   : > { %v2696_v4 = vpop.permute.xlu1 %320  ;;  %v2698_v5 = vpop.permute.xlu0 %318 }
  0xbb   : > { %4289 = vst [vmem:[#allocation8_spill] sm:$0xff] %v2696_v4  ;;  %4290 = vst [vmem:[#allocation9_spill] sm:$0xff] %v2698_v5 }
  0xbc   : > { %772 = vrot.lane.b32.xlu1 %v757_v2, %s2303_s23  ;;  %770 = vrot.lane.b32.xlu0 %v756_v3, %s2303_s23  ;;  %v804_v2 = vmul.f32 %v2716_v15, %v2624_v27 }
  0xbe   : > { %v2706_v9 = vpop.permute.xlu1 %353  ;;  %v2708_v10 = vpop.permute.xlu0 %351 }
  0xc0   : > { %776 = vrot.lane.b32.xlu1 %v759_v7, %s2303_s23  ;;  %774 = vrot.lane.b32.xlu0 %v758_v8, %s2303_s23  ;;  %v856_v8 = vmul.f32 %v2485_v39, %v2403_v0 }
  0xc2   : > { %v2718_v16 = vpop.permute.xlu1 %357  ;;  %v2720_v20 = vpop.permute.xlu0 %355 }
  0xc3   : > { %4291 = vst [vmem:[#allocation10_spill] sm:$0xff] %v2718_v16  ;;  %4292 = vst [vmem:[#allocation11_spill] sm:$0xff] %v2720_v20  ;;  %v2205_v16 = vld [vmem:[%s2401_s12 + $0x30] sm:$0x3] }
  0xc4   : > { %780 = vrot.lane.b32.xlu1 %v761_v11, %s2303_s23  ;;  %778 = vrot.lane.b32.xlu0 %v760_v12, %s2303_s23  ;;  %v855_v11 = vmul.f32 %v2490_v41, %v2403_v0 }
  0xc6   : > { %v2728_v26 = vpop.permute.xlu1 %361  ;;  %v2730_v32 = vpop.permute.xlu0 %359 }
  0xc7   : > { %4293 = vst [vmem:[#allocation12_spill] sm:$0xff] %v2728_v26  ;;  %4294 = vst [vmem:[#allocation13_spill] sm:$0xff] %v2730_v32  ;;  %v2202_v32 = vld [vmem:[%s2401_s12 + $0x8] sm:$0xff] }
  0xc8   : > { %813 = vrot.lane.b32.xlu1 %v799_v21, %s2303_s23  ;;  %782 = vrot.lane.b32.xlu0 %v762_v25, %s2303_s23  ;;  %v858_v25 = vmul.f32 %v2499_v44, %v2403_v0 }
  0xca   : > { %v2738_v42 = vpop.permute.xlu1 %394  ;;  %v2740_v47 = vpop.permute.xlu0 %363 }
  0xcb   : > { %4295 = vst [vmem:[#allocation14_spill] sm:$0xff] %v2740_v47 }
  0xcc   : > { %817 = vrot.lane.b32.xlu1 %v801_v33, %s2303_s23  ;;  %815 = vrot.lane.b32.xlu0 %v800_v38, %s2303_s23  ;;  %v857_v33 = vmul.f32 %v2502_v45, %v2403_v0 }
  0xce   : > { %v2748_v56 = vpop.permute.xlu1 %398  ;;  %v2750_v59 = vpop.permute.xlu0 %396 }
  0xcf   : > { %4296 = vst [vmem:[#allocation15_spill] sm:$0xff] %v2748_v56 }
  0xd0   : > { %821 = vrot.lane.b32.xlu1 %v803_v50, %s2303_s23  ;;  %819 = vrot.lane.b32.xlu0 %v802_v55, %s2303_s23  ;;  %v860_v55 = vmul.f32 %v2511_v48, %v2403_v0 }
  0xd2   : > { %v2758_v3 = vpop.permute.xlu1 %402  ;;  %v2760_v7 = vpop.permute.xlu0 %400 }
  0xd3   : > { %4297 = vst [vmem:[#allocation16_spill] sm:$0xff] %v2758_v3  ;;  %4298 = vst [vmem:[#allocation17_spill] sm:$0xff] %v2760_v7 }
  0xd4   : > { %825 = vrot.lane.b32.xlu1 %v805_v60, %s2303_s23  ;;  %823 = vrot.lane.b32.xlu0 %v804_v2, %s2303_s23  ;;  %v859_v60 = vmul.f32 %v2514_v49, %v2403_v0 }
  0xd6   : > { %v2768_v12 = vpop.permute.xlu1 %406  ;;  %v2770_v21 = vpop.permute.xlu0 %404 }
  0xd7   : > { %4299 = vst [vmem:[#allocation18_spill] sm:$0xff] %v2768_v12  ;;  %4300 = vst [vmem:[#allocation19_spill] sm:$0xff] %v2770_v21 }
  0xd8   : > { %871 = vrot.lane.b32.xlu1 %v856_v8, %s2302_s14  ;;  %869 = vrot.lane.b32.xlu0 %v855_v11, %s2302_s14  ;;  %v897_v11 = vmul.f32 %v2490_v41, %v2424_v13 }
  0xda   : > { %v2778_v38 = vpop.permute.xlu1 %477  ;;  %v2780_v50 = vpop.permute.xlu0 %475 }
  0xdc   : > { %875 = vrot.lane.b32.xlu1 %v858_v25, %s2302_s14  ;;  %873 = vrot.lane.b32.xlu0 %v857_v33, %s2302_s14  ;;  %v861_v25 = vmul.f32 %v2525_v53, %v2403_v0  ;;  %v901_v0 = vmul.f32 %v2514_v49, %v2424_v13 }
  0xde   : > { %v2788_v2 = vpop.permute.xlu1 %481  ;;  %v2790_v8 = vpop.permute.xlu0 %479 }
  0xdf   : > { %4301 = vst [vmem:[#allocation20_spill] sm:$0xff] %v2788_v2  ;;  %4302 = vst [vmem:[#allocation21_spill] sm:$0xff] %v2790_v8  ;;  %v899_v2 = vmul.f32 %v2502_v45, %v2424_v13 }
  0xe0   : > { %879 = vrot.lane.b32.xlu1 %v860_v55, %s2302_s14  ;;  %877 = vrot.lane.b32.xlu0 %v859_v60, %s2302_s14  ;;  %v898_v55 = vmul.f32 %v2485_v39, %v2424_v13 }
  0xe2   : > { %v2798_v33 = vpop.permute.xlu1 %485  ;;  %v2800_v21 = vpop.permute.xlu0 %483 }
  0xe3   : > { %4303 = vst [vmem:[#allocation22_spill] sm:$0xff] %v2798_v33  ;;  %4304 = vst [vmem:[#allocation23_spill] sm:$0xff] %v2800_v21 }
  0xe4   : > { %911 = vrot.lane.b32.xlu1 %v897_v11, %s2302_s14  ;;  %881 = vrot.lane.b32.xlu0 %v861_v25, %s2302_s14  ;;  %v900_v11 = vmul.f32 %v2499_v44, %v2424_v13 }
  0xe6   : > { %v2808_v60 = vpop.permute.xlu1 %518  ;;  %v2810_v8 = vpop.permute.xlu0 %487 }
  0xe7   : > { %4305 = vst [vmem:[#allocation24_spill] sm:$0xff] %v2808_v60  ;;  %4306 = vst [vmem:[#allocation25_spill] sm:$0xff] %v2810_v8  ;;  %v903_v8 = vmul.f32 %v2525_v53, %v2424_v13 }
  0xe8   : > { %915 = vrot.lane.b32.xlu1 %v899_v2, %s2302_s14  ;;  %913 = vrot.lane.b32.xlu0 %v898_v55, %s2302_s14  ;;  %v902_v2 = vmul.f32 %v2511_v48, %v2424_v13  ;;  %v942_v13 = vmul.f32 %v2499_v44, %v2448_v23 }
  0xea   : > { %v2818_v25 = vpop.permute.xlu1 %522  ;;  %v2820_v21 = vpop.permute.xlu0 %520 }
  0xeb   : > { %4307 = vst [vmem:[#allocation26_spill] sm:$0xff] %v2818_v25  ;;  %4308 = vst [vmem:[#allocation27_spill] sm:$0xff] %v2820_v21  ;;  %v940_v25 = vmul.f32 %v2485_v39, %v2448_v23 }
  0xec   : > { %919 = vrot.lane.b32.xlu1 %v901_v0, %s2302_s14  ;;  %917 = vrot.lane.b32.xlu0 %v900_v11, %s2302_s14  ;;  %v939_v0 = vmul.f32 %v2490_v41, %v2448_v23 }
  0xee   : > { %v2828_v55 = vpop.permute.xlu1 %526  ;;  %v2830_v33 = vpop.permute.xlu0 %524 }
  0xef   : > { %4309 = vst [vmem:[#allocation28_spill] sm:$0xff] %v2828_v55  ;;  %4310 = vst [vmem:[#allocation29_spill] sm:$0xff] %v2830_v33  ;;  %v981_v33 = vmul.f32 %v2490_v41, %v2463_v30 }
  0xf0   : > { %923 = vrot.lane.b32.xlu1 %v903_v8, %s2302_s14  ;;  %921 = vrot.lane.b32.xlu0 %v902_v2, %s2302_s14  ;;  %v941_v8 = vmul.f32 %v2502_v45, %v2448_v23 }
  0xf2   : > { %v2838_v11 = vpop.permute.xlu1 %530  ;;  %v2840_v12 = vpop.permute.xlu0 %528 }
  0xf3   : > { %4311 = vst [vmem:[#allocation30_spill] sm:$0xff] %v2838_v11  ;;  %4312 = vst [vmem:[#allocation31_spill] sm:$0xff] %v2840_v12  ;;  %v944_v12 = vmul.f32 %v2511_v48, %v2448_v23 }
  0xf4   : > { %955 = vrot.lane.b32.xlu1 %v940_v25, %s2303_s23  ;;  %953 = vrot.lane.b32.xlu0 %v939_v0, %s2303_s23  ;;  %v943_v25 = vmul.f32 %v2514_v49, %v2448_v23 }
  0xf6   : > { %v2848_v2 = vpop.permute.xlu1 %563  ;;  %v2850_v55 = vpop.permute.xlu0 %561 }
  0xf7   : > { %4313 = vst [vmem:[#allocation32_spill] sm:$0xff] %v2848_v2  ;;  %4314 = vst [vmem:[#allocation33_spill] sm:$0xff] %v2850_v55 }
  0xf8   : > { %959 = vrot.lane.b32.xlu1 %v942_v13, %s2303_s23  ;;  %957 = vrot.lane.b32.xlu0 %v941_v8, %s2303_s23  ;;  %v945_v13 = vmul.f32 %v2525_v53, %v2448_v23  ;;  %v985_v23 = vmul.f32 %v2514_v49, %v2463_v30 }
  0xfa   : > { %v2858_v0 = vpop.permute.xlu1 %567  ;;  %v2860_v11 = vpop.permute.xlu0 %565 }
  0xfb   : > { %4315 = vst [vmem:[#allocation34_spill] sm:$0xff] %v2858_v0  ;;  %4316 = vst [vmem:[#allocation35_spill] sm:$0xff] %v2860_v11  ;;  %v983_v0 = vmul.f32 %v2502_v45, %v2463_v30 }
  0xfc   : > { %963 = vrot.lane.b32.xlu1 %v944_v12, %s2303_s23  ;;  %961 = vrot.lane.b32.xlu0 %v943_v25, %s2303_s23  ;;  %v982_v12 = vmul.f32 %v2485_v39, %v2463_v30 }
  0xfe   : > { %v2868_v8 = vpop.permute.xlu1 %571  ;;  %v2870_v7 = vpop.permute.xlu0 %569 }
  0xff   : > { %4317 = vst [vmem:[#allocation36_spill] sm:$0xff] %v2868_v8  ;;  %4318 = vst [vmem:[#allocation37_spill] sm:$0xff] %v2870_v7 }
 0x100   : > { %995 = vrot.lane.b32.xlu1 %v981_v33, %s2303_s23  ;;  %965 = vrot.lane.b32.xlu0 %v945_v13, %s2303_s23  ;;  %v984_v33 = vmul.f32 %v2499_v44, %v2463_v30 }
 0x102   : > { %v2878_v25 = vpop.permute.xlu1 %604  ;;  %v2880_v11 = vpop.permute.xlu0 %573 }
 0x103   : > { %4319 = vst [vmem:[#allocation38_spill] sm:$0xff] %v2878_v25  ;;  %4320 = vst [vmem:[#allocation39_spill] sm:$0xff] %v2880_v11  ;;  %v987_v11 = vmul.f32 %v2525_v53, %v2463_v30 }
 0x104   : > { %999 = vrot.lane.b32.xlu1 %v983_v0, %s2303_s23  ;;  %997 = vrot.lane.b32.xlu0 %v982_v12, %s2303_s23  ;;  %v986_v0 = vmul.f32 %v2511_v48, %v2463_v30  ;;  %v1094_v30 = vmul.f32 %v2598_v17, %v2522_v52 }
 0x106   : > { %v2888_v13 = vpop.permute.xlu1 %608  ;;  %v2890_v8 = vpop.permute.xlu0 %606 }
 0x107   : > { %4321 = vst [vmem:[#allocation40_spill] sm:$0xff] %v2888_v13  ;;  %4322 = vst [vmem:[#allocation41_spill] sm:$0xff] %v2890_v8  ;;  %v1052_v13 = vmul.f32 %v2598_v17, %v2487_v40  ;;  %v1182_v8 = vmul.f32 %v2624_v27, %v2571_v6 }
 0x108   : > { %1003 = vrot.lane.b32.xlu1 %v985_v23, %s2303_s23  ;;  %1001 = vrot.lane.b32.xlu0 %v984_v33, %s2303_s23  ;;  %v1051_v23 = vmul.f32 %v2603_v19, %v2487_v40 }
 0x10a   : > { %v2898_v12 = vpop.permute.xlu1 %612  ;;  %v2900_v7 = vpop.permute.xlu0 %610 }
 0x10b   : > { %4323 = vst [vmem:[#allocation42_spill] sm:$0xff] %v2898_v12  ;;  %4324 = vst [vmem:[#allocation43_spill] sm:$0xff] %v2900_v7  ;;  %v1136_v7 = vmul.f32 %v2598_v17, %v2551_v62 }
 0x10c   : > { %1007 = vrot.lane.b32.xlu1 %v987_v11, %s2303_s23  ;;  %1005 = vrot.lane.b32.xlu0 %v986_v0, %s2303_s23  ;;  %v1093_v11 = vmul.f32 %v2603_v19, %v2522_v52 }
 0x10e   : > { %v2908_v33 = vpop.permute.xlu1 %616  ;;  %v2910_v3 = vpop.permute.xlu0 %614 }
 0x10f   : > { %4325 = vst [vmem:[#allocation44_spill] sm:$0xff] %v2908_v33  ;;  %4326 = vst [vmem:[#allocation45_spill] sm:$0xff] %v2910_v3  ;;  %v1095_v33 = vmul.f32 %v2615_v24, %v2522_v52 }
 0x110   : > { %1067 = vrot.lane.b32.xlu1 %v1052_v13, %s2302_s14  ;;  %1065 = vrot.lane.b32.xlu0 %v1051_v23, %s2302_s14  ;;  %v1053_v13 = vmul.f32 %v2615_v24, %v2487_v40 }
 0x112   : > { %v2918_v0 = vpop.permute.xlu1 %686  ;;  %v2920_v12 = vpop.permute.xlu0 %684 }
 0x113   : > { %4327 = vst [vmem:[#allocation46_spill] sm:$0xff] %v2918_v0  ;;  %4328 = vst [vmem:[#allocation47_spill] sm:$0xff] %v2920_v12 }
 0x114   : > { %1109 = vrot.lane.b32.xlu1 %v1094_v30, %s2302_s14  ;;  %1107 = vrot.lane.b32.xlu0 %v1093_v11, %s2302_s14  ;;  %v1135_v30 = vmul.f32 %v2603_v19, %v2551_v62 }
 0x116   : > { %v2928_v23 = vpop.permute.xlu1 %690  ;;  %v2930_v3 = vpop.permute.xlu0 %688 }
 0x117   : > { %4329 = vst [vmem:[#allocation48_spill] sm:$0xff] %v2928_v23  ;;  %4330 = vst [vmem:[#allocation49_spill] sm:$0xff] %v2930_v3  ;;  %v1178_v23 = vmul.f32 %v2598_v17, %v2571_v6 }
 0x118   : > { %1111 = vrot.lane.b32.xlu1 %v1095_v33, %s2302_s14  ;;  %1069 = vrot.lane.b32.xlu0 %v1053_v13, %s2302_s14  ;;  %v1177_v33 = vmul.f32 %v2603_v19, %v2571_v6 }
 0x11a   : > { %v2938_v11 = vpop.permute.xlu1 %694  ;;  %v2940_v5 = vpop.permute.xlu0 %692 }
 0x11b   : > { %4331 = vst [vmem:[#allocation50_spill] sm:$0xff] %v2938_v11  ;;  %4332 = vst [vmem:[#allocation51_spill] sm:$0xff] %v2940_v5  ;;  %v1096_v11 = vmul.f32 %v2612_v22, %v2522_v52 }
 0x11c   : > { %1151 = vrot.lane.b32.xlu1 %v1136_v7, %s2303_s23  ;;  %1149 = vrot.lane.b32.xlu0 %v1135_v30, %s2303_s23  ;;  %v1054_v7 = vmul.f32 %v2612_v22, %v2487_v40 }
 0x11e   : > { %v2948_v13 = vpop.permute.xlu1 %727  ;;  %v2950_v3 = vpop.permute.xlu0 %696 }
 0x11f   : > { %4333 = vst [vmem:[#allocation52_spill] sm:$0xff] %v2948_v13  ;;  %4334 = vst [vmem:[#allocation53_spill] sm:$0xff] %v2950_v3 }
 0x120   : > { %1193 = vrot.lane.b32.xlu1 %v1178_v23, %s2303_s23  ;;  %1191 = vrot.lane.b32.xlu0 %v1177_v33, %s2303_s23  ;;  %v1179_v23 = vmul.f32 %v2615_v24, %v2571_v6  ;;  %v1137_v33 = vmul.f32 %v2615_v24, %v2551_v62 }
 0x122   : > { %v2958_v30 = vpop.permute.xlu1 %731  ;;  %v2960_v5 = vpop.permute.xlu0 %729 }
 0x123   : > { %4335 = vst [vmem:[#allocation54_spill] sm:$0xff] %v2958_v30  ;;  %4336 = vst [vmem:[#allocation55_spill] sm:$0xff] %v2960_v5 }
 0x124   : > { %1113 = vrot.lane.b32.xlu1 %v1096_v11, %s2302_s14  ;;  %1071 = vrot.lane.b32.xlu0 %v1054_v7, %s2302_s14  ;;  %v1097_v11 = vmul.f32 %v2627_v28, %v2522_v52  ;;  %v1055_v7 = vmul.f32 %v2627_v28, %v2487_v40 }
 0x126   : > { %v2968_v3 = vpop.permute.xlu1 %735  ;;  %v2970_v13 = vpop.permute.xlu0 %733 }
 0x127   : > { %4337 = vst [vmem:[#allocation56_spill] sm:$0xff] %v2968_v3  ;;  %4338 = vst [vmem:[#allocation57_spill] sm:$0xff] %v2970_v13  ;;  %v1180_v3 = vmul.f32 %v2612_v22, %v2571_v6  ;;  %v2992_v13 = vld [vmem:[%s2401_s12 + $0x39] sm:$0xff] }
 0x128   : > { %1195 = vrot.lane.b32.xlu1 %v1179_v23, %s2303_s23  ;;  %1153 = vrot.lane.b32.xlu0 %v1137_v33, %s2303_s23  ;;  %v1138_v23 = vmul.f32 %v2612_v22, %v2551_v62  ;;  %v2989_v33 = vld [vmem:[%s2401_s12 + $0x41] sm:$0xff]  ;;  %4342 = vst [vmem:[#allocation61_spill] sm:$0xff] %v2992_v13 }
 0x129   : > { %4341 = vst [vmem:[#allocation60_spill] sm:$0xff] %v2989_v33 }
 0x12a   : > { %v2978_v30 = vpop.permute.xlu1 %739  ;;  %v2980_v5 = vpop.permute.xlu0 %737 }
 0x12b   : > { %4339 = vst [vmem:[#allocation58_spill] sm:$0xff] %v2978_v30  ;;  %4340 = vst [vmem:[#allocation59_spill] sm:$0xff] %v2980_v5 }
 0x12c   : > { %1115 = vrot.lane.b32.xlu1 %v1097_v11, %s2302_s14  ;;  %1073 = vrot.lane.b32.xlu0 %v1055_v7, %s2302_s14  ;;  %v1255_v11 = vmul.f32 %v2989_v33, %v2600_v18  ;;  %v1254_v7 = vmul.f32 %v2992_v13, %v2600_v18 }
 0x12e   : > { %v2994_v56 = vpop.permute.xlu1 %772  ;;  %v2996_v12 = vpop.permute.xlu0 %770 }
 0x12f   : > { %4343 = vst [vmem:[#allocation62_spill] sm:$0xff] %v2994_v56  ;;  %4344 = vst [vmem:[#allocation63_spill] sm:$0xff] %v2996_v12 }
 0x130   : > { %1197 = vrot.lane.b32.xlu1 %v1180_v3, %s2303_s23  ;;  %1155 = vrot.lane.b32.xlu0 %v1138_v23, %s2303_s23  ;;  %v1297_v3 = vmul.f32 %v2989_v33, %v2639_v34  ;;  %v1296_v23 = vmul.f32 %v2992_v13, %v2639_v34 }
 0x132   : > { %v3004_v30 = vpop.permute.xlu1 %776  ;;  %v3006_v5 = vpop.permute.xlu0 %774 }
 0x133   : > { %4345 = vst [vmem:[#allocation64_spill] sm:$0xff] %v3004_v30  ;;  %4346 = vst [vmem:[#allocation65_spill] sm:$0xff] %v3006_v5 }
 0x134   : > { %1270 = vrot.lane.b32.xlu1 %v1255_v11, %s2302_s14  ;;  %1268 = vrot.lane.b32.xlu0 %v1254_v7, %s2302_s14  ;;  %v1098_v11 = vmul.f32 %v2624_v27, %v2522_v52  ;;  %v1056_v7 = vmul.f32 %v2624_v27, %v2487_v40 }
 0x136   : > { %v3014_v12 = vpop.permute.xlu1 %780  ;;  %v3016_v56 = vpop.permute.xlu0 %778 }
 0x137   : > { %4347 = vst [vmem:[#allocation66_spill] sm:$0xff] %v3014_v12  ;;  %4348 = vst [vmem:[#allocation67_spill] sm:$0xff] %v3016_v56  ;;  %v1181_v12 = vmul.f32 %v2627_v28, %v2571_v6 }
 0x138   : > { %1312 = vrot.lane.b32.xlu1 %v1297_v3, %s2302_s14  ;;  %1310 = vrot.lane.b32.xlu0 %v1296_v23, %s2302_s14  ;;  %v1139_v3 = vmul.f32 %v2627_v28, %v2551_v62  ;;  %v3035_v23 = vld [vmem:[%s2401_s12 + $0x49] sm:$0xff] }
 0x139   : > { %4351 = vst [vmem:[#allocation70_spill] sm:$0xff] %v3035_v23 }
 0x13a   : > { %v3024_v30 = vpop.permute.xlu1 %813  ;;  %v3026_v5 = vpop.permute.xlu0 %782 }
 0x13b   : > { %4349 = vst [vmem:[#allocation68_spill] sm:$0xff] %v3024_v30  ;;  %4350 = vst [vmem:[#allocation69_spill] sm:$0xff] %v3026_v5 }
 0x13c   : > { %1117 = vrot.lane.b32.xlu1 %v1098_v11, %s2302_s14  ;;  %1075 = vrot.lane.b32.xlu0 %v1056_v7, %s2302_s14  ;;  %v1298_v11 = vmul.f32 %v3035_v23, %v2639_v34  ;;  %v1256_v7 = vmul.f32 %v3035_v23, %v2600_v18 }
 0x13e   : > { %v3037_v56 = vpop.permute.xlu1 %817  ;;  %v3039_v0 = vpop.permute.xlu0 %815 }
 0x13f   : > { %4352 = vst [vmem:[#allocation71_spill] sm:$0xff] %v3037_v56  ;;  %4353 = vst [vmem:[#allocation72_spill] sm:$0xff] %v3039_v0  ;;  %v1339_v56 = vmul.f32 %v2989_v33, %v2684_v61 }
 0x140   : > { %1199 = vrot.lane.b32.xlu1 %v1181_v12, %s2303_s23  ;;  %1157 = vrot.lane.b32.xlu0 %v1139_v3, %s2303_s23  ;;  %v1338_v12 = vmul.f32 %v2992_v13, %v2684_v61 }
 0x142   : > { %v3047_v5 = vpop.permute.xlu1 %821  ;;  %v3049_v30 = vpop.permute.xlu0 %819 }
 0x143   : > { %4354 = vst [vmem:[#allocation73_spill] sm:$0xff] %v3047_v5  ;;  %4355 = vst [vmem:[#allocation74_spill] sm:$0xff] %v3049_v30 }
 0x144   : > { %1314 = vrot.lane.b32.xlu1 %v1298_v11, %s2302_s14  ;;  %1272 = vrot.lane.b32.xlu0 %v1256_v7, %s2302_s14  ;;  %v1381_v11 = vmul.f32 %v2989_v33, %v2716_v15  ;;  %v1380_v7 = vmul.f32 %v2992_v13, %v2716_v15  ;;  %v2204_v33 = vld [vmem:[%s2401_s12 + $0x20] sm:$0xff] }
 0x146   : > { %v3057_v3 = vpop.permute.xlu1 %825  ;;  %v3059_v0 = vpop.permute.xlu0 %823 }
 0x147   : > { %4356 = vst [vmem:[#allocation75_spill] sm:$0xff] %v3057_v3  ;;  %4357 = vst [vmem:[#allocation76_spill] sm:$0xff] %v3059_v0 }
 0x148   : > { %1354 = vrot.lane.b32.xlu1 %v1339_v56, %s2303_s23  ;;  %1352 = vrot.lane.b32.xlu0 %v1338_v12, %s2303_s23  ;;  %v1099_v56 = vmul.f32 %v2642_v35, %v2522_v52  ;;  %v1057_v12 = vmul.f32 %v2642_v35, %v2487_v40 }
 0x14a   : > { %v3067_v5 = vpop.permute.xlu1 %871  ;;  %v3069_v30 = vpop.permute.xlu0 %869 }
 0x14c   : > { %1396 = vrot.lane.b32.xlu1 %v1381_v11, %s2303_s23  ;;  %1394 = vrot.lane.b32.xlu0 %v1380_v7, %s2303_s23  ;;  %v1140_v11 = vmul.f32 %v2624_v27, %v2551_v62  ;;  %v3088_v7 = vld [vmem:[%s2401_s12 + $0x51] sm:$0xff] }
 0x14d   : > { %4360 = vst [vmem:[#allocation79_spill] sm:$0xff] %v3088_v7  ;;  %v1299_v40 = vmul.f32 %v3088_v7, %v2639_v34 }
 0x14e   : > { %v3077_v3 = vpop.permute.xlu1 %875  ;;  %v3079_v0 = vpop.permute.xlu0 %873 }
 0x14f   : > { %4358 = vst [vmem:[#allocation77_spill] sm:$0xff] %v3077_v3  ;;  %4359 = vst [vmem:[#allocation78_spill] sm:$0xff] %v3079_v0 }
 0x150   : > { %1119 = vrot.lane.b32.xlu1 %v1099_v56, %s2302_s14  ;;  %1077 = vrot.lane.b32.xlu0 %v1057_v12, %s2302_s14  ;;  %v1257_v56 = vmul.f32 %v3088_v7, %v2600_v18 }
 0x152   : > { %v3090_v52 = vpop.permute.xlu1 %879  ;;  %v3092_v25 = vpop.permute.xlu0 %877 }
 0x153   : > { %4361 = vst [vmem:[#allocation80_spill] sm:$0xff] %v3090_v52  ;;  %4362 = vst [vmem:[#allocation81_spill] sm:$0xff] %v3092_v25 }
 0x154   : > { %1201 = vrot.lane.b32.xlu1 %v1182_v8, %s2303_s23  ;;  %1159 = vrot.lane.b32.xlu0 %v1140_v11, %s2303_s23  ;;  %v1382_v8 = vmul.f32 %v3035_v23, %v2716_v15  ;;  %v1340_v11 = vmul.f32 %v3035_v23, %v2684_v61 }
 0x156   : > { %v3100_v12 = vpop.permute.xlu1 %911  ;;  %v3102_v3 = vpop.permute.xlu0 %881 }
 0x157   : > { %4363 = vst [vmem:[#allocation82_spill] sm:$0xff] %v3102_v3  ;;  %v3121_v3 = vld [vmem:[%s2401_s12 + $0x59] sm:$0xff] }
 0x158   : > { %1316 = vrot.lane.b32.xlu1 %v1299_v40, %s2302_s14  ;;  %1274 = vrot.lane.b32.xlu0 %v1257_v56, %s2302_s14  ;;  %v1183_v40 = vmul.f32 %v2642_v35, %v2571_v6  ;;  %v1141_v56 = vmul.f32 %v2642_v35, %v2551_v62  ;;  %4365 = vst [vmem:[#allocation84_spill] sm:$0xff] %v3121_v3 }
 0x159   : > { %v1383_v62 = vmul.f32 %v3088_v7, %v2716_v15 }
 0x15a   : > { %v3110_v52 = vpop.permute.xlu1 %915  ;;  %v3112_v25 = vpop.permute.xlu0 %913 }
 0x15b   : > { %4364 = vst [vmem:[#allocation83_spill] sm:$0xff] %v3110_v52 }
 0x15c   : > { %1398 = vrot.lane.b32.xlu1 %v1382_v8, %s2303_s23  ;;  %1356 = vrot.lane.b32.xlu0 %v1340_v11, %s2303_s23  ;;  %v1300_v8 = vmul.f32 %v3121_v3, %v2639_v34  ;;  %v1258_v11 = vmul.f32 %v3121_v3, %v2600_v18 }
 0x15e   : > { %v3123_v0 = vpop.permute.xlu1 %919  ;;  %v3125_v23 = vpop.permute.xlu0 %917 }
 0x15f   : > { %4366 = vst [vmem:[#allocation85_spill] sm:$0xff] %v3123_v0  ;;  %4367 = vst [vmem:[#allocation86_spill] sm:$0xff] %v3125_v23 }
 0x160   : > { %1203 = vrot.lane.b32.xlu1 %v1183_v40, %s2303_s23  ;;  %1161 = vrot.lane.b32.xlu0 %v1141_v56, %s2303_s23  ;;  %v1341_v40 = vmul.f32 %v3088_v7, %v2684_v61  ;;  %v3144_v56 = vld [vmem:[%s2401_s12 + $0x61] sm:$0xff]  ;;  %v1384_v7 = vmul.f32 %v3121_v3, %v2716_v15 }
 0x161   : > { %4370 = vst [vmem:[#allocation89_spill] sm:$0xff] %v3144_v56 }
 0x162   : > { %v3133_v6 = vpop.permute.xlu1 %923  ;;  %v3135_v52 = vpop.permute.xlu0 %921 }
 0x163   : > { %4368 = vst [vmem:[#allocation87_spill] sm:$0xff] %v3133_v6  ;;  %4369 = vst [vmem:[#allocation88_spill] sm:$0xff] %v3135_v52 }
 0x164   : > { %1318 = vrot.lane.b32.xlu1 %v1300_v8, %s2302_s14  ;;  %1276 = vrot.lane.b32.xlu0 %v1258_v11, %s2302_s14  ;;  %v1301_v8 = vmul.f32 %v3144_v56, %v2639_v34  ;;  %v1259_v11 = vmul.f32 %v3144_v56, %v2600_v18 }
 0x166   : > { %v3146_v0 = vpop.permute.xlu1 %955  ;;  %v3148_v23 = vpop.permute.xlu0 %953 }
 0x168   : > { %1400 = vrot.lane.b32.xlu1 %v1383_v62, %s2303_s23  ;;  %1358 = vrot.lane.b32.xlu0 %v1341_v40, %s2303_s23  ;;  %v1342_v62 = vmul.f32 %v3121_v3, %v2684_v61  ;;  %v3167_v40 = vld [vmem:[%s2401_s12 + $0x69] sm:$0x3] }
 0x169   : > { %4373 = vst [vmem:[#allocation92_spill] sm:$0xff] %v3167_v40 }
 0x16a   : > { %v3156_v6 = vpop.permute.xlu1 %959  ;;  %v3158_v52 = vpop.permute.xlu0 %957 }
 0x16b   : > { %4371 = vst [vmem:[#allocation90_spill] sm:$0xff] %v3156_v6  ;;  %4372 = vst [vmem:[#allocation91_spill] sm:$0xff] %v3158_v52 }
 0x16c   : > { %1320 = vrot.lane.b32.xlu1 %v1301_v8, %s2302_s14  ;;  %1278 = vrot.lane.b32.xlu0 %v1259_v11, %s2302_s14  ;;  %v1302_v8 = vmul.f32 %v3167_v40, %v2639_v34  ;;  %v1260_v11 = vmul.f32 %v3167_v40, %v2600_v18  ;;  %v1386_v18 = vmul.f32 %v3167_v40, %v2716_v15 }
 0x16e   : > { %v3169_v21 = vpop.permute.xlu1 %963  ;;  %v3171_v60 = vpop.permute.xlu0 %961 }
 0x16f   : > { %4374 = vst [vmem:[#allocation93_spill] sm:$0xff] %v3169_v21  ;;  %4375 = vst [vmem:[#allocation94_spill] sm:$0xff] %v3171_v60  ;;  %v1385_v21 = vmul.f32 %v3144_v56, %v2716_v15 }
 0x170   : > { %1402 = vrot.lane.b32.xlu1 %v1384_v7, %s2303_s23  ;;  %1360 = vrot.lane.b32.xlu0 %v1342_v62, %s2303_s23  ;;  %v1343_v7 = vmul.f32 %v3144_v56, %v2684_v61 }
 0x172   : > { %v3179_v6 = vpop.permute.xlu1 %995  ;;  %v3181_v52 = vpop.permute.xlu0 %965 }
 0x173   : > { %4376 = vst [vmem:[#allocation95_spill] sm:$0xff] %v3179_v6  ;;  %4377 = vst [vmem:[#allocation96_spill] sm:$0xff] %v3181_v52 }
 0x174   : > { %1322 = vrot.lane.b32.xlu1 %v1302_v8, %s2302_s14  ;;  %1280 = vrot.lane.b32.xlu0 %v1260_v11, %s2302_s14  ;;  %v1344_v8 = vmul.f32 %v3167_v40, %v2684_v61 }
 0x176   : > { %v3189_v62 = vpop.permute.xlu1 %999  ;;  %v3191_v34 = vpop.permute.xlu0 %997 }
 0x177   : > { %4378 = vst [vmem:[#allocation97_spill] sm:$0xff] %v3189_v62  ;;  %4379 = vst [vmem:[#allocation98_spill] sm:$0xff] %v3191_v34 }
 0x178   : > { %1404 = vrot.lane.b32.xlu1 %v1385_v21, %s2303_s23  ;;  %1362 = vrot.lane.b32.xlu0 %v1343_v7, %s2303_s23 }
 0x17a   : > { %v3199_v11 = vpop.permute.xlu1 %1003  ;;  %v3201_v52 = vpop.permute.xlu0 %1001 }
 0x17b   : > { %4380 = vst [vmem:[#allocation99_spill] sm:$0xff] %v3199_v11  ;;  %4381 = vst [vmem:[#allocation100_spill] sm:$0xff] %v3201_v52 }
 0x17c   : > { %1406 = vrot.lane.b32.xlu1 %v1386_v18, %s2303_s23  ;;  %1364 = vrot.lane.b32.xlu0 %v1344_v8, %s2303_s23  ;;  %s2143_s23 = sshll.u32 %s2351_s19, 4  ;;  %s2304_s19 = smov [#allocation5]  }
 0x17d   : > { %s2237_s7 = sshll.u32 %s2304_s19, 4  ;;  %s2238_s7 = int_to_ptr.vmem [resolvable:$false] %s2237_s7 }
 0x17e   : > { %v3205_v56 = vpop.permute.xlu1 %1007  ;;  %v3207_v3 = vpop.permute.xlu0 %1005  ;;  %s2239_s8 = scalar_lea.vmem %s2238_s7, 32 }
 0x17f   : > { %4382 = vst [vmem:[#allocation101_spill] sm:$0xff] %v3205_v56  ;;  %4383 = vst [vmem:[#allocation102_spill] sm:$0xff] %v3207_v3 }
 0x182   : > { %v3209_v21 = vpop.permute.xlu1 %1067  ;;  %v3211_v7 = vpop.permute.xlu0 %1065 }
 0x183   : > { %4384 = vst [vmem:[#allocation103_spill] sm:$0xff] %v3209_v21  ;;  %4385 = vst [vmem:[#allocation104_spill] sm:$0xff] %v3211_v7 }
 0x186   : > { %v3213_v15 = vpop.permute.xlu1 %1109  ;;  %v3215_v60 = vpop.permute.xlu0 %1107 }
 0x187   : > { %4386 = vst [vmem:[#allocation105_spill] sm:$0xff] %v3213_v15  ;;  %4387 = vst [vmem:[#allocation106_spill] sm:$0xff] %v3215_v60 }
 0x18a   : > { %v3217_v61 = vpop.permute.xlu1 %1111  ;;  %v3219_v40 = vpop.permute.xlu0 %1069 }
 0x18b   : > { %4388 = vst [vmem:[#allocation107_spill] sm:$0xff] %v3217_v61  ;;  %4389 = vst [vmem:[#allocation108_spill] sm:$0xff] %v3219_v40  ;;  %v3233_v40 = vstv %s209_s9  ;;  %v3239_v61 = vstv %s2043_s10 }
 0x18c   : > { %v241_v21 = vmul.f32 %v3233_v40, %v2427_v14  ;;  %v244_v2 = vmul.f32 %v2202_v32, %v3239_v61  ;;  %v3265_v26 = vmul.f32 %v2204_v33, %v3239_v61  ;;  %v3272_v4 = vmul.f32 %v2205_v16, %v3239_v61 }
 0x18e   : > { %v3221_v11 = vpop.permute.xlu1 %1151  ;;  %v3223_v18 = vpop.permute.xlu0 %1149  ;;  %4398 = vst [vmem:[#allocation117_spill] sm:$0xff] %v3272_v4  ;;  %v3319_v4 = vstv %s3237_s22 }
 0x18f   : > { %4390 = vst [vmem:[#allocation109_spill] sm:$0xff] %v3221_v11  ;;  %4391 = vst [vmem:[#allocation110_spill] sm:$0xff] %v3223_v18  ;;  %v236_v18 = vmul.f32 %v2202_v32, %v3233_v40  ;;  %v2203_v11 = vld [vmem:[%s2401_s12 + $0x28] sm:$0xff] }
 0x190   : > { %v240_v13 = vmul.f32 %v2203_v11, %v3233_v40 }
 0x192   : > { %v3225_v8 = vpop.permute.xlu1 %1193  ;;  %v3227_v56 = vpop.permute.xlu0 %1191 }
 0x193   : > { %4392 = vst [vmem:[#allocation111_spill] sm:$0xff] %v3225_v8  ;;  %4393 = vst [vmem:[#allocation112_spill] sm:$0xff] %v3227_v56  ;;  %v2199_v8 = vld [vmem:[%s2401_s12 + $0x10] sm:$0xff] }
 0x194   : > { %v237_v60 = vmul.f32 %v2199_v8, %v3233_v40  ;;  %v245_v55 = vmul.f32 %v2199_v8, %v3239_v61  ;;  %v3281_v8 = vmul.f32 %v2203_v11, %v3239_v61 }
 0x196   : > { %v3229_v3 = vpop.permute.xlu1 %1113  ;;  %v3231_v52 = vpop.permute.xlu0 %1071  ;;  %4401 = vst [vmem:[#allocation120_spill] sm:$0xff] %v3281_v8 }
 0x197   : > { %4394 = vst [vmem:[#allocation113_spill] sm:$0xff] %v3229_v3  ;;  %4395 = vst [vmem:[#allocation114_spill] sm:$0xff] %v3231_v52  ;;  %v2200_v3 = vld [vmem:[%s2401_s12] sm:$0xff]  ;;  %v2201_v52 = vld [vmem:[%s2401_s12 + $0x18] sm:$0xff] }
 0x198   : > { %v235_v15 = vmul.f32 %v2200_v3, %v3233_v40  ;;  %v238_v47 = vmul.f32 %v2201_v52, %v3233_v40  ;;  %v243_v7 = vmul.f32 %v2200_v3, %v3239_v61  ;;  %v3268_v20 = vmul.f32 %v2201_v52, %v3239_v61 }
 0x199   : > { %v3274_v3 = vstv %s2046_s13 }
 0x19a   : > { %v3241_v62 = vpop.permute.xlu1 %1195  ;;  %v3243_v56 = vpop.permute.xlu0 %1153  ;;  %v3308_v8 = vmul.f32 %v2490_v41, %v3274_v3  ;;  %v3343_v6 = vmul.f32 %v2511_v48, %v3274_v3 }
 0x19b   : > { %4396 = vst [vmem:[#allocation115_spill] sm:$0xff] %v3241_v62  ;;  %4397 = vst [vmem:[#allocation116_spill] sm:$0xff] %v3243_v56  ;;  %v239_v62 = vmul.f32 %v2204_v33, %v3233_v40  ;;  %v3257_v56 = vstv %s2037_s11 }
 0x19c   : > { %v432_v32 = vmul.f32 %v2485_v39, %v3257_v56  ;;  %v431_v33 = vmul.f32 %v2490_v41, %v3257_v56  ;;  %v3289_v52 = vmul.f32 %v2499_v44, %v3257_v56  ;;  %v3293_v16 = vmul.f32 %v2502_v45, %v3257_v56  ;;  %4406 = vst [vmem:[#allocation125_spill] sm:$0xff] %v3308_v8 }
 0x19d   : > { %v3301_v11 = vmul.f32 %v2514_v49, %v3257_v56  ;;  %v3331_v8 = vmul.f32 %v2499_v44, %v3274_v3  ;;  %4414 = vst [vmem:[#allocation133_spill] sm:$0xff] %v3343_v6  ;;  %v3371_v6 = vmul.f32 %v3319_v4, %v2603_v19 }
 0x19e   : > { %v3276_v34 = vpop.permute.xlu1 %1115  ;;  %v3278_v14 = vpop.permute.xlu0 %1073  ;;  %4402 = vst [vmem:[#allocation121_spill] sm:$0xff] %v3289_v52  ;;  %4403 = vst [vmem:[#allocation122_spill] sm:$0xff] %v3293_v16  ;;  %v3312_v52 = vmul.f32 %v2525_v53, %v3257_v56  ;;  %v3316_v16 = vmul.f32 %v2502_v45, %v3274_v3 }
 0x19f   : > { %4399 = vst [vmem:[#allocation118_spill] sm:$0xff] %v3276_v34  ;;  %4400 = vst [vmem:[#allocation119_spill] sm:$0xff] %v3278_v14  ;;  %v3297_v14 = vmul.f32 %v2511_v48, %v3257_v56  ;;  %v3304_v34 = vstv %s3235_s20  ;;  %s202_s20 = sand.u32 1, %s2291_s16  }
 0x1a0   : > { %4405 = vst [vmem:[#allocation124_spill] sm:$0xff] %v3301_v11  ;;  %4407 = vst [vmem:[#allocation126_spill] sm:$0xff] %v3312_v52  ;;  %v3327_v11 = vmul.f32 %v2514_v49, %v3274_v3  ;;  %v3335_v52 = vmul.f32 %v2525_v53, %v3274_v3  ;;  %v3347_v49 = vmul.f32 %v3304_v34, %v2598_v17  ;;  %s203_s27 = scalar_lea.vmem [#allocation5], %s202_s20  ;;  %s1949_s5 = scalar_lea.sflag [#allocation3], %s202_s20 }
 0x1a1   : > { %4404 = vst [vmem:[#allocation123_spill] sm:$0xff] %v3297_v14  ;;  %4408 = vst [vmem:[#allocation127_spill] sm:$0xff] %v3316_v16  ;;  %v3323_v14 = vmul.f32 %v2485_v39, %v3274_v3  ;;  %v3351_v44 = vmul.f32 %v3304_v34, %v2603_v19  ;;  %v3355_v53 = vmul.f32 %v3304_v34, %v2612_v22  ;;  %s1961_s28 = sshll.u32 %s203_s27, 4  ;;  %s4226_s28 = int_to_ptr.vmem [resolvable:$true] %s1961_s28 }
 0x1a2   : > { %4409 = vst [vmem:[#allocation128_spill] sm:$0xff] %v3327_v11  ;;  %4410 = vst [vmem:[#allocation129_spill] sm:$0xff] %v3331_v8  ;;  %v3337_v45 = vpop.permute.xlu1 %1197  ;;  %v3339_v16 = vpop.permute.xlu0 %1155  ;;  %v3363_v48 = vmul.f32 %v3304_v34, %v2624_v27  ;;  %v287_v8 = vadd.f32 %v2646_v37, %v236_v18  ;;  %v3389_v11 = vmul.f32 %v3319_v4, %v2598_v17  ;;  %s2233_s6 = scalar_lea.vmem %s4226_s28, 16  ;;  %p2240_p13 = scmp.lt.s32.totalorder %s4226_s28, %s2238_s7 }
 0x1a3   : > { %4411 = vst [vmem:[#allocation130_spill] sm:$0xff] %v3335_v52  ;;  %4412 = vst [vmem:[#allocation131_spill] sm:$0xff] %v3337_v45  ;;  %v3359_v45 = vmul.f32 %v3304_v34, %v2615_v24  ;;  %v3375_v52 = vmul.f32 %v3304_v34, %v2642_v35  ;;  %v3393_v35 = vmul.f32 %v3319_v4, %v2627_v28  ;;  %p2234_p9 = scmp.ne.s32.totalorder %s4226_s28, %s2233_s6  ;;  %p2241_p0 = scmp.lt.s32.totalorder %s2239_s8, %s2233_s6 }
 0x1a4   : > { %4413 = vst [vmem:[#allocation132_spill] sm:$0xff] %v3339_v16  ;;  %4415 = vst [vmem:[#allocation134_spill] sm:$0xff] %v3355_v53  ;;  %v3367_v16 = vmul.f32 %v3304_v34, %v2627_v28  ;;  %v3379_v53 = vmul.f32 %v3319_v4, %v2615_v24  ;;  %v3403_v37 = vmul.f32 %v3319_v4, %v2612_v22 }
 0x1a5   : > { %4416 = vst [vmem:[#allocation135_spill] sm:$0xff] %v3359_v45  ;;  %4417 = vst [vmem:[#allocation136_spill] sm:$0xff] %v3363_v48  ;;  %v842_v45 = vmul.f32 %v2485_v39, %v3233_v40  ;;  %v841_v48 = vmul.f32 %v2490_v41, %v3233_v40  ;;  %v288_v41 = vadd.f32 %v2629_v29, %v237_v60  ;;  %v2207_v60 = vld [vmem:[%s2401_s12 + $0x40] sm:$0xff]  ;;  %p2235_p10 = pnand %p2234_p9, %p2368_p5  ;;  %p2242_p1 = por %p2241_p0, %p2240_p13 }
 0x1a6   : > { %4418 = vst [vmem:[#allocation137_spill] sm:$0xff] %v3367_v16  ;;  %4419 = vst [vmem:[#allocation138_spill] sm:$0xff] %v3375_v52  ;;  %v286_v16 = vadd.f32 %v2631_v31, %v235_v15  ;;  %v3395_v52 = vpop.permute.xlu1 %1270  ;;  %v3397_v39 = vpop.permute.xlu0 %1268  ;;  %v289_v31 = vadd.f32 %v2644_v36, %v238_v47  ;;  %v3407_v15 = vmul.f32 %v3319_v4, %v2624_v27  ;;  %v2206_v47 = vld [vmem:[%s2401_s12 + $0x38] sm:$0xff] }
 0x1a7   : > { %4420 = vst [vmem:[#allocation139_spill] sm:$0xff] %v3379_v53  ;;  %4421 = vst [vmem:[#allocation140_spill] sm:$0xff] %v3393_v35  ;;  %v291_v18 = vadd.f32 %v2654_v43, %v240_v13  ;;  %v290_v28 = vadd.f32 %v2656_v46, %v239_v62  ;;  %v373_v35 = vadd.f32 %v2706_v9, %v287_v8  ;;  %p2236_p12 = pneg %p2235_p10 }
 0x1a8   : > { %4422 = vst [vmem:[#allocation141_spill] sm:$0xff] %v3403_v37  ;;  %v372_v53 = vadd.f32 %v2708_v10, %v286_v16  ;;  %v891_v29 = vadd.f32 %v3067_v5, %v842_v45  ;;  %v890_v36 = vadd.f32 %v3069_v30, %v841_v48  ;;  %v848_v22 = vmul.f32 %v2206_v47, %v3239_v61  ;;  %v4425_v16 = vld [vmem:[#allocation117_spill] sm:$0xff] }
 0x1a9   : > { %v849_v37 = vmul.f32 %v2207_v60, %v3239_v61  ;;  %v329_v27 = vadd.f32 %v2664_v51, %v243_v7  ;;  %v292_v43 = vadd.f32 %v2666_v54, %v241_v21  ;;  %v3422_v46 = vadd.f32 %v2674_v57, %v245_v55  ;;  %p2243_p2 = pnand %p2242_p1, %p2236_p12 }
 0x1aa   : > { %v330_v9 = vadd.f32 %v2676_v58, %v244_v2  ;;  %v3425_v10 = vpop.permute.xlu1 %1312  ;;  %v3427_v5 = vpop.permute.xlu0 %1310  ;;  %v975_v13 = vadd.f32 %v3146_v0, %v891_v29  ;;  %v974_v30 = vadd.f32 %v3148_v23, %v890_v36  ;;  %v1024_v62 = vmul.f32 %v2598_v17, %v3257_v56  ;;  %v4431_v36 = vld [vmem:[#allocation33_spill] sm:$0xff] }
 0x1ab   : > { %v1023_v51 = vmul.f32 %v2603_v19, %v3257_v56  ;;  %v3437_v54 = vadd.f32 %v2686_v63, %v3265_v26  ;;  %v3441_v57 = vadd.f32 %v2688_v1, %v3268_v20  ;;  %v439_v58 = vadd.f32 %v432_v32, %v373_v35  ;;  %v4424_v32 = vld [vmem:[#allocation98_spill] sm:$0xff] }
 0x1ac   : > { %v438_v55 = vadd.f32 %v431_v33, %v372_v53  ;;  %v415_v2 = vadd.f32 %v2738_v42, %v329_v27  ;;  %v416_v0 = vadd.f32 %v2750_v59, %v330_v9  ;;  %v932_v23 = vadd.f32 %v3100_v12, %v848_v22  ;;  %v4423_v42 = vld [vmem:[#allocation95_spill] sm:$0xff]  ;;  %v4433_v27 = vld [vmem:[#allocation104_spill] sm:$0xff] }
 0x1ad   : > { %v933_v21 = vadd.f32 %v3112_v25, %v849_v37  ;;  %v497_v7 = vadd.f32 %v2778_v38, %v439_v58  ;;  %v1038_v63 = vmul.f32 %v2598_v17, %v3274_v3  ;;  %v1037_v1 = vmul.f32 %v2603_v19, %v3274_v3  ;;  %v4426_v38 = vld [vmem:[#allocation8_spill] sm:$0xff]  ;;  %v4428_v17 = vld [vmem:[#allocation11_spill] sm:$0xff] }
 0x1ae   : > { %v496_v8 = vadd.f32 %v2780_v50, %v438_v55  ;;  %v3453_v20 = vpop.permute.xlu1 %1117  ;;  %v3455_v26 = vpop.permute.xlu0 %1075  ;;  %v1016_v59 = vadd.f32 %v4423_v42, %v932_v23  ;;  %v1031_v33 = vadd.f32 %v1024_v62, %v975_v13  ;;  %v1030_v25 = vadd.f32 %v1023_v51, %v974_v30  ;;  %v4427_v50 = vld [vmem:[#allocation10_spill] sm:$0xff]  ;;  %v4429_v19 = vld [vmem:[#allocation12_spill] sm:$0xff]  ;;  %v4432_v22 = vld [vmem:[#allocation103_spill] sm:$0xff] }
 0x1af   : > { %v1017_v12 = vadd.f32 %v4424_v32, %v933_v21  ;;  %v3461_v45 = vadd.f32 %v4426_v38, %v4425_v16  ;;  %v3464_v53 = vadd.f32 %v4427_v50, %v289_v31  ;;  %v3467_v48 = vadd.f32 %v4428_v17, %v288_v41  ;;  %v4430_v37 = vld [vmem:[#allocation32_spill] sm:$0xff]  ;;  %v4434_v13 = vld [vmem:[#allocation125_spill] sm:$0xff]  ;;  %v4438_v42 = vld [vmem:[#allocation110_spill] sm:$0xff] }
 0x1b0   : > { %v3470_v35 = vadd.f32 %v4429_v19, %v291_v18  ;;  %v583_v29 = vadd.f32 %v4430_v37, %v497_v7  ;;  %v582_v47 = vadd.f32 %v4431_v36, %v496_v8  ;;  %v1087_v60 = vadd.f32 %v4432_v22, %v1031_v33  ;;  %v4435_v31 = vld [vmem:[#allocation60_spill] sm:$0xff]  ;;  %v4436_v41 = vld [vmem:[#allocation61_spill] sm:$0xff]  ;;  %v4442_v38 = vld [vmem:[#allocation27_spill] sm:$0xff] }
 0x1b1   : > { %v1086_v9 = vadd.f32 %v4433_v27, %v1030_v25  ;;  %v453_v30 = vadd.f32 %v4434_v13, %v415_v2  ;;  %v454_v62 = vadd.f32 %v3323_v14, %v416_v0  ;;  %v1227_v51 = vmul.f32 %v4435_v31, %v3304_v34  ;;  %v4437_v7 = vld [vmem:[#allocation109_spill] sm:$0xff]  ;;  %v4440_v25 = vld [vmem:[#allocation14_spill] sm:$0xff]  ;;  %v4441_v0 = vld [vmem:[#allocation24_spill] sm:$0xff] }
 0x1b2   : > { %v1226_v58 = vmul.f32 %v4436_v41, %v3304_v34  ;;  %v3482_v18 = vpop.permute.xlu1 %1199  ;;  %v3484_v55 = vpop.permute.xlu0 %1157  ;;  %v1045_v23 = vadd.f32 %v1038_v63, %v1017_v12  ;;  %v1044_v21 = vadd.f32 %v1037_v1, %v1016_v59  ;;  %v1171_v8 = vadd.f32 %v4437_v7, %v1087_v60  ;;  %v4439_v33 = vld [vmem:[#allocation13_spill] sm:$0xff]  ;;  %v4444_v59 = vld [vmem:[#allocation106_spill] sm:$0xff] }
 0x1b3   : > { %v1170_v32 = vadd.f32 %v4438_v42, %v1086_v9  ;;  %v376_v2 = vadd.f32 %v4439_v33, %v290_v28  ;;  %v3490_v14 = vadd.f32 %v4440_v25, %v292_v43  ;;  %v539_v16 = vadd.f32 %v4441_v0, %v453_v30  ;;  %v4443_v63 = vld [vmem:[#allocation105_spill] sm:$0xff]  ;;  %v4445_v37 = vld [vmem:[#allocation38_spill] sm:$0xff] }
 0x1b4   : > { %v540_v50 = vadd.f32 %v4442_v38, %v454_v62  ;;  %v648_v17 = vadd.f32 %v3347_v49, %v583_v29  ;;  %v647_v19 = vadd.f32 %v3351_v44, %v582_v47  ;;  %v1129_v1 = vadd.f32 %v4443_v63, %v1045_v23  ;;  %v4446_v22 = vld [vmem:[#allocation41_spill] sm:$0xff]  ;;  %v4447_v29 = vld [vmem:[#allocation111_spill] sm:$0xff]  ;;  %v4448_v47 = vld [vmem:[#allocation112_spill] sm:$0xff] }
 0x1b5   : > { %v1128_v12 = vadd.f32 %v4444_v59, %v1044_v21  ;;  %v625_v36 = vadd.f32 %v4445_v37, %v539_v16  ;;  %v1241_v43 = vmul.f32 %v4435_v31, %v3319_v4  ;;  %v1240_v60 = vmul.f32 %v4436_v41, %v3319_v4  ;;  %v4449_v62 = vld [vmem:[#allocation46_spill] sm:$0xff]  ;;  %v4450_v21 = vld [vmem:[#allocation47_spill] sm:$0xff]  ;;  %v2208_v42 = vld [vmem:[%s2401_s12 + $0x48] sm:$0xff] }
 0x1b6   : > { %v626_v28 = vadd.f32 %v4446_v22, %v540_v50  ;;  %v3504_v27 = vpop.permute.xlu1 %1314  ;;  %v3506_v49 = vpop.permute.xlu0 %1272  ;;  %v1213_v44 = vadd.f32 %v4447_v29, %v1129_v1  ;;  %v1234_v13 = vadd.f32 %v1227_v51, %v1171_v8  ;;  %v1233_v30 = vadd.f32 %v1226_v58, %v1170_v32  ;;  %v4451_v41 = vld [vmem:[#allocation15_spill] sm:$0xff]  ;;  %v4452_v32 = vld [vmem:[#allocation62_spill] sm:$0xff] }
 0x1b7   : > { %v1212_v9 = vadd.f32 %v4448_v47, %v1128_v12  ;;  %v706_v23 = vadd.f32 %v4449_v62, %v648_v17  ;;  %v705_v7 = vadd.f32 %v4450_v21, %v647_v19  ;;  %v843_v31 = vmul.f32 %v2208_v42, %v3233_v40  ;;  %v4453_v50 = vld [vmem:[#allocation63_spill] sm:$0xff] }
 0x1b8   : > { %v850_v33 = vmul.f32 %v2208_v42, %v3239_v61  ;;  %v417_v25 = vadd.f32 %v4451_v41, %v3422_v46  ;;  %v1025_v0 = vmul.f32 %v2615_v24, %v3257_v56  ;;  %v1290_v16 = vadd.f32 %v3395_v52, %v1234_v13  ;;  %v4454_v24 = vld [vmem:[#allocation52_spill] sm:$0xff]  ;;  %v4455_v52 = vld [vmem:[#allocation55_spill] sm:$0xff] }
 0x1b9   : > { %v1289_v51 = vadd.f32 %v3397_v39, %v1233_v30  ;;  %v662_v58 = vadd.f32 %v3371_v6, %v625_v36  ;;  %v663_v8 = vadd.f32 %v3389_v11, %v626_v28  ;;  %v792_v38 = vadd.f32 %v4452_v32, %v706_v23  ;;  %v4456_v39 = vld [vmem:[#allocation78_spill] sm:$0xff]  ;;  %v4457_v6 = vld [vmem:[#allocation83_spill] sm:$0xff]  ;;  %v4462_v41 = vld [vmem:[#allocation120_spill] sm:$0xff] }
 0x1ba   : > { %v791_v17 = vadd.f32 %v4453_v50, %v705_v7  ;;  %v1355_v19 = vpop.permute.xlu1 %1354  ;;  %v1353_v63 = vpop.permute.xlu0 %1352  ;;  %v1248_v1 = vadd.f32 %v1241_v43, %v1213_v44  ;;  %v1247_v46 = vadd.f32 %v1240_v60, %v1212_v9  ;;  %v892_v29 = vadd.f32 %v4456_v39, %v843_v31  ;;  %v4458_v43 = vld [vmem:[#allocation68_spill] sm:$0xff]  ;;  %v4460_v30 = vld [vmem:[#allocation91_spill] sm:$0xff]  ;;  %v2209_v23 = vld [vmem:[%s2401_s12 + $0x11] sm:$0xff] }
 0x1bb   : > { %v1374_v59 = vadd.f32 %v1355_v19, %v1290_v16  ;;  %v1373_v12 = vadd.f32 %v1353_v63, %v1289_v51  ;;  %v748_v37 = vadd.f32 %v4454_v24, %v662_v58  ;;  %v749_v22 = vadd.f32 %v4455_v52, %v663_v8  ;;  %v4459_v44 = vld [vmem:[#allocation72_spill] sm:$0xff]  ;;  %v4461_v31 = vld [vmem:[#allocation97_spill] sm:$0xff]  ;;  %v4465_v32 = vld [vmem:[#allocation122_spill] sm:$0xff] }
 0x1bc   : > { %v934_v36 = vadd.f32 %v4457_v6, %v850_v33  ;;  %v1332_v11 = vadd.f32 %v3425_v10, %v1248_v1  ;;  %v1331_v28 = vadd.f32 %v3427_v5, %v1247_v46  ;;  %v976_v62 = vadd.f32 %v4460_v30, %v892_v29  ;;  %v4463_v16 = vld [vmem:[#allocation9_spill] sm:$0xff]  ;;  %v4466_v50 = vld [vmem:[#allocation123_spill] sm:$0xff]  ;;  %v4467_v19 = vld [vmem:[#allocation124_spill] sm:$0xff] }
 0x1bd   : > { %v3531_v47 = vmax.f32 %v792_v38, %v1374_v59  ;;  %v3533_v13 = vmax.f32 %v791_v17, %v1373_v12  ;;  %v834_v60 = vadd.f32 %v4458_v43, %v748_v37  ;;  %v835_v9 = vadd.f32 %v4459_v44, %v749_v22  ;;  %v4464_v58 = vld [vmem:[#allocation121_spill] sm:$0xff]  ;;  %v4468_v24 = vld [vmem:[#allocation16_spill] sm:$0xff]  ;;  %v4475_v44 = vld [vmem:[#allocation26_spill] sm:$0xff] }
 0x1be   : > { %v1039_v21 = vmul.f32 %v2209_v23, %v3274_v3  ;;  %v1397_v7 = vpop.permute.xlu1 %1396  ;;  %v1395_v42 = vpop.permute.xlu0 %1394  ;;  %v1018_v10 = vadd.f32 %v4461_v31, %v934_v36  ;;  %v334_v51 = vadd.f32 %v4463_v16, %v4462_v41  ;;  %v441_v8 = vadd.f32 %v4464_v58, %v3464_v53  ;;  %v2210_v1 = vld [vmem:[%s2401_s12 + $0x50] sm:$0xff]  ;;  %v2211_v6 = vld [vmem:[%s2401_s12 + $0x60] sm:$0xff]  ;;  %v2212_v30 = vld [vmem:[%s2401_s12 + $0x58] sm:$0xff] }
 0x1bf   : > { %v1416_v33 = vadd.f32 %v1397_v7, %v1332_v11  ;;  %v1415_v5 = vadd.f32 %v1395_v42, %v1331_v28  ;;  %1445 = vrot.lane.b32.xlu1 %v3531_v47, %s2302_s14  ;;  %1443 = vrot.lane.b32.xlu0 %v3533_v13, %s2302_s14  ;;  %v440_v38 = vadd.f32 %v4465_v32, %v3467_v48  ;;  %v4469_v53 = vld [vmem:[#allocation17_spill] sm:$0xff]  ;;  %v4470_v48 = vld [vmem:[#allocation126_spill] sm:$0xff]  ;;  %v4477_v7 = vld [vmem:[#allocation108_spill] sm:$0xff] }
 0x1c0   : > { %v443_v17 = vadd.f32 %v4466_v50, %v3470_v35  ;;  %v442_v63 = vadd.f32 %v4467_v19, %v376_v2  ;;  %v844_v46 = vmul.f32 %v2210_v1, %v3233_v40  ;;  %v419_v37 = vadd.f32 %v4468_v24, %v3437_v54  ;;  %v4471_v35 = vld [vmem:[#allocation127_spill] sm:$0xff]  ;;  %v4474_v43 = vld [vmem:[#allocation21_spill] sm:$0xff]  ;;  %v4478_v31 = vld [vmem:[#allocation128_spill] sm:$0xff] }
 0x1c1   : > { %v3556_v59 = vmax.f32 %v835_v9, %v1416_v33  ;;  %v3558_v12 = vmax.f32 %v834_v60, %v1415_v5  ;;  %v418_v52 = vadd.f32 %v4469_v53, %v3441_v57  ;;  %v3566_v22 = vadd.f32 %v4470_v48, %v3490_v14  ;;  %v4472_v57 = vld [vmem:[#allocation18_spill] sm:$0xff]  ;;  %v4480_v5 = vld [vmem:[#allocation35_spill] sm:$0xff]  ;;  %v4481_v16 = vld [vmem:[#allocation40_spill] sm:$0xff] }
 0x1c2   : > { %v455_v2 = vadd.f32 %v4471_v35, %v417_v25  ;;  %v3569_v39 = vpop.permute.xlu1 %1119  ;;  %v3571_v29 = vpop.permute.xlu0 %1077  ;;  %v3575_v36 = vmul.f32 %v2211_v6, %v3233_v40  ;;  %v1046_v11 = vadd.f32 %v1039_v21, %v1018_v10  ;;  %v1032_v54 = vadd.f32 %v1025_v0, %v976_v62  ;;  %v4473_v25 = vld [vmem:[#allocation19_spill] sm:$0xff]  ;;  %v4483_v19 = vld [vmem:[#allocation116_spill] sm:$0xff]  ;;  %v4484_v24 = vld [vmem:[#allocation70_spill] sm:$0xff] }
 0x1c3   : > { %1480 = vrot.lane.b32.xlu1 %v3556_v59, %s2302_s14  ;;  %1478 = vrot.lane.b32.xlu0 %v3558_v12, %s2302_s14  ;;  %v421_v14 = vadd.f32 %v4472_v57, %v3461_v45  ;;  %v420_v28 = vadd.f32 %v4473_v25, %v334_v51  ;;  %v498_v60 = vadd.f32 %v4474_v43, %v440_v38  ;;  %v4476_v62 = vld [vmem:[#allocation107_spill] sm:$0xff]  ;;  %v4479_v45 = vld [vmem:[#allocation129_spill] sm:$0xff]  ;;  %v4487_v25 = vld [vmem:[#allocation20_spill] sm:$0xff] }
 0x1c4   : > { %v541_v9 = vadd.f32 %v4475_v44, %v455_v2  ;;  %v845_v23 = vmul.f32 %v2212_v30, %v3233_v40  ;;  %v851_v0 = vmul.f32 %v2210_v1, %v3239_v61  ;;  %v1130_v21 = vadd.f32 %v4476_v62, %v1046_v11  ;;  %v4482_v38 = vld [vmem:[#allocation115_spill] sm:$0xff]  ;;  %v4486_v35 = vld [vmem:[#allocation133_spill] sm:$0xff]  ;;  %v2213_v11 = vld [vmem:[%s2401_s12 + $0x68] sm:$0x3] }
 0x1c5   : > { %v1088_v42 = vadd.f32 %v4477_v7, %v1032_v54  ;;  %v3592_v10 = vadd.f32 %v4478_v31, %v419_v37  ;;  %v456_v33 = vadd.f32 %v4479_v45, %v418_v52  ;;  %v584_v41 = vadd.f32 %v4480_v5, %v498_v60  ;;  %v4485_v52 = vld [vmem:[#allocation130_spill] sm:$0xff]  ;;  %v4488_v60 = vld [vmem:[#allocation77_spill] sm:$0xff]  ;;  %v4490_v7 = vld [vmem:[#allocation135_spill] sm:$0xff] }
 0x1c6   : > { %v627_v51 = vadd.f32 %v4481_v16, %v541_v9  ;;  %v3597_v58 = vpop.permute.xlu1 %1201  ;;  %v3599_v32 = vpop.permute.xlu0 %1159  ;;  %v1214_v50 = vadd.f32 %v4482_v38, %v1130_v21  ;;  %v1242_v53 = vmul.f32 %v4484_v24, %v3319_v4  ;;  %v1228_v37 = vmul.f32 %v4484_v24, %v3304_v34  ;;  %v4489_v9 = vld [vmem:[#allocation86_spill] sm:$0xff] }
 0x1c7   : > { %v1172_v1 = vadd.f32 %v4483_v19, %v1088_v42  ;;  %v459_v48 = vadd.f32 %v4485_v52, %v421_v14  ;;  %v458_v2 = vadd.f32 %v4486_v35, %v420_v28  ;;  %v3611_v54 = vmul.f32 %v2213_v11, %v3233_v40  ;;  %v4491_v14 = vld [vmem:[#allocation139_spill] sm:$0xff]  ;;  %v4494_v24 = vld [vmem:[#allocation22_spill] sm:$0xff] }
 0x1c8   : > { %v852_v57 = vmul.f32 %v2212_v30, %v3239_v61  ;;  %v499_v43 = vadd.f32 %v4487_v25, %v441_v8  ;;  %v893_v44 = vadd.f32 %v4488_v60, %v844_v46  ;;  %v935_v62 = vadd.f32 %v4489_v9, %v851_v0  ;;  %v2214_v28 = vld [vmem:[%s2401_s12 + $0x19] sm:$0xff]  ;;  %v4493_v0 = vld [vmem:[#allocation100_spill] sm:$0xff] }
 0x1c9   : > { %v3618_v21 = vmul.f32 %v2213_v11, %v3239_v61  ;;  %v649_v42 = vadd.f32 %v4490_v7, %v584_v41  ;;  %v664_v31 = vadd.f32 %v4491_v14, %v627_v51  ;;  %v1040_v45 = vmul.f32 %v2214_v28, %v3274_v3  ;;  %v4492_v8 = vld [vmem:[#allocation90_spill] sm:$0xff]  ;;  %v4495_v51 = vld [vmem:[#allocation49_spill] sm:$0xff]  ;;  %v4497_v60 = vld [vmem:[#allocation23_spill] sm:$0xff] }
 0x1ca   : > { %v1026_v40 = vmul.f32 %v2214_v28, %v3257_v56  ;;  %v3625_v5 = vpop.permute.xlu1 %1316  ;;  %v3627_v30 = vpop.permute.xlu0 %1274  ;;  %v977_v46 = vadd.f32 %v4492_v8, %v893_v44  ;;  %v1019_v16 = vadd.f32 %v4493_v0, %v935_v62  ;;  %v1249_v38 = vadd.f32 %v1242_v53, %v1214_v50  ;;  %v4496_v35 = vld [vmem:[#allocation54_spill] sm:$0xff]  ;;  %v4498_v7 = vld [vmem:[#allocation29_spill] sm:$0xff]  ;;  %v2215_v8 = vld [vmem:[%s2401_s12 + $0x21] sm:$0xff] }
 0x1cb   : > { %v1235_v19 = vadd.f32 %v1228_v37, %v1172_v1  ;;  %v3632_v41 = vadd.f32 %v4494_v24, %v443_v17  ;;  %v707_v52 = vadd.f32 %v4495_v51, %v649_v42  ;;  %v750_v11 = vadd.f32 %v4496_v35, %v664_v31  ;;  %v4499_v62 = vld [vmem:[#allocation34_spill] sm:$0xff]  ;;  %v4500_v1 = vld [vmem:[#allocation65_spill] sm:$0xff]  ;;  %v4501_v17 = vld [vmem:[#allocation71_spill] sm:$0xff] }
 0x1cc   : > { %v853_v25 = vmul.f32 %v2211_v6, %v3239_v61  ;;  %v500_v9 = vadd.f32 %v4497_v60, %v442_v63  ;;  %v542_v14 = vadd.f32 %v4498_v7, %v456_v33  ;;  %v1333_v28 = vadd.f32 %v3504_v27, %v1249_v38  ;;  %v4502_v33 = vld [vmem:[#allocation43_spill] sm:$0xff]  ;;  %v4503_v27 = vld [vmem:[#allocation81_spill] sm:$0xff] }
 0x1cd   : > { %v1291_v44 = vadd.f32 %v3506_v49, %v1235_v19  ;;  %v585_v50 = vadd.f32 %v4499_v62, %v499_v43  ;;  %v793_v53 = vadd.f32 %v4500_v1, %v707_v52  ;;  %v836_v37 = vadd.f32 %v4501_v17, %v750_v11  ;;  %v4504_v49 = vld [vmem:[#allocation85_spill] sm:$0xff]  ;;  %v4506_v11 = vld [vmem:[#allocation114_spill] sm:$0xff]  ;;  %v4511_v1 = vld [vmem:[#allocation99_spill] sm:$0xff] }
 0x1ce   : > { %v1027_v42 = vmul.f32 %v2215_v8, %v3257_v56  ;;  %v1399_v31 = vpop.permute.xlu1 %1398  ;;  %v1357_v0 = vpop.permute.xlu0 %1356  ;;  %v1047_v61 = vadd.f32 %v1040_v45, %v1019_v16  ;;  %v1033_v6 = vadd.f32 %v1026_v40, %v977_v46  ;;  %v628_v51 = vadd.f32 %v4502_v33, %v542_v14  ;;  %v4505_v52 = vld [vmem:[#allocation113_spill] sm:$0xff]  ;;  %v4509_v46 = vld [vmem:[#allocation94_spill] sm:$0xff]  ;;  %v4510_v14 = vld [vmem:[#allocation79_spill] sm:$0xff] }
 0x1cf   : > { %v1417_v63 = vadd.f32 %v1399_v31, %v1333_v28  ;;  %v1375_v24 = vadd.f32 %v1357_v0, %v1291_v44  ;;  %v894_v38 = vadd.f32 %v4503_v27, %v845_v23  ;;  %v936_v19 = vadd.f32 %v4504_v49, %v852_v57  ;;  %v4508_v45 = vld [vmem:[#allocation37_spill] sm:$0xff] }
 0x1d0   : > { %v1041_v43 = vmul.f32 %v2215_v8, %v3274_v3  ;;  %v1131_v35 = vadd.f32 %v4505_v52, %v1047_v61  ;;  %v1089_v60 = vadd.f32 %v4506_v11, %v1033_v6  ;;  %v586_v40 = vadd.f32 %v4508_v45, %v500_v9  ;;  %v4513_v8 = vld [vmem:[#allocation132_spill] sm:$0xff]  ;;  %v4514_v9 = vld [vmem:[#allocation25_spill] sm:$0xff]  ;;  %v4520_v45 = vld [vmem:[#allocation42_spill] sm:$0xff] }
 0x1d1   : > { %v3652_v7 = vmax.f32 %v836_v37, %v1417_v63  ;;  %v3654_v62 = vmax.f32 %v793_v53, %v1375_v24  ;;  %v978_v16 = vadd.f32 %v4509_v46, %v894_v38  ;;  %v1243_v23 = vmul.f32 %v4510_v14, %v3319_v4  ;;  %v4512_v37 = vld [vmem:[#allocation131_spill] sm:$0xff]  ;;  %v4515_v61 = vld [vmem:[#allocation28_spill] sm:$0xff]  ;;  %v4516_v63 = vld [vmem:[#allocation134_spill] sm:$0xff] }
 0x1d2   : > { %v1229_v57 = vmul.f32 %v4510_v14, %v3304_v34  ;;  %v3662_v28 = vpop.permute.xlu1 %1203  ;;  %v3664_v44 = vpop.permute.xlu0 %1161  ;;  %v1020_v17 = vadd.f32 %v4511_v1, %v936_v19  ;;  %v1215_v53 = vadd.f32 %v4512_v37, %v1131_v35  ;;  %v1173_v31 = vadd.f32 %v4513_v8, %v1089_v60  ;;  %v4517_v33 = vld [vmem:[#allocation141_spill] sm:$0xff]  ;;  %v4518_v38 = vld [vmem:[#allocation30_spill] sm:$0xff]  ;;  %v4519_v19 = vld [vmem:[#allocation31_spill] sm:$0xff] }
 0x1d3   : > { %4507 = vst [vmem:[#allocation95_spill] sm:$0xff] %v3654_v62  ;;  %1482 = vrot.lane.b32.xlu1 %v3652_v7, %s2302_s14  ;;  %1447 = vrot.lane.b32.xlu0 %v3654_v62, %s2302_s14  ;;  %v3675_v0 = vadd.f32 %v4514_v9, %v3566_v22  ;;  %v543_v6 = vadd.f32 %v4515_v61, %v3592_v10  ;;  %v2216_v35 = vld [vmem:[%s2401_s12 + $0x29] sm:$0xff] }
 0x1d4   : > { %v650_v24 = vadd.f32 %v4516_v63, %v585_v50  ;;  %v665_v27 = vadd.f32 %v4517_v33, %v628_v51  ;;  %v3682_v49 = vadd.f32 %v4518_v38, %v459_v48  ;;  %v544_v52 = vadd.f32 %v4519_v19, %v458_v2  ;;  %v4521_v46 = vld [vmem:[#allocation48_spill] sm:$0xff]  ;;  %v4522_v1 = vld [vmem:[#allocation137_spill] sm:$0xff] }
 0x1d5   : > { %v1042_v11 = vmul.f32 %v2216_v35, %v3274_v3  ;;  %v1028_v60 = vmul.f32 %v2216_v35, %v3257_v56  ;;  %v629_v22 = vadd.f32 %v4520_v45, %v543_v6  ;;  %v651_v10 = vadd.f32 %v4522_v1, %v586_v40  ;;  %v4523_v37 = vld [vmem:[#allocation57_spill] sm:$0xff]  ;;  %v4524_v2 = vld [vmem:[#allocation64_spill] sm:$0xff]  ;;  %v4528_v45 = vld [vmem:[#allocation118_spill] sm:$0xff] }
 0x1d6   : > { %v708_v14 = vadd.f32 %v4521_v46, %v650_v24  ;;  %v751_v50 = vadd.f32 %v4523_v37, %v665_v27  ;;  %v1319_v8 = vpop.permute.xlu1 %1318  ;;  %v1277_v51 = vpop.permute.xlu0 %1276  ;;  %v1048_v9 = vadd.f32 %v1041_v43, %v1020_v17  ;;  %v1034_v48 = vadd.f32 %v1027_v42, %v978_v16  ;;  %v4525_v38 = vld [vmem:[#allocation80_spill] sm:$0xff]  ;;  %v4529_v46 = vld [vmem:[#allocation119_spill] sm:$0xff]  ;;  %v4530_v16 = vld [vmem:[#allocation74_spill] sm:$0xff] }
 0x1d7   : > { %v1250_v61 = vadd.f32 %v1243_v23, %v1215_v53  ;;  %v1236_v63 = vadd.f32 %v1229_v57, %v1173_v31  ;;  %v895_v19 = vadd.f32 %v4525_v38, %v3575_v36  ;;  %v4526_v35 = vld [vmem:[#allocation88_spill] sm:$0xff]  ;;  %v4531_v57 = vld [vmem:[#allocation93_spill] sm:$0xff]  ;;  %v4532_v53 = vld [vmem:[#allocation102_spill] sm:$0xff] }
 0x1d8   : > { %v794_v33 = vadd.f32 %v4524_v2, %v708_v14  ;;  %v937_v62 = vadd.f32 %v4526_v35, %v853_v25  ;;  %v4527_v6 = vld [vmem:[#allocation84_spill] sm:$0xff]  ;;  %v1132_v40 = vadd.f32 %v4528_v45, %v1048_v9  ;;  %v1090_v27 = vadd.f32 %v4529_v46, %v1034_v48  ;;  %v4535_v38 = vld [vmem:[#allocation51_spill] sm:$0xff] }
 0x1d9   : > { %v1244_v24 = vmul.f32 %v4527_v6, %v3319_v4  ;;  %v1334_v43 = vadd.f32 %v3625_v5, %v1250_v61  ;;  %v1292_v42 = vadd.f32 %v3627_v30, %v1236_v63  ;;  %v837_v23 = vadd.f32 %v4530_v16, %v751_v50  ;;  %v4533_v5 = vld [vmem:[#allocation140_spill] sm:$0xff]  ;;  %v4534_v30 = vld [vmem:[#allocation82_spill] sm:$0xff]  ;;  %v4536_v35 = vld [vmem:[#allocation87_spill] sm:$0xff] }
 0x1da   : > { %v979_v17 = vadd.f32 %v4531_v57, %v895_v19  ;;  %v1021_v36 = vadd.f32 %v4532_v53, %v937_v62  ;;  %v1230_v25 = vmul.f32 %v4527_v6, %v3304_v34  ;;  %v1401_v31 = vpop.permute.xlu1 %1400  ;;  %v1359_v14 = vpop.permute.xlu0 %1358  ;;  %v1216_v1 = vadd.f32 %v3482_v18, %v1132_v40  ;;  %v2217_v63 = vld [vmem:[%s2401_s12 + $0x31] sm:$0x3]  ;;  %v4537_v45 = vld [vmem:[#allocation56_spill] sm:$0xff]  ;;  %v4542_v53 = vld [vmem:[#allocation67_spill] sm:$0xff] }
 0x1db   : > { %v1174_v37 = vadd.f32 %v3484_v55, %v1090_v27  ;;  %v1418_v9 = vadd.f32 %v1401_v31, %v1334_v43  ;;  %v1376_v48 = vadd.f32 %v1359_v14, %v1292_v42  ;;  %v666_v61 = vadd.f32 %v4533_v5, %v629_v22  ;;  %v4538_v22 = vld [vmem:[#allocation96_spill] sm:$0xff] }
 0x1dc   : > { %v896_v50 = vadd.f32 %v4534_v30, %v3611_v54  ;;  %v1043_v2 = vmul.f32 %v2217_v63, %v3274_v3  ;;  %v1029_v62 = vmul.f32 %v2217_v63, %v3257_v56  ;;  %v709_v19 = vadd.f32 %v4535_v38, %v651_v10  ;;  %v4539_v3 = vld [vmem:[#allocation101_spill] sm:$0xff] }
 0x1dd   : > { %v938_v6 = vadd.f32 %v4536_v35, %v3618_v21  ;;  %v3718_v18 = vmax.f32 %v837_v23, %v1418_v9  ;;  %v3720_v55 = vmax.f32 %v794_v33, %v1376_v48  ;;  %v752_v40 = vadd.f32 %v4537_v45, %v666_v61  ;;  %v4540_v21 = vld [vmem:[#allocation36_spill] sm:$0xff]  ;;  %v4541_v33 = vld [vmem:[#allocation45_spill] sm:$0xff] }
 0x1de   : > { %v980_v46 = vadd.f32 %v4538_v22, %v896_v50  ;;  %v1049_v27 = vadd.f32 %v1042_v11, %v1021_v36  ;;  %v1035_v54 = vadd.f32 %v1028_v60, %v979_v17  ;;  %v1321_v43 = vpop.permute.xlu1 %1320  ;;  %v1279_v42 = vpop.permute.xlu0 %1278  ;;  %v1251_v56 = vadd.f32 %v1244_v24, %v1216_v1  ;;  %v4543_v17 = vld [vmem:[#allocation73_spill] sm:$0xff] }
 0x1df   : > { %v1022_v16 = vadd.f32 %v4539_v3, %v938_v6  ;;  %v1237_v57 = vadd.f32 %v1230_v25, %v1174_v37  ;;  %1484 = vrot.lane.b32.xlu1 %v3718_v18, %s2302_s14  ;;  %1449 = vrot.lane.b32.xlu0 %v3720_v55, %s2302_s14  ;;  %v587_v10 = vadd.f32 %v4540_v21, %v3632_v41  ;;  %v4544_v37 = vld [vmem:[#allocation89_spill] sm:$0xff]  ;;  %v4552_v21 = vld [vmem:[#allocation66_spill] sm:$0xff] }
 0x1e0   : > { %v630_v23 = vadd.f32 %v4541_v33, %v544_v52  ;;  %v795_v11 = vadd.f32 %v4542_v53, %v709_v19  ;;  %v1133_v60 = vadd.f32 %v3453_v20, %v1049_v27  ;;  %v838_v36 = vadd.f32 %v4543_v17, %v752_v40 }
 0x1e1   : > { %v1091_v24 = vadd.f32 %v3455_v26, %v1035_v54  ;;  %v1335_v25 = vadd.f32 %v1319_v8, %v1251_v56  ;;  %v1293_v31 = vadd.f32 %v1277_v51, %v1237_v57  ;;  %v1036_v14 = vadd.f32 %v1029_v62, %v980_v46  ;;  %v4545_v26 = vld [vmem:[#allocation39_spill] sm:$0xff]  ;;  %v4546_v51 = vld [vmem:[#allocation44_spill] sm:$0xff]  ;;  %v4551_v56 = vld [vmem:[#allocation138_spill] sm:$0xff] }
 0x1e2   : > { %v1217_v1 = vadd.f32 %v3597_v58, %v1133_v60  ;;  %v1245_v9 = vmul.f32 %v4544_v37, %v3319_v4  ;;  %v1231_v41 = vmul.f32 %v4544_v37, %v3304_v34  ;;  %v1403_v52 = vpop.permute.xlu1 %1402  ;;  %v1361_v48 = vpop.permute.xlu0 %1360  ;;  %v1050_v5 = vadd.f32 %v1043_v2, %v1022_v16  ;;  %v4547_v58 = vld [vmem:[#allocation136_spill] sm:$0xff]  ;;  %v4550_v54 = vld [vmem:[#allocation59_spill] sm:$0xff]  ;;  %v4556_v37 = vld [vmem:[#allocation69_spill] sm:$0xff] }
 0x1e3   : > { %v1175_v20 = vadd.f32 %v3599_v32, %v1091_v24  ;;  %v1419_v61 = vadd.f32 %v1403_v52, %v1335_v25  ;;  %v1377_v30 = vadd.f32 %v1361_v48, %v1293_v31  ;;  %v588_v8 = vadd.f32 %v4545_v26, %v3675_v0  ;;  %v4548_v0 = vld [vmem:[#allocation92_spill] sm:$0xff]  ;;  %v4555_v25 = vld [vmem:[#allocation58_spill] sm:$0xff]  ;;  %v4557_v48 = vld [vmem:[#allocation75_spill] sm:$0xff] }
 0x1e4   : > { %v631_v50 = vadd.f32 %v4546_v51, %v3682_v49  ;;  %v652_v62 = vadd.f32 %v4547_v58, %v587_v10  ;;  %v661_v38 = vmul.f32 %v2217_v63, %v3319_v4  ;;  %v1134_v19 = vadd.f32 %v3569_v39, %v1050_v5  ;;  %v4553_v10 = vld [vmem:[#allocation76_spill] sm:$0xff] }
 0x1e5   : > { %v1092_v35 = vadd.f32 %v3571_v29, %v1036_v14  ;;  %v3750_v6 = vmax.f32 %v838_v36, %v1419_v61  ;;  %v3752_v2 = vmax.f32 %v795_v11, %v1377_v30  ;;  %v667_v32 = vadd.f32 %v3407_v15, %v630_v23  ;;  %v4549_v15 = vld [vmem:[#allocation50_spill] sm:$0xff]  ;;  %v4554_v36 = vld [vmem:[#allocation53_spill] sm:$0xff] }
 0x1e6   : > { %v1252_v45 = vadd.f32 %v1245_v9, %v1217_v1  ;;  %v1246_v40 = vmul.f32 %v4548_v0, %v3319_v4  ;;  %v1323_v22 = vpop.permute.xlu1 %1322  ;;  %v1232_v49 = vmul.f32 %v4548_v0, %v3304_v34  ;;  %v1281_v46 = vpop.permute.xlu0 %1280  ;;  %v1218_v63 = vadd.f32 %v3662_v28, %v1134_v19  ;;  %v1506_v19 = vld [vmem:[%s4268_s2] sm:$0xff] }
 0x1e7   : > { %v1176_v39 = vadd.f32 %v3664_v44, %v1092_v35  ;;  %v1238_v29 = vadd.f32 %v1231_v41, %v1175_v20  ;;  %1486 = vrot.lane.b32.xlu1 %v3750_v6, %s2302_s14  ;;  %1451 = vrot.lane.b32.xlu0 %v3752_v2, %s2302_s14  ;;  %v710_v27 = vadd.f32 %v4549_v15, %v652_v62  ;;  %v1507_v62 = vld [vmem:[%s4268_s2 + $0x8] sm:$0xff]  ;;  %v2081_v15 = vld [vmem:[%s4268_s2 + $0x190] sm:$0xff] }
 0x1e8   : > { %v753_v4 = vadd.f32 %v4550_v54, %v667_v32  ;;  %v1336_v3 = vadd.f32 %v1321_v43, %v1252_v45  ;;  %v653_v34 = vadd.f32 %v4551_v56, %v588_v8  ;;  %v668_v57 = vadd.f32 %v661_v38, %v631_v50  ;;  %v2067_v38 = vld [vmem:[%s4268_s2 + $0x158] sm:$0xff]  ;;  %v2080_v45 = vld [vmem:[%s4268_s2 + $0x188] sm:$0xff] }
 0x1e9   : > { %v1294_v16 = vadd.f32 %v1279_v42, %v1238_v29  ;;  %v796_v28 = vadd.f32 %v4552_v21, %v710_v27  ;;  %v1253_v53 = vadd.f32 %v1246_v40, %v1218_v63  ;;  %v1239_v11 = vadd.f32 %v1232_v49, %v1176_v39  ;;  %v2073_v63 = vld [vmem:[%s4268_s2 + $0x38] sm:$0xff] }
 0x1ea   : > { %v839_v44 = vadd.f32 %v4553_v10, %v753_v4  ;;  %v1405_v33 = vpop.permute.xlu1 %1404  ;;  %v1363_v23 = vpop.permute.xlu0 %1362  ;;  %v711_v24 = vadd.f32 %v4554_v36, %v653_v34  ;;  %v754_v31 = vadd.f32 %v4555_v25, %v668_v57  ;;  %v2095_v10 = vld [vmem:[%s4268_s2 + $0x1c8] sm:$0xff] }
 0x1eb   : > { %v1420_v60 = vadd.f32 %v1405_v33, %v1336_v3  ;;  %v1378_v17 = vadd.f32 %v1363_v23, %v1294_v16  ;;  %v1337_v14 = vadd.f32 %v1323_v22, %v1253_v53  ;;  %v1295_v43 = vadd.f32 %v1281_v46, %v1239_v11  ;;  %v2087_v46 = vld [vmem:[%s4268_s2 + $0x70] sm:$0xff]  ;;  %v2074_v16 = vld [vmem:[%s4268_s2 + $0x40] sm:$0xff]  ;;  %v2088_v33 = vld [vmem:[%s4268_s2 + $0x78] sm:$0xff] }
 0x1ec   : > { %v797_v9 = vadd.f32 %v4556_v37, %v711_v24  ;;  %v840_v5 = vadd.f32 %v4557_v48, %v754_v31  ;;  %v2075_v25 = vld [vmem:[%s4268_s2 + $0x48] sm:$0xff]  ;;  %v2109_v31 = vld [vmem:[%s4268_s2 + $0x200] sm:$0xff] }
 0x1ed   : > { %v3772_v42 = vmax.f32 %v839_v44, %v1420_v60  ;;  %v3774_v1 = vmax.f32 %v796_v28, %v1378_v17 }
 0x1ee   : > { %v1407_v41 = vpop.permute.xlu1 %1406  ;;  %v1365_v52 = vpop.permute.xlu0 %1364 }
 0x1ef   : > { %v1421_v20 = vadd.f32 %v1407_v41, %v1337_v14  ;;  %v1379_v61 = vadd.f32 %v1365_v52, %v1295_v43  ;;  %1488 = vrot.lane.b32.xlu1 %v3772_v42, %s2302_s14  ;;  %1453 = vrot.lane.b32.xlu0 %v3774_v1, %s2302_s14  ;;  %v2108_v14 = vld [vmem:[%s4268_s2 + $0x1f8] sm:$0xff]  ;;  %v1508_v41 = vld [vmem:[%s4268_s2 + $0x10] sm:$0xff] }
 0x1f0   : > { %v2068_v52 = vld [vmem:[%s4268_s2 + $0x160] sm:$0xff] }
 0x1f1   : > { %v3782_v30 = vmax.f32 %v840_v5, %v1421_v20  ;;  %v3784_v26 = vmax.f32 %v797_v9, %v1379_v61  ;;  %v2082_v9 = vld [vmem:[%s4268_s2 + $0x198] sm:$0xff] }
 0x1f2   : > { %v4558_v5 = vld [vmem:[#allocation95_spill] sm:$0xff] }
 0x1f3   : > { %1490 = vrot.lane.b32.xlu1 %v3782_v30, %s2302_s14  ;;  %1455 = vrot.lane.b32.xlu0 %v3784_v26, %s2302_s14  ;;  %s4224_s14 = scalar_lea.hbm %s4270_s4, %s2143_s23 }
 0x231   : > { %v1446_v8 = vpop.permute.xlu1 %1445  ;;  %v1444_v51 = vpop.permute.xlu0 %1443 }
 0x232   : > { %v3791_v50 = vmax.f32 %v3531_v47, %v1446_v8  ;;  %v3794_v58 = vmax.f32 %v3533_v13, %v1444_v51  ;;  %v2066_v47 = vld [vmem:[%s4268_s2 + $0x150] sm:$0xff]  ;;  %v2094_v13 = vld [vmem:[%s4268_s2 + $0x1c0] sm:$0xff] }
 0x233   : > { %v2102_v8 = vld [vmem:[%s4268_s2 + $0xb0] sm:$0xff] }
 0x234   : > { %v1514_v22 = vmul.f32 %v1507_v62, %v3791_v50  ;;  %v1513_v49 = vmul.f32 %v1506_v19, %v3794_v58  ;;  %v1658_v4 = vmul.f32 %v2087_v46, %v3794_v58  ;;  %v1587_v3 = vmul.f32 %v2073_v63, %v3794_v58  ;;  %v2101_v62 = vld [vmem:[%s4268_s2 + $0xa8] sm:$0xff] }
 0x235   : > { %v1481_v35 = vpop.permute.xlu1 %1480  ;;  %v1479_v32 = vpop.permute.xlu0 %1478  ;;  %v1588_v44 = vmul.f32 %v2074_v16, %v3791_v50  ;;  %v1659_v17 = vmul.f32 %v2088_v33, %v3791_v50  ;;  %v1730_v46 = vmul.f32 %v2102_v8, %v3791_v50  ;;  %v1729_v63 = vmul.f32 %v2101_v62, %v3794_v58  ;;  %v1509_v33 = vld [vmem:[%s4268_s2 + $0x18] sm:$0xff]  ;;  %v2130_v62 = vld [vmem:[%s4268_s2 + $0x120] sm:$0xff] }
 0x236   : > { %v3815_v0 = vmax.f32 %v3556_v59, %v1481_v35  ;;  %v3818_v40 = vmax.f32 %v3558_v12, %v1479_v32 }
 0x238   : > { %v1529_v39 = vmul.f32 %v2067_v38, %v3815_v0  ;;  %v1528_v59 = vmul.f32 %v2066_v47, %v3818_v40  ;;  %v1673_v29 = vmul.f32 %v2094_v13, %v3818_v40  ;;  %v1602_v12 = vmul.f32 %v2080_v45, %v3818_v40  ;;  %v2122_v47 = vld [vmem:[%s4268_s2 + $0x230] sm:$0xff]  ;;  %v2089_v13 = vld [vmem:[%s4268_s2 + $0x80] sm:$0xff] }
 0x239   : > { %v1603_v56 = vmul.f32 %v2081_v15, %v3815_v0  ;;  %v1674_v23 = vmul.f32 %v2095_v10, %v3815_v0  ;;  %v1745_v51 = vmul.f32 %v2109_v31, %v3815_v0  ;;  %v1744_v38 = vmul.f32 %v2108_v14, %v3818_v40  ;;  %v2096_v45 = vld [vmem:[%s4268_s2 + $0x1d0] sm:$0xff]  ;;  %v2123_v15 = vld [vmem:[%s4268_s2 + $0x238] sm:$0xff] }
 0x23a   : > { %v1536_v27 = vadd.f32 %v1529_v39, %v1514_v22  ;;  %v1535_v54 = vadd.f32 %v1528_v59, %v1513_v49  ;;  %v1680_v21 = vadd.f32 %v1673_v29, %v1658_v4  ;;  %v1609_v28 = vadd.f32 %v1602_v12, %v1587_v3  ;;  %v2115_v39 = vld [vmem:[%s4268_s2 + $0xe0] sm:$0xff] }
 0x23b   : > { %v1610_v60 = vadd.f32 %v1603_v56, %v1588_v44  ;;  %v1681_v36 = vadd.f32 %v1674_v23, %v1659_v17  ;;  %v1815_v59 = vmul.f32 %v2122_v47, %v3818_v40  ;;  %v1752_v4 = vadd.f32 %v1745_v51, %v1730_v46  ;;  %v2116_v56 = vld [vmem:[%s4268_s2 + $0xe8] sm:$0xff]  ;;  %v2103_v23 = vld [vmem:[%s4268_s2 + $0xb8] sm:$0xff]  ;;  %v2117_v47 = vld [vmem:[%s4268_s2 + $0xf0] sm:$0xff] }
 0x23c   : > { %v1546_v34 = vsel %vm1542_vm0, %v1536_v27, 0.0  ;;  %v1543_v57 = vsel %vm1542_vm0, %v1535_v54, 0.0  ;;  %v1687_v53 = vsel %vm1542_vm0, %v1680_v21, 0.0  ;;  %v1616_v11 = vsel %vm1542_vm0, %v1609_v28, 0.0  ;;  %v2069_v17 = vld [vmem:[%s4268_s2 + $0x168] sm:$0xff]  ;;  %v2129_v51 = vld [vmem:[%s4268_s2 + $0x118] sm:$0xff] }
 0x23d   : > { %1547 = vadd.xlane.f32.xlu1 %v1546_v34  ;;  %1544 = vadd.xlane.f32.xlu0 %v1543_v57  ;;  %v1619_v24 = vsel %vm1542_vm0, %v1610_v60, 0.0  ;;  %v1690_v61 = vsel %vm1542_vm0, %v1681_v36, 0.0  ;;  %v1751_v3 = vadd.f32 %v1744_v38, %v1729_v63  ;;  %v1800_v16 = vmul.f32 %v2115_v39, %v3794_v58  ;;  %v2076_v36 = vld [vmem:[%s4268_s2 + $0x50] sm:$0xff] }
 0x23e   : > { %v1816_v34 = vmul.f32 %v2123_v15, %v3815_v0  ;;  %v1761_v28 = vsel %vm1542_vm0, %v1752_v4, 0.0  ;;  %v1801_v44 = vmul.f32 %v2116_v56, %v3791_v50  ;;  %v2084_v56 = vld [vmem:[%s4268_s2 + $0x1a8] sm:$0xff] }
 0x23f   : > { %v1822_v57 = vadd.f32 %v1815_v59, %v1800_v16  ;;  %v1758_v10 = vsel %vm1542_vm0, %v1751_v3, 0.0  ;;  %v2077_v16 = vld [vmem:[%s4268_s2 + $0x58] sm:$0xff] }
 0x240   : > { %v1823_v14 = vadd.f32 %v1816_v34, %v1801_v44  ;;  %v2138_v44 = vld [vmem:[%s4268_s2 + $0x278] sm:$0xff] }
 0x241   : > { %1688 = vadd.xlane.f32.xlu1 %v1687_v53  ;;  %1617 = vadd.xlane.f32.xlu0 %v1616_v11  ;;  %v2110_v53 = vld [vmem:[%s4268_s2 + $0x208] sm:$0xff] }
 0x245   : > { %v1483_v43 = vpop.permute.xlu1 %1482  ;;  %1620 = vadd.xlane.f32.xlu0 %v1619_v24  ;;  %v1448_v37 = vpop.permute.xlu0 %1447  ;;  %v2083_v24 = vld [vmem:[%s4268_s2 + $0x1a0] sm:$0xff] }
 0x246   : > { %v3874_v48 = vmax.f32 %v3652_v7, %v1483_v43  ;;  %v3877_v20 = vmax.f32 %v4558_v5, %v1448_v37  ;;  %v1829_v43 = vsel %vm1542_vm0, %v1822_v57, 0.0 }
 0x248   : > { %v1589_v7 = vmul.f32 %v2075_v25, %v3877_v20  ;;  %v1604_v19 = vmul.f32 %v2082_v9, %v3874_v48  ;;  %v1515_v35 = vmul.f32 %v1508_v41, %v3877_v20  ;;  %v1530_v32 = vmul.f32 %v2068_v52, %v3874_v48  ;;  %v2136_v52 = vld [vmem:[%s4268_s2 + $0x268] sm:$0xff] }
 0x249   : > { %1691 = vadd.xlane.f32.xlu0 %v1690_v61  ;;  %v1660_v29 = vmul.f32 %v2089_v13, %v3877_v20  ;;  %v1675_v12 = vmul.f32 %v2096_v45, %v3874_v48  ;;  %v1731_v9 = vmul.f32 %v2103_v23, %v3877_v20  ;;  %v1746_v41 = vmul.f32 %v2110_v53, %v3874_v48 }
 0x24a   : > { %v1611_v22 = vadd.f32 %v1604_v19, %v1589_v7  ;;  %v1537_v49 = vadd.f32 %v1530_v32, %v1515_v35  ;;  %v1886_v7 = vmul.f32 %v2136_v52, %v3818_v40  ;;  %v1871_v35 = vmul.f32 %v2129_v51, %v3794_v58  ;;  %v2090_v40 = vld [vmem:[%s4268_s2 + $0x88] sm:$0xff]  ;;  %v2097_v58 = vld [vmem:[%s4268_s2 + $0x1d8] sm:$0xff] }
 0x24b   : > { %v1682_v21 = vadd.f32 %v1675_v12, %v1660_v29  ;;  %v1872_v32 = vmul.f32 %v2130_v62, %v3791_v50  ;;  %v1832_v13 = vsel %vm1542_vm0, %v1823_v14, 0.0  ;;  %v2124_v50 = vld [vmem:[%s4268_s2 + $0x240] sm:$0xff]  ;;  %v1802_v12 = vmul.f32 %v2117_v47, %v3877_v20 }
 0x24c   : > { %v1622_v27 = vsel %vm1542_vm0, %v1611_v22, 0.0  ;;  %v1549_v54 = vsel %vm1542_vm0, %v1537_v49, 0.0  ;;  %v1753_v49 = vadd.f32 %v1746_v41, %v1731_v9  ;;  %v1893_v63 = vadd.f32 %v1886_v7, %v1871_v35  ;;  %v2078_v35 = vld [vmem:[%s4268_s2 + $0x60] sm:$0xff] }
 0x24d   : > { %1623 = vadd.xlane.f32.xlu0 %v1622_v27  ;;  %1550 = vadd.xlane.f32.xlu1 %v1549_v54  ;;  %v1693_v37 = vsel %vm1542_vm0, %v1682_v21, 0.0  ;;  %v1817_v15 = vmul.f32 %v2124_v50, %v3874_v48 }
 0x24e   : > { %v1764_v3 = vsel %vm1542_vm0, %v1753_v49, 0.0  ;;  %v1900_v34 = vsel %vm1542_vm0, %v1893_v63, 0.0 }
 0x251   : > { %v1485_v11 = vpop.permute.xlu1 %1484  ;;  %1762 = vadd.xlane.f32.xlu0 %v1761_v28  ;;  %1759 = vadd.xlane.f32.xlu1 %v1758_v10  ;;  %v1450_v60 = vpop.permute.xlu0 %1449  ;;  %v1824_v28 = vadd.f32 %v1817_v15, %v1802_v12  ;;  %v2131_v10 = vld [vmem:[%s4268_s2 + $0x128] sm:$0xff]  ;;  %v2112_v15 = vld [vmem:[%s4268_s2 + $0x218] sm:$0xff] }
 0x252   : > { %v3941_v25 = vmax.f32 %v3718_v18, %v1485_v11  ;;  %v3944_v31 = vmax.f32 %v3720_v55, %v1450_v60  ;;  %v2137_v18 = vld [vmem:[%s4268_s2 + $0x270] sm:$0xff]  ;;  %v2104_v60 = vld [vmem:[%s4268_s2 + $0xc0] sm:$0xff]  ;;  %v2105_v12 = vld [vmem:[%s4268_s2 + $0xc8] sm:$0xff] }
 0x253   : > { %v1887_v19 = vmul.f32 %v2137_v18, %v3815_v0  ;;  %v1835_v18 = vsel %vm1542_vm0, %v1824_v28, 0.0 }
 0x254   : > { %v1516_v55 = vmul.f32 %v1509_v33, %v3944_v31  ;;  %v1531_v5 = vmul.f32 %v2069_v17, %v3941_v25  ;;  %v1590_v61 = vmul.f32 %v2076_v36, %v3944_v31  ;;  %v1605_v8 = vmul.f32 %v2083_v24, %v3941_v25  ;;  %v2111_v17 = vld [vmem:[%s4268_s2 + $0x210] sm:$0xff] }
 0x255   : > { %1830 = vadd.xlane.f32.xlu0 %v1829_v43  ;;  %1694 = vadd.xlane.f32.xlu1 %v1693_v37  ;;  %v1894_v39 = vadd.f32 %v1887_v19, %v1872_v32  ;;  %v1661_v59 = vmul.f32 %v2090_v40, %v3944_v31  ;;  %v1676_v29 = vmul.f32 %v2097_v58, %v3941_v25  ;;  %v2118_v37 = vld [vmem:[%s4268_s2 + $0xf8] sm:$0xff] }
 0x256   : > { %v1538_v38 = vadd.f32 %v1531_v5, %v1516_v55  ;;  %v1612_v22 = vadd.f32 %v1605_v8, %v1590_v61  ;;  %v1873_v36 = vmul.f32 %v2131_v10, %v3877_v20  ;;  %v1888_v24 = vmul.f32 %v2138_v44, %v3874_v48  ;;  %v2125_v48 = vld [vmem:[%s4268_s2 + $0x248] sm:$0xff]  ;;  %v2091_v20 = vld [vmem:[%s4268_s2 + $0x90] sm:$0xff]  ;;  %v2098_v61 = vld [vmem:[%s4268_s2 + $0x1e0] sm:$0xff] }
 0x257   : > { %v1903_v57 = vsel %vm1542_vm0, %v1894_v39, 0.0  ;;  %v1683_v21 = vadd.f32 %v1676_v29, %v1661_v59  ;;  %v1732_v14 = vmul.f32 %v2104_v60, %v3944_v31  ;;  %v1747_v43 = vmul.f32 %v2111_v17, %v3941_v25  ;;  %v2119_v60 = vld [vmem:[%s4268_s2 + $0x100] sm:$0xff] }
 0x258   : > { %v1552_v45 = vsel %vm1542_vm0, %v1538_v38, 0.0  ;;  %v1625_v4 = vsel %vm1542_vm0, %v1612_v22, 0.0  ;;  %v1895_v8 = vadd.f32 %v1888_v24, %v1873_v36  ;;  %v1803_v51 = vmul.f32 %v2118_v37, %v3944_v31  ;;  %v2071_v22 = vld [vmem:[%s4268_s2 + $0x178] sm:$0xff] }
 0x259   : > { %v1487_v0 = vpop.permute.xlu1 %1486  ;;  %1833 = vadd.xlane.f32.xlu1 %v1832_v13  ;;  %1553 = vadd.xlane.f32.xlu0 %v1552_v45  ;;  %v1452_v46 = vpop.permute.xlu0 %1451  ;;  %v1696_v52 = vsel %vm1542_vm0, %v1683_v21, 0.0  ;;  %v1754_v7 = vadd.f32 %v1747_v43, %v1732_v14  ;;  %v1818_v19 = vmul.f32 %v2125_v48, %v3941_v25  ;;  %v2126_v43 = vld [vmem:[%s4268_s2 + $0x250] sm:$0xff]  ;;  %v2092_v37 = vld [vmem:[%s4268_s2 + $0x98] sm:$0xff] }
 0x25a   : > { %v3989_v27 = vmax.f32 %v3750_v6, %v1487_v0  ;;  %v3992_v54 = vmax.f32 %v3752_v2, %v1452_v46  ;;  %v1510_v6 = vld [vmem:[%s4268_s2 + $0x20] sm:$0xff]  ;;  %v2070_v2 = vld [vmem:[%s4268_s2 + $0x170] sm:$0xff]  ;;  %v1906_v63 = vsel %vm1542_vm0, %v1895_v8, 0.0 }
 0x25b   : > { %v2132_v0 = vld [vmem:[%s4268_s2 + $0x130] sm:$0xff]  ;;  %v2139_v46 = vld [vmem:[%s4268_s2 + $0x280] sm:$0xff]  ;;  %v1767_v39 = vsel %vm1542_vm0, %v1754_v7, 0.0  ;;  %v1825_v59 = vadd.f32 %v1818_v19, %v1803_v51 }
 0x25c   : > { %v1591_v33 = vmul.f32 %v2077_v16, %v3992_v54  ;;  %v1606_v23 = vmul.f32 %v2084_v56, %v3989_v27  ;;  %v1517_v53 = vmul.f32 %v1510_v6, %v3992_v54  ;;  %v1532_v11 = vmul.f32 %v2070_v2, %v3989_v27  ;;  %v2106_v8 = vld [vmem:[%s4268_s2 + $0xd0] sm:$0xff]  ;;  %v2113_v51 = vld [vmem:[%s4268_s2 + $0x220] sm:$0xff] }
 0x25d   : > { %1626 = vadd.xlane.f32.xlu1 %v1625_v4  ;;  %1765 = vadd.xlane.f32.xlu0 %v1764_v3  ;;  %v1662_v13 = vmul.f32 %v2091_v20, %v3992_v54  ;;  %v1677_v45 = vmul.f32 %v2098_v61, %v3989_v27  ;;  %v1874_v16 = vmul.f32 %v2132_v0, %v3944_v31  ;;  %v1838_v10 = vsel %vm1542_vm0, %v1825_v59, 0.0  ;;  %v2086_v31 = vld [vmem:[%s4268_s2 + $0x1b8] sm:$0x3]  ;;  %v2093_v7 = vld [vmem:[%s4268_s2 + $0xa0] sm:$0x3] }
 0x25e   : > { %v1613_v55 = vadd.f32 %v1606_v23, %v1591_v33  ;;  %v1539_v5 = vadd.f32 %v1532_v11, %v1517_v53  ;;  %v1889_v56 = vmul.f32 %v2139_v46, %v3941_v25  ;;  %v2079_v25 = vld [vmem:[%s4268_s2 + $0x68] sm:$0x3]  ;;  %v2100_v19 = vld [vmem:[%s4268_s2 + $0x1f0] sm:$0x3] }
 0x25f   : > { %v1684_v29 = vadd.f32 %v1677_v45, %v1662_v13 }
 0x260   : > { %v1628_v32 = vsel %vm1542_vm0, %v1613_v55, 0.0  ;;  %v1555_v47 = vsel %vm1542_vm0, %v1539_v5, 0.0  ;;  %v1896_v53 = vadd.f32 %v1889_v56, %v1874_v16 }
 0x261   : > { %1901 = vadd.xlane.f32.xlu1 %v1900_v34  ;;  %1904 = vadd.xlane.f32.xlu0 %v1903_v57  ;;  %v1489_v9 = vpop.permute.xlu1 %1488  ;;  %v1454_v41 = vpop.permute.xlu0 %1453  ;;  %v1733_v34 = vmul.f32 %v2105_v12, %v3992_v54  ;;  %v1748_v57 = vmul.f32 %v2112_v15, %v3989_v27  ;;  %v1699_v44 = vsel %vm1542_vm0, %v1684_v29, 0.0 }
 0x262   : > { %v4046_v62 = vmax.f32 %v3772_v42, %v1489_v9  ;;  %v4049_v38 = vmax.f32 %v3774_v1, %v1454_v41  ;;  %v2085_v42 = vld [vmem:[%s4268_s2 + $0x1b0] sm:$0xff]  ;;  %v1511_v1 = vld [vmem:[%s4268_s2 + $0x28] sm:$0xff]  ;;  %v1804_v41 = vmul.f32 %v2119_v60, %v3992_v54  ;;  %v1909_v5 = vsel %vm1542_vm0, %v1896_v53, 0.0 }
 0x263   : > { %v1755_v11 = vadd.f32 %v1748_v57, %v1733_v34  ;;  %v2099_v9 = vld [vmem:[%s4268_s2 + $0x1e8] sm:$0xff] }
 0x264   : > { %v1592_v49 = vmul.f32 %v2078_v35, %v4049_v38  ;;  %v1607_v40 = vmul.f32 %v2085_v42, %v4046_v62  ;;  %v1518_v58 = vmul.f32 %v1511_v1, %v4049_v38  ;;  %v1533_v50 = vmul.f32 %v2071_v22, %v4046_v62 }
 0x265   : > { %1697 = vadd.xlane.f32.xlu1 %v1696_v52  ;;  %1836 = vadd.xlane.f32.xlu0 %v1835_v18  ;;  %v1491_v4 = vpop.permute.xlu1 %1490  ;;  %v1456_v3 = vpop.permute.xlu0 %1455  ;;  %v1819_v52 = vmul.f32 %v2126_v43, %v3989_v27  ;;  %v1663_v18 = vmul.f32 %v2092_v37, %v4049_v38  ;;  %v1678_v55 = vmul.f32 %v2099_v9, %v4046_v62  ;;  %v1770_v48 = vsel %vm1542_vm0, %v1755_v11, 0.0 }
 0x266   : > { %v1614_v6 = vadd.f32 %v1607_v40, %v1592_v49  ;;  %v1540_v2 = vadd.f32 %v1533_v50, %v1518_v58  ;;  %v4091_v21 = vmax.f32 %v3782_v30, %v1491_v4  ;;  %v4094_v28 = vmax.f32 %v3784_v26, %v1456_v3  ;;  %v1512_v30 = vld [vmem:[%s4268_s2 + $0x30] sm:$0x3]  ;;  %v2072_v26 = vld [vmem:[%s4268_s2 + $0x180] sm:$0x3]  ;;  %v2133_v49 = vld [vmem:[%s4268_s2 + $0x138] sm:$0xff] }
 0x267   : > { %v1826_v35 = vadd.f32 %v1819_v52, %v1804_v41  ;;  %v1749_v13 = vmul.f32 %v2113_v51, %v4046_v62  ;;  %v2140_v40 = vld [vmem:[%s4268_s2 + $0x288] sm:$0xff]  ;;  %v2107_v58 = vld [vmem:[%s4268_s2 + $0xd8] sm:$0x3] }
 0x268   : > { %v1631_v33 = vsel %vm1542_vm0, %v1614_v6, 0.0  ;;  %v1558_v23 = vsel %vm1542_vm0, %v1540_v2, 0.0  ;;  %v1593_v17 = vmul.f32 %v2079_v25, %v4094_v28  ;;  %v1608_v36 = vmul.f32 %v2086_v31, %v4091_v21  ;;  %v2114_v50 = vld [vmem:[%s4268_s2 + $0x228] sm:$0x3]  ;;  %v2127_v3 = vld [vmem:[%s4268_s2 + $0x258] sm:$0xff] }
 0x269   : > { %1629 = vadd.xlane.f32.xlu0 %v1628_v32  ;;  %1556 = vadd.xlane.f32.xlu1 %v1555_v47  ;;  %v1519_v24 = vmul.f32 %v1512_v30, %v4094_v28  ;;  %v1534_v14 = vmul.f32 %v2072_v26, %v4091_v21  ;;  %v1685_v32 = vadd.f32 %v1678_v55, %v1663_v18  ;;  %v1841_v0 = vsel %vm1542_vm0, %v1826_v35, 0.0  ;;  %v2120_v4 = vld [vmem:[%s4268_s2 + $0x108] sm:$0xff]  ;;  %v2142_v31 = vld [vmem:[%s4268_s2 + $0x298] sm:$0x3]  ;;  %v2134_v30 = vld [vmem:[%s4268_s2 + $0x140] sm:$0xff] }
 0x26a   : > { %v1615_v20 = vadd.f32 %v1608_v36, %v1593_v17  ;;  %v1734_v47 = vmul.f32 %v2106_v8, %v4049_v38  ;;  %v1664_v1 = vmul.f32 %v2093_v7, %v4094_v28  ;;  %v1679_v22 = vmul.f32 %v2100_v19, %v4091_v21  ;;  %v2135_v25 = vld [vmem:[%s4268_s2 + $0x148] sm:$0x3]  ;;  %v2141_v26 = vld [vmem:[%s4268_s2 + $0x290] sm:$0xff] }
 0x26b   : > { %v1541_v61 = vadd.f32 %v1534_v14, %v1519_v24  ;;  %v1702_v59 = vsel %vm1542_vm0, %v1685_v32, 0.0  ;;  %v1735_v12 = vmul.f32 %v2107_v58, %v4094_v28  ;;  %v1750_v15 = vmul.f32 %v2114_v50, %v4091_v21 }
 0x26c   : > { %v1634_v45 = vsel %vm1561_vm1, %v1615_v20, 0.0  ;;  %v1756_v46 = vadd.f32 %v1749_v13, %v1734_v47  ;;  %v1686_v29 = vadd.f32 %v1679_v22, %v1664_v1  ;;  %v1805_v6 = vmul.f32 %v2120_v4, %v4049_v38 }
 0x26d   : > { %1907 = vadd.xlane.f32.xlu0 %v1906_v63  ;;  %1768 = vadd.xlane.f32.xlu1 %v1767_v39  ;;  %v1562_v42 = vsel %vm1561_vm1, %v1541_v61, 0.0  ;;  %v1875_v63 = vmul.f32 %v2133_v49, %v3992_v54  ;;  %v1890_v39 = vmul.f32 %v2140_v40, %v3989_v27  ;;  %v2121_v27 = vld [vmem:[%s4268_s2 + $0x110] sm:$0x3]  ;;  %v2128_v54 = vld [vmem:[%s4268_s2 + $0x260] sm:$0x3]  ;;  %v1820_v2 = vmul.f32 %v2127_v3, %v4046_v62 }
 0x26e   : > { %v1773_v16 = vsel %vm1542_vm0, %v1756_v46, 0.0  ;;  %v1705_v34 = vsel %vm1561_vm1, %v1686_v29, 0.0  ;;  %v1757_v57 = vadd.f32 %v1750_v15, %v1735_v12  ;;  %v1877_v53 = vmul.f32 %v2135_v25, %v4094_v28 }
 0x26f   : > { %v1897_v56 = vadd.f32 %v1890_v39, %v1875_v63  ;;  %v1892_v11 = vmul.f32 %v2142_v31, %v4091_v21  ;;  %v1876_v36 = vmul.f32 %v2134_v30, %v4049_v38  ;;  %v1891_v24 = vmul.f32 %v2141_v26, %v4046_v62 }
 0x270   : > { %v1776_v60 = vsel %vm1561_vm1, %v1757_v57, 0.0 }
 0x271   : > { %1839 = vadd.xlane.f32.xlu0 %v1838_v10  ;;  %1700 = vadd.xlane.f32.xlu1 %v1699_v44  ;;  %v1806_v10 = vmul.f32 %v2121_v27, %v4094_v28  ;;  %v1821_v44 = vmul.f32 %v2128_v54, %v4091_v21  ;;  %v1899_v37 = vadd.f32 %v1892_v11, %v1877_v53 }
 0x272   : > { %v1898_v9 = vadd.f32 %v1891_v24, %v1876_v36 }
 0x273   : > { %v1828_v17 = vadd.f32 %v1821_v44, %v1806_v10  ;;  %v1918_v28 = vsel %vm1561_vm1, %v1899_v37, 0.0 }
 0x274   : > { %v1915_v21 = vsel %vm1542_vm0, %v1898_v9, 0.0 }
 0x275   : > { %1632 = vadd.xlane.f32.xlu0 %v1631_v33  ;;  %1559 = vadd.xlane.f32.xlu1 %v1558_v23  ;;  %v1912_v33 = vsel %vm1542_vm0, %v1897_v56, 0.0  ;;  %v1827_v23 = vadd.f32 %v1820_v2, %v1805_v6  ;;  %v1847_v14 = vsel %vm1561_vm1, %v1828_v17, 0.0 }
 0x277   : > { %v1844_v43 = vsel %vm1542_vm0, %v1827_v23, 0.0 }
 0x279   : > { %1910 = vadd.xlane.f32.xlu0 %v1909_v5  ;;  %1771 = vadd.xlane.f32.xlu1 %v1770_v48 }
 0x27d   : > { %1635 = vadd.xlane.f32.xlu0 %v1634_v45  ;;  %1563 = vadd.xlane.f32.xlu1 %v1562_v42 }
 0x281   : > { %1842 = vadd.xlane.f32.xlu0 %v1841_v0  ;;  %1703 = vadd.xlane.f32.xlu1 %v1702_v59 }
 0x285   : > { %1774 = vadd.xlane.f32.xlu0 %v1773_v16  ;;  %1706 = vadd.xlane.f32.xlu1 %v1705_v34 }
 0x289   : > { %1777 = vadd.xlane.f32.xlu0 %v1776_v60  ;;  %1913 = vadd.xlane.f32.xlu1 %v1912_v33 }
 0x28d   : > { %1848 = vadd.xlane.f32.xlu0 %v1847_v14  ;;  %1845 = vadd.xlane.f32.xlu1 %v1844_v43 }
 0x291   : > { %1919 = vadd.xlane.f32.xlu0 %v1918_v28  ;;  %1916 = vadd.xlane.f32.xlu1 %v1915_v21 }
 0x2ca   : > { %v1548_v41 = vpop.xlane.xlu1 %1547  ;;  %v1545_v38 = vpop.xlane.xlu0 %1544 }
 0x2cb   : > { %v1565_v52 = vadd.f32 %v1548_v41, %v1545_v38 }
 0x2ce   : > { %v1618_v62 = vpop.xlane.xlu0 %1617  ;;  %v1689_v55 = vpop.xlane.xlu1 %1688 }
 0x2d2   : > { %v1621_v18 = vpop.xlane.xlu0 %1620 }
 0x2d3   : > { %v1637_v46 = vadd.f32 %v1621_v18, %v1618_v62 }
 0x2d6   : > { %v1692_v5 = vpop.xlane.xlu0 %1691 }
 0x2d7   : > { %v1708_v16 = vadd.f32 %v1692_v5, %v1689_v55 }
 0x2da   : > { %v1551_v48 = vpop.xlane.xlu1 %1550  ;;  %v1624_v20 = vpop.xlane.xlu0 %1623 }
 0x2db   : > { %v1566_v59 = vadd.f32 %v1565_v52, %v1551_v48  ;;  %v1638_v29 = vadd.f32 %v1637_v46, %v1624_v20 }
 0x2de   : > { %v1760_v61 = vpop.xlane.xlu1 %1759  ;;  %v1763_v8 = vpop.xlane.xlu0 %1762 }
 0x2df   : > { %v1779_v30 = vadd.f32 %v1763_v8, %v1760_v61 }
 0x2e2   : > { %v1695_v51 = vpop.xlane.xlu1 %1694  ;;  %v1831_v7 = vpop.xlane.xlu0 %1830 }
 0x2e3   : > { %v1709_v44 = vadd.f32 %v1708_v16, %v1695_v51 }
 0x2e6   : > { %v1834_v19 = vpop.xlane.xlu1 %1833  ;;  %v1554_v35 = vpop.xlane.xlu0 %1553 }
 0x2e7   : > { %v1567_v12 = vadd.f32 %v1566_v59, %v1554_v35  ;;  %v1850_v41 = vadd.f32 %v1834_v19, %v1831_v7 }
 0x2ea   : > { %v1627_v32 = vpop.xlane.xlu1 %1626  ;;  %v1766_v47 = vpop.xlane.xlu0 %1765 }
 0x2eb   : > { %v1639_v15 = vadd.f32 %v1638_v29, %v1627_v32  ;;  %v1780_v60 = vadd.f32 %v1779_v30, %v1766_v47 }
 0x2ee   : > { %v1902_v13 = vpop.xlane.xlu1 %1901  ;;  %v1905_v45 = vpop.xlane.xlu0 %1904 }
 0x2ef   : > { %v1921_v32 = vadd.f32 %v1905_v45, %v1902_v13 }
 0x2f2   : > { %v1698_v42 = vpop.xlane.xlu1 %1697  ;;  %v1837_v1 = vpop.xlane.xlu0 %1836 }
 0x2f3   : > { %v1710_v26 = vadd.f32 %v1709_v44, %v1698_v42  ;;  %v1851_v5 = vadd.f32 %v1850_v41, %v1837_v1 }
 0x2f6   : > { %v1557_v22 = vpop.xlane.xlu1 %1556  ;;  %v1630_v49 = vpop.xlane.xlu0 %1629 }
 0x2f7   : > { %v1568_v27 = vadd.f32 %v1567_v12, %v1557_v22  ;;  %v1640_v54 = vadd.f32 %v1639_v15, %v1630_v49 }
 0x2fa   : > { %v1769_v40 = vpop.xlane.xlu1 %1768  ;;  %v1908_v58 = vpop.xlane.xlu0 %1907 }
 0x2fb   : > { %v1781_v14 = vadd.f32 %v1780_v60, %v1769_v40  ;;  %v1922_v40 = vadd.f32 %v1921_v32, %v1908_v58 }
 0x2fe   : > { %v1701_v50 = vpop.xlane.xlu1 %1700  ;;  %v1840_v0 = vpop.xlane.xlu0 %1839 }
 0x2ff   : > { %v1711_v17 = vadd.f32 %v1710_v26, %v1701_v50  ;;  %v1852_v47 = vadd.f32 %v1851_v5, %v1840_v0 }
 0x302   : > { %v1560_v63 = vpop.xlane.xlu1 %1559  ;;  %v1633_v39 = vpop.xlane.xlu0 %1632 }
 0x303   : > { %v1569_v56 = vadd.f32 %v1568_v27, %v1560_v63  ;;  %v1641_v6 = vadd.f32 %v1640_v54, %v1633_v39 }
 0x306   : > { %v1772_v4 = vpop.xlane.xlu1 %1771  ;;  %v1911_v3 = vpop.xlane.xlu0 %1910 }
 0x307   : > { %v1782_v52 = vadd.f32 %v1781_v14, %v1772_v4  ;;  %v1923_v59 = vadd.f32 %v1922_v40, %v1911_v3 }
 0x30a   : > { %v1564_v2 = vpop.xlane.xlu1 %1563  ;;  %v1636_v34 = vpop.xlane.xlu0 %1635 }
 0x30b   : > { %v1571_v57 = vsel %vm1570_vm2, %v1564_v2, 0.0  ;;  %v1642_v10 = vsel %vm1570_vm2, %v1636_v34, 0.0 }
 0x30c   : > { %v1572_v25 = vadd.f32 %v1571_v57, %v1569_v56  ;;  %v1643_v31 = vadd.f32 %v1642_v10, %v1641_v6 }
 0x30e   : > { %v1573_v33 = vrot.slane %v1572_v25, 4  ;;  %v1644_v23 = vrot.slane %v1643_v31, 4  ;;  %v1704_v53 = vpop.xlane.xlu1 %1703  ;;  %v1843_v11 = vpop.xlane.xlu0 %1842 }
 0x30f   : > { %v1712_v9 = vadd.f32 %v1711_v17, %v1704_v53  ;;  %v1853_v50 = vadd.f32 %v1852_v47, %v1843_v11 }
 0x310   : > { %v1574_v36 = vadd.f32 %v1573_v33, %v1572_v25  ;;  %v1645_v24 = vadd.f32 %v1644_v23, %v1643_v31 }
 0x312   : > { %v1575_v43 = vrot.slane %v1574_v36, 2  ;;  %v1646_v37 = vrot.slane %v1645_v24, 2  ;;  %v1707_v28 = vpop.xlane.xlu1 %1706  ;;  %v1775_v21 = vpop.xlane.xlu0 %1774 }
 0x313   : > { %v1713_v38 = vsel %vm1570_vm2, %v1707_v28, 0.0  ;;  %v1783_v8 = vadd.f32 %v1782_v52, %v1775_v21 }
 0x314   : > { %v1576_v62 = vadd.f32 %v1575_v43, %v1574_v36  ;;  %v1647_v18 = vadd.f32 %v1646_v37, %v1645_v24  ;;  %v1714_v55 = vadd.f32 %v1713_v38, %v1712_v9  ;;  %v1944_v43 = vld [vmem:[%s4269_s3] sm:$0x1] }
 0x316   : > { %v1577_v48 = vrot.slane %v1576_v62, 1  ;;  %v1648_v20 = vrot.slane %v1647_v18, 1  ;;  %v1715_v61 = vrot.slane %v1714_v55, 4  ;;  %v1914_v51 = vpop.xlane.xlu1 %1913  ;;  %v1778_v35 = vpop.xlane.xlu0 %1777 }
 0x317   : > { %v1784_v42 = vsel %vm1570_vm2, %v1778_v35, 0.0  ;;  %v1924_v45 = vadd.f32 %v1923_v59, %v1914_v51 }
 0x318   : > { %v1578_v22 = vadd.f32 %v1577_v48, %v1576_v62  ;;  %v1649_v7 = vadd.f32 %v1648_v20, %v1647_v18  ;;  %v1716_v19 = vadd.f32 %v1715_v61, %v1714_v55  ;;  %v1785_v49 = vadd.f32 %v1784_v42, %v1783_v8 }
 0x31a   : > { %v1935_v46 = vsel %vm1934_vm3, %v1578_v22, %v1649_v7  ;;  %v1786_v63 = vrot.slane %v1785_v49, 4  ;;  %v1846_v1 = vpop.xlane.xlu1 %1845  ;;  %v1849_v39 = vpop.xlane.xlu0 %1848  ;;  %v1717_v15 = vrot.slane %v1716_v19, 2 }
 0x31b   : > { %v1854_v29 = vadd.f32 %v1853_v50, %v1846_v1  ;;  %v1855_v12 = vsel %vm1570_vm2, %v1849_v39, 0.0 }
 0x31c   : > { %v1787_v13 = vadd.f32 %v1786_v63, %v1785_v49  ;;  %v1718_v6 = vadd.f32 %v1717_v15, %v1716_v19 }
 0x31d   : > { %v1856_v0 = vadd.f32 %v1855_v12, %v1854_v29 }
 0x31e   : > { %v1788_v4 = vrot.slane %v1787_v13, 2  ;;  %v1917_v27 = vpop.xlane.xlu1 %1916  ;;  %v1920_v54 = vpop.xlane.xlu0 %1919  ;;  %v1719_v44 = vrot.slane %v1718_v6, 1 }
 0x31f   : > { %v1857_v16 = vrot.slane %v1856_v0, 4  ;;  %v1925_v56 = vadd.f32 %v1924_v45, %v1917_v27  ;;  %v1926_v58 = vsel %vm1570_vm2, %v1920_v54, 0.0 }
 0x320   : > { %v1789_v2 = vadd.f32 %v1788_v4, %v1787_v13  ;;  %v1720_v23 = vadd.f32 %v1719_v44, %v1718_v6 }
 0x321   : > { %v1858_v34 = vadd.f32 %v1857_v16, %v1856_v0  ;;  %v1927_v57 = vadd.f32 %v1926_v58, %v1925_v56 }
 0x322   : > { %v1790_v25 = vrot.slane %v1789_v2, 1  ;;  %v1937_v36 = vsel %vm1936_vm4, %v1935_v46, %v1720_v23 }
 0x323   : > { %v1859_v3 = vrot.slane %v1858_v34, 2  ;;  %v1928_v10 = vrot.slane %v1927_v57, 4 }
 0x324   : > { %v1791_v53 = vadd.f32 %v1790_v25, %v1789_v2 }
 0x325   : > { %v1860_v31 = vadd.f32 %v1859_v3, %v1858_v34  ;;  %v1929_v30 = vadd.f32 %v1928_v10, %v1927_v57 }
 0x326   : > { %v1939_v24 = vsel %vm1938_vm5, %v1937_v36, %v1791_v53 }
 0x327   : > { %v1861_v26 = vrot.slane %v1860_v31, 1  ;;  %v1930_v33 = vrot.slane %v1929_v30, 2 }
 0x329   : > { %v1931_v11 = vadd.f32 %v1930_v33, %v1929_v30  ;;  %v1862_v60 = vadd.f32 %v1861_v26, %v1860_v31 }
 0x32b   : > { %v1932_v17 = vrot.slane %v1931_v11, 1  ;;  %v1941_v37 = vsel %vm1940_vm6, %v1939_v24, %v1862_v60 }
 0x32d   : > { %v1933_v14 = vadd.f32 %v1932_v17, %v1931_v11 }
 0x32f   : > { %v1943_v9 = vsel %vm1942_vm7, %v1941_v37, %v1933_v14 }
 0x330   : > { %v1945_v28 = vadd.f32 %v1944_v43, %v1943_v9 }
 0x332   : > { %1947 = vst.msk [vmem:[%s203_s27] sm:$0x1] %vm1946_vm8, %v1945_v28 }
 0x333   : > { %2246 = shalt.err (!%p2243_p2)
}
 0x334   : > { %s2247_s9 = scalar_lea.hbm %s4224_s14, 16  ;;  %s2251_s13 = scalar_lea.hbm %s4270_s4, 32 }
 0x335   : > { %p2248_p3 = scmp.ne.s32.totalorder %s4224_s14, %s2247_s9  ;;  %p2252_p8 = scmp.lt.u32.totalorder %s4224_s14, %s4270_s4 }
 0x336   : > { %p2253_p11 = scmp.lt.u32.totalorder %s2251_s13, %s2247_s9  ;;  %p2255_p10 = scmp.lt.u32.totalorder %s2247_s9, %s4224_s14 }
 0x337   : > { %p2249_p4 = pnand %p2248_p3, %p2368_p5 }
 0x338   : > { %p2254_p9 = por %p2253_p11, %p2252_p8 }
 0x339   : > { %p2250_p7 = pneg %p2249_p4 }
 0x33a   : > { %p2256_p12 = por %p2255_p10, %p2254_p9 }
 0x33c   : > { %p2257_p13 = pnand %p2256_p12, %p2250_p7 }
 0x33e   : > { %2260 = shalt.err (!%p2257_p13)
}
 0x33f   : > { %2151 = dma.vmem_to_hbm [thread:$0]  (%p2368_p5), %s4226_s28, 16, %s4224_s14, %s1949_s5  }
 0x340 PF: > { %p2163_p0 = scmp.ge.s32.totalorder %s2299_s18, 2  ;;  %s1973_s12 = sand.u32 1, %s2287_s15  }
 0x341   : > { %s1974_s23 = scalar_lea.sflag [#allocation3], %s1973_s12 }
 0x342   : > { %p2158_p1 = pnand %p2163_p0, %p2372_p6 }
 0x344   : > { %2282 = dma.done.wait (!%p2158_p1), %s1974_s23, 16  }
 0x345   : > { %2284 = vsyncadd (!%p2158_p1), %s1974_s23, 4294967280  ;;  %p15_p2 = scmp.ge.s32.totalorder %s2355_s21, 4   ;;  %s4559_s15 = smov %s2291_s16 }
 0x346   : > { %s4560_s16 = smov %s2295_s17  ;;  %s4561_s17 = smov %s2366_s24 }
 0x347   : > { %s4562_s18 = smov %s2355_s21  ;;  %17 = sbr.rel (!%p15_p2) target bundleno = 4 (0x4), region = 88 }
 0x34e   :  { %1978 = vsyncpa [#allocation3], 1 }
 0x34f   :  { %1980 = vsyncpa [#allocation3 + $0x1], 1 }
 0x350   :  { %1981 = vsyncpa [#allocation4], 1 }
 0x351   :  { %1983 = vsyncpa [#allocation4 + $0x1], 1 }

</bundles_post_ra>
